<compile_context>
chip_gen: v6e
topology: v6e:2x2x1
jax: 0.10.0
libtpu: 0.0.40
codegen_flags: <defaults>
</compile_context>

<pallas_src>
import functools
import math

import jax
import jax.numpy as jnp
from jax.experimental import pallas as pl
from jax.experimental.pallas import tpu as pltpu

_EPS = 1e-6


def _vmem_limit_bytes():
    """Generation-aware scoped-VMEM limit (96 MiB on 128 MiB parts, 48 MiB on v7x)."""
    try:
        phys = int(pltpu.get_tpu_info().vmem_capacity_bytes)
    except Exception:  # no info available -> conservative default
        phys = 64 * 1024 * 1024
    return int(min(96 * 1024 * 1024, phys * 3 // 4))


_VMEM_LIMIT = _vmem_limit_bytes()


# ----------------------------------------------------------------------------
# tiling helpers
# ----------------------------------------------------------------------------
def _pick_tile(dim, cap, base):
    """Largest tile <= cap that evenly divides `dim` (multiple of `base`),
    or the full dim when it already fits / no clean divisor exists."""
    if dim <= cap:
        return dim
    t = max(base, (cap // base) * base)
    while t >= base:
        if dim % t == 0:
            return t
        t -= base
    return dim


def _pick_tile_m(m, cap=512):
    """Row tile; guarantee >=2 blocks on the parallel M axis when possible
    so both v7x TensorCores are used."""
    tm = _pick_tile(m, cap, 8)
    if tm == m and m >= 16 and m % 16 == 0:
        tm = m // 2
    return tm


def _pick_tile_k(k, d_out, elem_bytes=2):
    """Reduction tile capped so the double-buffered (tk, d_out) weight block
    stays within ~1/4 of the scoped VMEM budget (matters on v7x's 64 MiB)."""
    cap = (_VMEM_LIMIT // 4) // (2 * elem_bytes * max(d_out, 1))
    cap = max(128, min(1024, (cap // 128) * 128))
    return _pick_tile(k, cap, 128)


def _matmul_cost(m, k, n, *, n_matmuls=1, extra_bytes=0):
    return pl.CostEstimate(
        flops=2 * m * k * n * n_matmuls,
        transcendentals=0,
        bytes_accessed=2 * (m * k + k * n) + 4 * m * n + extra_bytes)


# ----------------------------------------------------------------------------
# Pallas kernels
# ----------------------------------------------------------------------------
def linear_kernel(x_ref, w_ref, b_ref, o_ref, acc_ref, *, activation):
    """o = act(x @ w + b); grid (M, N, K); bf16 MXU inputs, f32 accumulator."""
    @pl.when(pl.program_id(2) == 0)
    def _():
        acc_ref[...] = jnp.zeros_like(acc_ref)

    acc_ref[...] += jnp.dot(x_ref[...].astype(jnp.bfloat16),
                            w_ref[...].astype(jnp.bfloat16),
                            preferred_element_type=jnp.float32)

    @pl.when(pl.program_id(2) == pl.num_programs(2) - 1)
    def _():
        y = acc_ref[...] + b_ref[...].astype(jnp.float32)
        if activation == "relu":
            y = jnp.maximum(y, 0.0)
        o_ref[...] = y.astype(o_ref.dtype)


def embed_ln_kernel(tok_ref, pos_ref, g_ref, b_ref, o_ref, *, eps):
    """o = LayerNorm(tok + pos) -- embedding add fused into the LN kernel."""
    x = tok_ref[0].astype(jnp.float32) + pos_ref[...].astype(jnp.float32)
    mu = jnp.mean(x, axis=-1, keepdims=True)
    var = jnp.mean(jnp.square(x - mu), axis=-1, keepdims=True)
    y = (x - mu) * jax.lax.rsqrt(var + eps)
    o_ref[0] = (y * g_ref[...] + b_ref[...]).astype(o_ref.dtype)


def matmul_res_ln_kernel(a_ref, w_ref, b_ref, res_ref, g_ref, beta_ref,
                         o_ref, acc_ref, *, eps):
    """o = LayerNorm(a @ w + b + residual); grid (M_tiles, K_tiles)."""
    @pl.when(pl.program_id(1) == 0)
    def _():
        acc_ref[...] = jnp.zeros_like(acc_ref)

    acc_ref[...] += jnp.dot(a_ref[...].astype(jnp.bfloat16),
                            w_ref[...].astype(jnp.bfloat16),
                            preferred_element_type=jnp.float32)

    @pl.when(pl.program_id(1) == pl.num_programs(1) - 1)
    def _():
        y = acc_ref[...] + b_ref[...] + res_ref[...].astype(jnp.float32)
        mu = jnp.mean(y, axis=-1, keepdims=True)
        var = jnp.mean(jnp.square(y - mu), axis=-1, keepdims=True)
        y = (y - mu) * jax.lax.rsqrt(var + eps)
        o_ref[...] = (y * g_ref[...] + beta_ref[...]).astype(o_ref.dtype)


def ffn_res_ln_kernel(x_ref, w1_ref, b1_ref, w2_ref, b2_ref, g_ref, beta_ref,
                      o_ref, acc_ref, *, eps):
    """o = LayerNorm(relu(x @ w1 + b1) @ w2 + b2 + x); K-loop over d_inner."""
    @pl.when(pl.program_id(1) == 0)
    def _():
        acc_ref[...] = jnp.zeros_like(acc_ref)

    h = jnp.dot(x_ref[...].astype(jnp.bfloat16), w1_ref[...].astype(jnp.bfloat16),
                preferred_element_type=jnp.float32)
    h = jnp.maximum(h + b1_ref[...], 0.0)
    acc_ref[...] += jnp.dot(h.astype(jnp.bfloat16), w2_ref[...].astype(jnp.bfloat16),
                            preferred_element_type=jnp.float32)

    @pl.when(pl.program_id(1) == pl.num_programs(1) - 1)
    def _():
        y = acc_ref[...] + b2_ref[...] + x_ref[...].astype(jnp.float32)
        mu = jnp.mean(y, axis=-1, keepdims=True)
        var = jnp.mean(jnp.square(y - mu), axis=-1, keepdims=True)
        y = (y - mu) * jax.lax.rsqrt(var + eps)
        o_ref[...] = (y * g_ref[...] + beta_ref[...]).astype(o_ref.dtype)


def mha_head_kernel(q_ref, k_ref, v_ref, valid_ref, o_ref, *, scale):
    """One (batch, head) of scaled-dot-product attention.

    q/k/v : [1, S, d_head]   (BlockSpec-sliced from the fused QKV tensor)
    valid : [1, 1, S]        (1 = real key token, 0 = padding)
    o     : [1, S, d_head]   (lane-dense per-head store; d_head % 128 == 0)
    """
    q = (q_ref[0].astype(jnp.float32) * scale).astype(jnp.bfloat16)
    k = k_ref[0].astype(jnp.bfloat16)
    v = v_ref[0].astype(jnp.bfloat16)
    valid = valid_ref[0]                                   # [1, S]

    # contract the head dim directly (no materialized k.T)
    s = jax.lax.dot_general(q, k, (((1,), (1,)), ((), ())),
                            preferred_element_type=jnp.float32)
    s = jnp.where(valid > 0.0, s, -1e9)                    # masked_fill(mask==0, -1e9)
    s = s - jnp.max(s, axis=-1, keepdims=True)
    p = jnp.exp(s)
    p = p * pl.reciprocal(jnp.sum(p, axis=-1, keepdims=True), approx=True)
    o = jnp.dot(p.astype(jnp.bfloat16), v, preferred_element_type=jnp.float32)
    o_ref[0] = o.astype(o_ref.dtype)


def attn_batch_kernel(qkv_ref, valid_ref, o_ref, *, n_head, scale):
    """Fallback per-batch attention for d_head not a multiple of 128."""
    qkv = qkv_ref[0]
    valid = valid_ref[0]
    d_model = qkv.shape[-1] // 3
    d_head = d_model // n_head
    outs = []
    for h in range(n_head):
        q = (qkv[:, h * d_head:(h + 1) * d_head].astype(jnp.float32)
             * scale).astype(jnp.bfloat16)
        k = qkv[:, d_model + h * d_head: d_model + (h + 1) * d_head].astype(jnp.bfloat16)
        v = qkv[:, 2 * d_model + h * d_head: 2 * d_model + (h + 1) * d_head].astype(jnp.bfloat16)
        s = jax.lax.dot_general(q, k, (((1,), (1,)), ((), ())),
                                preferred_element_type=jnp.float32)
        s = jnp.where(valid > 0.0, s, -1e9)
        s = s - jnp.max(s, axis=-1, keepdims=True)
        p = jnp.exp(s)
        p = p * pl.reciprocal(jnp.sum(p, axis=-1, keepdims=True), approx=True)
        outs.append(jnp.dot(p.astype(jnp.bfloat16), v,
                            preferred_element_type=jnp.float32))
    o_ref[0] = jnp.concatenate(outs, axis=-1).astype(o_ref.dtype)


# ----------------------------------------------------------------------------
# pallas_call wrappers
# ----------------------------------------------------------------------------
def linear(x, w, b, activation="none", out_dtype=None):
    M, K = x.shape
    N = w.shape[1]
    out_dtype = out_dtype or x.dtype
    tm = _pick_tile_m(M, 512)
    tn = _pick_tile(N, 1024, 128)
    tk = _pick_tile_k(K, tn)
    return pl.pallas_call(
        functools.partial(linear_kernel, activation=activation),
        out_shape=jax.ShapeDtypeStruct((M, N), out_dtype),
        grid_spec=pltpu.PrefetchScalarGridSpec(
            num_scalar_prefetch=0,
            grid=(M // tm, N // tn, K // tk),
            in_specs=[
                pl.BlockSpec((tm, tk), lambda i, j, k: (i, k)),
                pl.BlockSpec((tk, tn), lambda i, j, k: (k, j)),
                pl.BlockSpec((1, tn), lambda i, j, k: (0, j)),
            ],
            out_specs=pl.BlockSpec((tm, tn), lambda i, j, k: (i, j)),
            scratch_shapes=[pltpu.VMEM((tm, tn), jnp.float32)]),
        compiler_params=pltpu.CompilerParams(
            dimension_semantics=("parallel", "parallel", "arbitrary"),
            vmem_limit_bytes=_VMEM_LIMIT),
        cost_estimate=_matmul_cost(M, K, N),
    )(x, w, b.reshape(1, N))


def embed_layernorm(tok, pos, gamma, beta, eps=_EPS):
    """LayerNorm(tok + pos); tok [B,S,D], pos [S,D] -> [B,S,D]."""
    B, S, D = tok.shape
    ts = _pick_tile(S, 512, 8)
    return pl.pallas_call(
        functools.partial(embed_ln_kernel, eps=eps),
        out_shape=jax.ShapeDtypeStruct((B, S, D), jnp.float32),
        grid=(B, S // ts),
        in_specs=[
            pl.BlockSpec((1, ts, D), lambda b, i: (b, i, 0)),
            pl.BlockSpec((ts, D), lambda b, i: (i, 0)),
            pl.BlockSpec((1, D), lambda b, i: (0, 0)),
            pl.BlockSpec((1, D), lambda b, i: (0, 0)),
        ],
        out_specs=pl.BlockSpec((1, ts, D), lambda b, i: (b, i, 0)),
        compiler_params=pltpu.CompilerParams(
            dimension_semantics=("parallel", "parallel"),
            vmem_limit_bytes=_VMEM_LIMIT),
    )(tok, pos, gamma.reshape(1, D), beta.reshape(1, D))


def matmul_res_ln(a, w, b, residual, gamma, beta, eps=_EPS):
    M, K = a.shape
    D = w.shape[1]
    tm = _pick_tile_m(M, 512)
    tk = _pick_tile_k(K, D)
    return pl.pallas_call(
        functools.partial(matmul_res_ln_kernel, eps=eps),
        out_shape=jax.ShapeDtypeStruct((M, D), residual.dtype),
        grid_spec=pltpu.PrefetchScalarGridSpec(
            num_scalar_prefetch=0,
            grid=(M // tm, K // tk),
            in_specs=[
                pl.BlockSpec((tm, tk), lambda i, k: (i, k)),
                pl.BlockSpec((tk, D), lambda i, k: (k, 0)),
                pl.BlockSpec((1, D), lambda i, k: (0, 0)),
                pl.BlockSpec((tm, D), lambda i, k: (i, 0)),
                pl.BlockSpec((1, D), lambda i, k: (0, 0)),
                pl.BlockSpec((1, D), lambda i, k: (0, 0)),
            ],
            out_specs=pl.BlockSpec((tm, D), lambda i, k: (i, 0)),
            scratch_shapes=[pltpu.VMEM((tm, D), jnp.float32)]),
        compiler_params=pltpu.CompilerParams(
            dimension_semantics=("parallel", "arbitrary"),
            vmem_limit_bytes=_VMEM_LIMIT),
        cost_estimate=_matmul_cost(M, K, D, extra_bytes=4 * M * D),
    )(a, w, b.reshape(1, D), residual, gamma.reshape(1, D), beta.reshape(1, D))


def ffn_res_ln(x, w1, b1, w2, b2, gamma, beta, eps=_EPS):
    M, D = x.shape
    d_inner = w1.shape[1]
    tm = _pick_tile_m(M, 512)
    tk = _pick_tile_k(d_inner, 2 * D)   # (D,tk)+(tk,D) weight blocks, double-buffered
    return pl.pallas_call(
        functools.partial(ffn_res_ln_kernel, eps=eps),
        out_shape=jax.ShapeDtypeStruct((M, D), x.dtype),
        grid_spec=pltpu.PrefetchScalarGridSpec(
            num_scalar_prefetch=0,
            grid=(M // tm, d_inner // tk),
            in_specs=[
                pl.BlockSpec((tm, D), lambda i, k: (i, 0)),
                pl.BlockSpec((D, tk), lambda i, k: (0, k)),
                pl.BlockSpec((1, tk), lambda i, k: (0, k)),
                pl.BlockSpec((tk, D), lambda i, k: (k, 0)),
                pl.BlockSpec((1, D), lambda i, k: (0, 0)),
                pl.BlockSpec((1, D), lambda i, k: (0, 0)),
                pl.BlockSpec((1, D), lambda i, k: (0, 0)),
            ],
            out_specs=pl.BlockSpec((tm, D), lambda i, k: (i, 0)),
            scratch_shapes=[pltpu.VMEM((tm, D), jnp.float32)]),
        compiler_params=pltpu.CompilerParams(
            dimension_semantics=("parallel", "arbitrary"),
            vmem_limit_bytes=_VMEM_LIMIT),
        cost_estimate=_matmul_cost(M, D, d_inner, n_matmuls=2,
                                   extra_bytes=2 * d_inner * D + 4 * M * D),
    )(x, w1, b1.reshape(1, d_inner), w2, b2.reshape(1, D),
      gamma.reshape(1, D), beta.reshape(1, D))


def attention(qkv, valid, n_head, scale):
    """qkv: [B, S, 3D] (Q heads | K heads | V heads), valid: [B, 1, S] -> [B, S, D]."""
    B, S, D3 = qkv.shape
    D = D3 // 3
    d_head = D // n_head
    cost = pl.CostEstimate(
        flops=4 * B * n_head * S * S * d_head,
        transcendentals=B * n_head * S * S,
        bytes_accessed=int(qkv.size * qkv.dtype.itemsize
                           + B * S * D * qkv.dtype.itemsize + valid.size * 4))

    if d_head % 128 == 0 and S % 8 == 0:
        # BlockSpec DMA slices heads from the fused QKV; per-head output blocks
        # are lane-dense; both grid axes parallel (v7x uses its 2nd TensorCore).
        return pl.pallas_call(
            functools.partial(mha_head_kernel, scale=scale),
            out_shape=jax.ShapeDtypeStruct((B, S, D), qkv.dtype),
            grid=(B, n_head),
            in_specs=[
                pl.BlockSpec((1, S, d_head), lambda b, h: (b, 0, h)),
                pl.BlockSpec((1, S, d_head), lambda b, h, nh=n_head: (b, 0, nh + h)),
                pl.BlockSpec((1, S, d_head), lambda b, h, nh=n_head: (b, 0, 2 * nh + h)),
                pl.BlockSpec((1, 1, S), lambda b, h: (b, 0, 0)),
            ],
            out_specs=pl.BlockSpec((1, S, d_head), lambda b, h: (b, 0, h)),
            compiler_params=pltpu.CompilerParams(
                dimension_semantics=("parallel", "parallel"),
                vmem_limit_bytes=_VMEM_LIMIT),
            cost_estimate=cost,
        )(qkv, qkv, qkv, valid)

    # Fallback: per-batch kernel with in-kernel head slicing (small d_head).
    return pl.pallas_call(
        functools.partial(attn_batch_kernel, n_head=n_head, scale=scale),
        out_shape=jax.ShapeDtypeStruct((B, S, D), qkv.dtype),
        grid=(B,),
        in_specs=[
            pl.BlockSpec((1, S, D3), lambda b: (b, 0, 0)),
            pl.BlockSpec((1, 1, S), lambda b: (b, 0, 0)),
        ],
        out_specs=pl.BlockSpec((1, S, D), lambda b: (b, 0, 0)),
        compiler_params=pltpu.CompilerParams(
            dimension_semantics=("parallel",),
            vmem_limit_bytes=_VMEM_LIMIT),
        cost_estimate=cost,
    )(qkv, valid)


# ----------------------------------------------------------------------------
# Encoder forward (glue in plain JAX, hot path in Pallas)
# ----------------------------------------------------------------------------
def encoder_forward(params, src_seq, *, n_head, pad_idx=0):
    B, S = src_seq.shape
    D = params["tok_emb"].shape[1]

    # token gather is glue (padding row of the table is zero); the add with the
    # positional table and the embedding LayerNorm are fused in one kernel.
    tok = params["tok_emb"][src_seq]                 # [B, S, D]
    pos = params["pos_emb"][:S]                      # [S, D]
    x = embed_layernorm(tok, pos, params["ln0_g"], params["ln0_b"])
    x2d = x.reshape(B * S, D)                        # dropout == identity (eval)

    # key-padding validity vector [B, 1, S]; broadcast happens inside the kernel
    valid = (src_seq != pad_idx).astype(jnp.float32).reshape(B, 1, S)

    scale = 1.0 / math.sqrt(D // n_head)
    for p in params["layers"]:
        # fused Q/K/V projection: one [D, 3D] matmul (bf16 hop to HBM)
        qkv = linear(x2d, p["w_qkv"], p["b_qkv"], out_dtype=jnp.bfloat16)
        attn = attention(qkv.reshape(B, S, 3 * D), valid, n_head, scale)
        # output projection + residual + LayerNorm fused
        x2d = matmul_res_ln(attn.reshape(B * S, D), p["wo"], p["bo"],
                            x2d, p["ln1_g"], p["ln1_b"])
        # FFN (w1 + ReLU + w2) + residual + LayerNorm fused
        x2d = ffn_res_ln(x2d, p["w1"], p["b1"], p["w2"], p["b2"],
                         p["ln2_g"], p["ln2_b"])
    return x2d.reshape(B, S, D)


# ----------------------------------------------------------------------------
# Deterministic parameter construction (n_head kept OUT of the traced pytree)
# ----------------------------------------------------------------------------
def make_params(key, voc_size, max_len, d_emb, d_model, d_inner, n_layers,
                pad_idx=0):
    def nrm(k, shape, s=0.02):
        return s * jax.random.normal(k, shape, jnp.float32)

    keys = jax.random.split(key, 1 + 6 * n_layers)
    ki = iter(keys)

    tok_emb = nrm(next(ki), (voc_size, d_emb))
    tok_emb = tok_emb.at[pad_idx].set(0.0)           # padding_idx row = 0

    # sinusoidal positional table [max_len, d_emb]
    pos = jnp.arange(max_len, dtype=jnp.float32)[:, None]
    i = jnp.arange(d_emb)[None, :]
    angle = pos / jnp.power(10000.0, (2 * (i // 2)).astype(jnp.float32) / d_emb)
    pos_emb = jnp.where(i % 2 == 0, jnp.sin(angle), jnp.cos(angle)).astype(jnp.float32)

    bf16 = jnp.bfloat16
    layers = []
    for _ in range(n_layers):
        wq = nrm(next(ki), (d_model, d_model))
        wk = nrm(next(ki), (d_model, d_model))
        wv = nrm(next(ki), (d_model, d_model))
        layers.append(dict(
            w_qkv=jnp.concatenate([wq, wk, wv], axis=1).astype(bf16),   # [D, 3D]
            b_qkv=jnp.zeros((3 * d_model,), jnp.float32),
            wo=nrm(next(ki), (d_model, d_model)).astype(bf16),
            bo=jnp.zeros((d_model,), jnp.float32),
            ln1_g=jnp.ones((d_model,), jnp.float32),
            ln1_b=jnp.zeros((d_model,), jnp.float32),
            w1=nrm(next(ki), (d_model, d_inner)).astype(bf16),
            b1=jnp.zeros((d_inner,), jnp.float32),
            w2=nrm(next(ki), (d_inner, d_model)).astype(bf16),
            b2=jnp.zeros((d_model,), jnp.float32),
            ln2_g=jnp.ones((d_model,), jnp.float32),
            ln2_b=jnp.zeros((d_model,), jnp.float32),
        ))

    return dict(tok_emb=tok_emb, pos_emb=pos_emb,
                ln0_g=jnp.ones((d_emb,), jnp.float32),
                ln0_b=jnp.zeros((d_emb,), jnp.float32),
                layers=layers)


# ----------------------------------------------------------------------------
if __name__ == "__main__":
    # small, tile-friendly shapes consistent with the module (d_head = 128)
    VOC, MAX_LEN = 50, 32
    D_EMB = D_MODEL = 256
    D_INNER = 512
    N_HEAD = 2
    N_LAYERS = 2
    B, S = 2, 16
    PAD = 0

    key = jax.random.PRNGKey(0)
    pkey, dkey = jax.random.split(key)
    params = make_params(pkey, VOC, MAX_LEN, D_EMB, D_MODEL, D_INNER,
                         N_LAYERS, pad_idx=PAD)

    # deterministic token ids in [1, VOC), with trailing pad tokens
    src_seq = jax.random.randint(dkey, (B, S), 1, VOC, dtype=jnp.int32)
    src_seq = src_seq.at[:, -2:].set(PAD)

    fwd = jax.jit(functools.partial(encoder_forward, n_head=N_HEAD, pad_idx=PAD))
    out = jax.block_until_ready(fwd(params, src_seq))

    assert out.shape == (B, S, D_EMB)
    assert bool(jnp.all(jnp.isfinite(out)))
    print("KERNEL_OK")
</pallas_src>

<mosaic_0001>
module attributes {stable_mosaic.version = 11 : i64} {
  func.func @linear_kernel(%arg0: i32, %arg1: i32, %arg2: i32, %arg3: memref<16x256xf32, #tpu.memory_space<vmem>>, %arg4: memref<256x768xbf16, #tpu.memory_space<vmem>>, %arg5: memref<1x768xf32, #tpu.memory_space<vmem>>, %arg6: memref<16x768xbf16, #tpu.memory_space<vmem>>, %arg7: memref<16x768xf32, #tpu.memory_space<vmem>>) attributes {dimension_semantics = [#tpu.dimension_semantics<parallel>, #tpu.dimension_semantics<parallel>, #tpu.dimension_semantics<arbitrary>], iteration_bounds = array<i64: 2, 1, 1>, scalar_prefetch = 0 : i64, scratch_operands = 1 : i64, tpu.core_type = #tpu.core_type<tc>, window_params = [{transform_indices = @transform_0, window_bounds = array<i64: 16, 256>}, {transform_indices = @transform_1, window_bounds = array<i64: 256, 768>}, {transform_indices = @transform_2, window_bounds = array<i64: 1, 768>}, {transform_indices = @transform_3, window_bounds = array<i64: 16, 768>}]} {
    %c0_i32 = arith.constant 0 : i32
    %0 = arith.cmpi eq, %arg2, %c0_i32 : i32
    %1 = arith.extui %0 : i1 to i32
    %c0_i32_0 = arith.constant 0 : i32
    %2 = arith.cmpi ne, %1, %c0_i32_0 : i32
    scf.if %2 {
      %cst_10 = arith.constant 0.000000e+00 : f32
      %13 = vector.broadcast %cst_10 : f32 to vector<16x768xf32>
      %c0_11 = arith.constant 0 : index
      %c0_12 = arith.constant 0 : index
      %14 = vector.load %arg7[%c0_11, %c0_12] : memref<16x768xf32, #tpu.memory_space<vmem>>, vector<16x768xf32>
      tpu.vector_store %arg7[%c0_11, %c0_12], %13 {strides = array<i32>} : memref<16x768xf32, #tpu.memory_space<vmem>>, vector<16x768xf32>,
    } else {
    }
    %c0 = arith.constant 0 : index
    %c0_1 = arith.constant 0 : index
    %3 = vector.load %arg7[%c0, %c0_1] : memref<16x768xf32, #tpu.memory_space<vmem>>, vector<16x768xf32>
    %c0_2 = arith.constant 0 : index
    %c0_3 = arith.constant 0 : index
    %4 = vector.load %arg3[%c0_2, %c0_3] : memref<16x256xf32, #tpu.memory_space<vmem>>, vector<16x256xf32>
    %5 = arith.truncf %4 : vector<16x256xf32> to vector<16x256xbf16>
    %c0_4 = arith.constant 0 : index
    %c0_5 = arith.constant 0 : index
    %6 = vector.load %arg4[%c0_4, %c0_5] : memref<256x768xbf16, #tpu.memory_space<vmem>>, vector<256x768xbf16>
    %cst = arith.constant dense<0.000000e+00> : vector<16x768xf32>
    %7 = tpu.matmul %5, %6, %cst {dimension_numbers = #tpu.dot_dimension_numbers<[1], [0], [0], [1], [0, 0, 1, 1], [], []>} : vector<16x256xbf16>, vector<256x768xbf16>, vector<16x768xf32> -> vector<16x768xf32>
    %8 = arith.addf %3, %7 : vector<16x768xf32>
    %c0_6 = arith.constant 0 : index
    %c0_7 = arith.constant 0 : index
    %9 = vector.load %arg7[%c0_6, %c0_7] : memref<16x768xf32, #tpu.memory_space<vmem>>, vector<16x768xf32>
    tpu.vector_store %arg7[%c0_6, %c0_7], %8 {strides = array<i32>} : memref<16x768xf32, #tpu.memory_space<vmem>>, vector<16x768xf32>,
    %c0_i32_8 = arith.constant 0 : i32
    %10 = arith.cmpi eq, %arg2, %c0_i32_8 : i32
    %11 = arith.extui %10 : i1 to i32
    %c0_i32_9 = arith.constant 0 : i32
    %12 = arith.cmpi ne, %11, %c0_i32_9 : i32
    scf.if %12 {
      %c0_10 = arith.constant 0 : index
      %c0_11 = arith.constant 0 : index
      %13 = vector.load %arg7[%c0_10, %c0_11] : memref<16x768xf32, #tpu.memory_space<vmem>>, vector<16x768xf32>
      %c0_12 = arith.constant 0 : index
      %c0_13 = arith.constant 0 : index
      %14 = vector.load %arg5[%c0_12, %c0_13] : memref<1x768xf32, #tpu.memory_space<vmem>>, vector<1x768xf32>
      %15 = vector.broadcast %14 : vector<1x768xf32> to vector<16x768xf32>
      %16 = arith.addf %13, %15 : vector<16x768xf32>
      %17 = arith.truncf %16 : vector<16x768xf32> to vector<16x768xbf16>
      %c0_14 = arith.constant 0 : index
      %c0_15 = arith.constant 0 : index
      %18 = vector.load %arg6[%c0_14, %c0_15] : memref<16x768xbf16, #tpu.memory_space<vmem>>, vector<16x768xbf16>
      tpu.vector_store %arg6[%c0_14, %c0_15], %17 {strides = array<i32>} : memref<16x768xbf16, #tpu.memory_space<vmem>>, vector<16x768xbf16>,
    } else {
    }
    return
  }
  func.func @transform_0(%arg0: i32, %arg1: i32, %arg2: i32) -> (i32, i32) {
    %c0_i32 = arith.constant 0 : i32
    return %arg0, %arg2 : i32, i32
  }
  func.func @transform_1(%arg0: i32, %arg1: i32, %arg2: i32) -> (i32, i32) {
    %c0_i32 = arith.constant 0 : i32
    return %arg2, %arg1 : i32, i32
  }
  func.func @transform_2(%arg0: i32, %arg1: i32, %arg2: i32) -> (i32, i32) {
    %c0_i32 = arith.constant 0 : i32
    %c0_i32_0 = arith.constant 0 : i32
    return %c0_i32, %arg1 : i32, i32
  }
  func.func @transform_3(%arg0: i32, %arg1: i32, %arg2: i32) -> (i32, i32) {
    %c0_i32 = arith.constant 0 : i32
    return %arg0, %arg1 : i32, i32
  }
}

module attributes {stable_mosaic.version = 11 : i64} {
  func.func @embed_ln_kernel(%arg0: i32, %arg1: i32, %arg2: memref<1x16x256xf32, #tpu.memory_space<vmem>>, %arg3: memref<16x256xf32, #tpu.memory_space<vmem>>, %arg4: memref<1x256xf32, #tpu.memory_space<vmem>>, %arg5: memref<1x256xf32, #tpu.memory_space<vmem>>, %arg6: memref<1x16x256xf32, #tpu.memory_space<vmem>>) attributes {dimension_semantics = [#tpu.dimension_semantics<parallel>, #tpu.dimension_semantics<parallel>], iteration_bounds = array<i64: 2, 1>, scalar_prefetch = 0 : i64, scratch_operands = 0 : i64, tpu.core_type = #tpu.core_type<tc>, window_params = [{transform_indices = @transform_0, window_bounds = array<i64: 1, 16, 256>}, {transform_indices = @transform_1, window_bounds = array<i64: 16, 256>}, {pipeline_mode = #tpu.pipeline_mode<synchronous>, transform_indices = @transform_2, window_bounds = array<i64: 1, 256>}, {pipeline_mode = #tpu.pipeline_mode<synchronous>, transform_indices = @transform_3, window_bounds = array<i64: 1, 256>}, {transform_indices = @transform_4, window_bounds = array<i64: 1, 16, 256>}]} {
    %c0 = arith.constant 0 : index
    %c0_0 = arith.constant 0 : index
    %c0_1 = arith.constant 0 : index
    %0 = vector.load %arg2[%c0, %c0_0, %c0_1] : memref<1x16x256xf32, #tpu.memory_space<vmem>>, vector<1x16x256xf32>
    %1 = vector.shape_cast %0 : vector<1x16x256xf32> to vector<16x256xf32>
    %c0_2 = arith.constant 0 : index
    %c0_3 = arith.constant 0 : index
    %2 = vector.load %arg3[%c0_2, %c0_3] : memref<16x256xf32, #tpu.memory_space<vmem>>, vector<16x256xf32>
    %3 = arith.addf %1, %2 : vector<16x256xf32>
    %cst = arith.constant dense<0.000000e+00> : vector<16xf32>
    %4 = vector.multi_reduction <add>, %3, %cst [1] : vector<16x256xf32> to vector<16xf32>
    %5 = vector.shape_cast %4 : vector<16xf32> to vector<16x1xf32>
    %cst_4 = arith.constant 2.560000e+02 : f32
    %6 = vector.broadcast %cst_4 : f32 to vector<16x1xf32>
    %7 = arith.divf %5, %6 : vector<16x1xf32>
    %8 = vector.broadcast %7 : vector<16x1xf32> to vector<16x256xf32>
    %9 = arith.subf %3, %8 : vector<16x256xf32>
    %10 = arith.mulf %9, %9 : vector<16x256xf32>
    %cst_5 = arith.constant dense<0.000000e+00> : vector<16xf32>
    %11 = vector.multi_reduction <add>, %10, %cst_5 [1] : vector<16x256xf32> to vector<16xf32>
    %12 = vector.shape_cast %11 : vector<16xf32> to vector<16x1xf32>
    %cst_6 = arith.constant 2.560000e+02 : f32
    %13 = vector.broadcast %cst_6 : f32 to vector<16x1xf32>
    %14 = arith.divf %12, %13 : vector<16x1xf32>
    %15 = vector.broadcast %7 : vector<16x1xf32> to vector<16x256xf32>
    %16 = arith.subf %3, %15 : vector<16x256xf32>
    %cst_7 = arith.constant 9.99999997E-7 : f32
    %17 = vector.broadcast %cst_7 : f32 to vector<16x1xf32>
    %18 = arith.addf %14, %17 : vector<16x1xf32>
    %19 = math.rsqrt %18 : vector<16x1xf32>
    %20 = vector.broadcast %19 : vector<16x1xf32> to vector<16x256xf32>
    %21 = arith.mulf %16, %20 : vector<16x256xf32>
    %c0_8 = arith.constant 0 : index
    %c0_9 = arith.constant 0 : index
    %22 = vector.load %arg4[%c0_8, %c0_9] : memref<1x256xf32, #tpu.memory_space<vmem>>, vector<1x256xf32>
    %23 = vector.broadcast %22 : vector<1x256xf32> to vector<16x256xf32>
    %24 = arith.mulf %21, %23 : vector<16x256xf32>
    %c0_10 = arith.constant 0 : index
    %c0_11 = arith.constant 0 : index
    %25 = vector.load %arg5[%c0_10, %c0_11] : memref<1x256xf32, #tpu.memory_space<vmem>>, vector<1x256xf32>
    %26 = vector.broadcast %25 : vector<1x256xf32> to vector<16x256xf32>
    %27 = arith.addf %24, %26 : vector<16x256xf32>
    %c0_12 = arith.constant 0 : index
    %c0_13 = arith.constant 0 : index
    %c0_14 = arith.constant 0 : index
    %28 = vector.load %arg6[%c0_12, %c0_13, %c0_14] : memref<1x16x256xf32, #tpu.memory_space<vmem>>, vector<1x16x256xf32>
    %29 = vector.shape_cast %28 : vector<1x16x256xf32> to vector<16x256xf32>
    %30 = vector.shape_cast %27 : vector<16x256xf32> to vector<1x16x256xf32>
    tpu.vector_store %arg6[%c0_12, %c0_13, %c0_14], %30 {strides = array<i32>} : memref<1x16x256xf32, #tpu.memory_space<vmem>>, vector<1x16x256xf32>,
    return
  }
  func.func @transform_0(%arg0: i32, %arg1: i32) -> (i32, i32, i32) {
    %c0_i32 = arith.constant 0 : i32
    %c0_i32_0 = arith.constant 0 : i32
    return %arg0, %arg1, %c0_i32 : i32, i32, i32
  }
  func.func @transform_1(%arg0: i32, %arg1: i32) -> (i32, i32) {
    %c0_i32 = arith.constant 0 : i32
    %c0_i32_0 = arith.constant 0 : i32
    return %arg1, %c0_i32 : i32, i32
  }
  func.func @transform_2(%arg0: i32, %arg1: i32) -> (i32, i32) {
    %c0_i32 = arith.constant 0 : i32
    %c0_i32_0 = arith.constant 0 : i32
    %c0_i32_1 = arith.constant 0 : i32
    return %c0_i32, %c0_i32_0 : i32, i32
  }
  func.func @transform_3(%arg0: i32, %arg1: i32) -> (i32, i32) {
    %c0_i32 = arith.constant 0 : i32
    %c0_i32_0 = arith.constant 0 : i32
    %c0_i32_1 = arith.constant 0 : i32
    return %c0_i32, %c0_i32_0 : i32, i32
  }
  func.func @transform_4(%arg0: i32, %arg1: i32) -> (i32, i32, i32) {
    %c0_i32 = arith.constant 0 : i32
    %c0_i32_0 = arith.constant 0 : i32
    return %arg0, %arg1, %c0_i32 : i32, i32, i32
  }
}

module attributes {stable_mosaic.version = 11 : i64} {
  func.func @mha_head_kernel(%arg0: i32, %arg1: i32, %arg2: memref<1x16x128xbf16, #tpu.memory_space<vmem>>, %arg3: memref<1x16x128xbf16, #tpu.memory_space<vmem>>, %arg4: memref<1x16x128xbf16, #tpu.memory_space<vmem>>, %arg5: memref<1x1x16xf32, #tpu.memory_space<vmem>>, %arg6: memref<1x16x128xbf16, #tpu.memory_space<vmem>>) attributes {dimension_semantics = [#tpu.dimension_semantics<parallel>, #tpu.dimension_semantics<parallel>], iteration_bounds = array<i64: 2, 2>, scalar_prefetch = 0 : i64, scratch_operands = 0 : i64, tpu.core_type = #tpu.core_type<tc>, window_params = [{transform_indices = @transform_0, window_bounds = array<i64: 1, 16, 128>}, {transform_indices = @transform_1, window_bounds = array<i64: 1, 16, 128>}, {transform_indices = @transform_2, window_bounds = array<i64: 1, 16, 128>}, {transform_indices = @transform_3, window_bounds = array<i64: 1, 1, 16>}, {transform_indices = @transform_4, window_bounds = array<i64: 1, 16, 128>}]} {
    %c0 = arith.constant 0 : index
    %c0_0 = arith.constant 0 : index
    %c0_1 = arith.constant 0 : index
    %0 = vector.load %arg2[%c0, %c0_0, %c0_1] : memref<1x16x128xbf16, #tpu.memory_space<vmem>>, vector<1x16x128xbf16>
    %1 = vector.shape_cast %0 : vector<1x16x128xbf16> to vector<16x128xbf16>
    %2 = arith.extf %1 : vector<16x128xbf16> to vector<16x128xf32>
    %cst = arith.constant 0.0883883461 : f32
    %3 = vector.broadcast %cst : f32 to vector<16x128xf32>
    %4 = arith.mulf %2, %3 : vector<16x128xf32>
    %5 = arith.truncf %4 : vector<16x128xf32> to vector<16x128xbf16>
    %c0_2 = arith.constant 0 : index
    %c0_3 = arith.constant 0 : index
    %c0_4 = arith.constant 0 : index
    %6 = vector.load %arg3[%c0_2, %c0_3, %c0_4] : memref<1x16x128xbf16, #tpu.memory_space<vmem>>, vector<1x16x128xbf16>
    %7 = vector.shape_cast %6 : vector<1x16x128xbf16> to vector<16x128xbf16>
    %c0_5 = arith.constant 0 : index
    %c0_6 = arith.constant 0 : index
    %c0_7 = arith.constant 0 : index
    %8 = vector.load %arg4[%c0_5, %c0_6, %c0_7] : memref<1x16x128xbf16, #tpu.memory_space<vmem>>, vector<1x16x128xbf16>
    %9 = vector.shape_cast %8 : vector<1x16x128xbf16> to vector<16x128xbf16>
    %c0_8 = arith.constant 0 : index
    %c0_9 = arith.constant 0 : index
    %c0_10 = arith.constant 0 : index
    %10 = vector.load %arg5[%c0_8, %c0_9, %c0_10] : memref<1x1x16xf32, #tpu.memory_space<vmem>>, vector<1x1x16xf32>
    %11 = vector.shape_cast %10 : vector<1x1x16xf32> to vector<1x16xf32>
    %cst_11 = arith.constant dense<0.000000e+00> : vector<16x16xf32>
    %12 = tpu.matmul %5, %7, %cst_11 {dimension_numbers = #tpu.dot_dimension_numbers<[1], [1], [0], [0], [0, 0, 1, 0], [], []>} : vector<16x128xbf16>, vector<16x128xbf16>, vector<16x16xf32> -> vector<16x16xf32>
    %cst_12 = arith.constant 0.000000e+00 : f32
    %13 = vector.broadcast %cst_12 : f32 to vector<1x16xf32>
    %14 = arith.cmpf ogt, %11, %13 : vector<1x16xf32>
    %cst_13 = arith.constant -1.000000e+09 : f32
    %15 = vector.shape_cast %14 : vector<1x16xi1> to vector<1x16xi1>
    %16 = vector.broadcast %15 : vector<1x16xi1> to vector<16x16xi1>
    %17 = vector.broadcast %cst_13 : f32 to vector<16x16xf32>
    %18 = arith.select %16, %12, %17 : vector<16x16xi1>, vector<16x16xf32>
    %cst_14 = arith.constant dense<0xFF800000> : vector<16xf32>
    %19 = vector.multi_reduction <maximumf>, %18, %cst_14 [1] : vector<16x16xf32> to vector<16xf32>
    %20 = vector.shape_cast %19 : vector<16xf32> to vector<16x1xf32>
    %21 = vector.broadcast %20 : vector<16x1xf32> to vector<16x16xf32>
    %22 = arith.subf %18, %21 : vector<16x16xf32>
    %23 = math.exp %22 : vector<16x16xf32>
    %cst_15 = arith.constant dense<0.000000e+00> : vector<16xf32>
    %24 = vector.multi_reduction <add>, %23, %cst_15 [1] : vector<16x16xf32> to vector<16xf32>
    %25 = vector.shape_cast %24 : vector<16xf32> to vector<16x1xf32>
    %26 = tpu.reciprocal %25 {approx = true} : vector<16x1xf32> -> vector<16x1xf32>
    %27 = vector.broadcast %26 : vector<16x1xf32> to vector<16x16xf32>
    %28 = arith.mulf %23, %27 : vector<16x16xf32>
    %29 = arith.truncf %28 : vector<16x16xf32> to vector<16x16xbf16>
    %cst_16 = arith.constant dense<0.000000e+00> : vector<16x128xf32>
    %30 = tpu.matmul %29, %9, %cst_16 {dimension_numbers = #tpu.dot_dimension_numbers<[1], [0], [0], [1], [0, 0, 1, 1], [], []>} : vector<16x16xbf16>, vector<16x128xbf16>, vector<16x128xf32> -> vector<16x128xf32>
    %31 = arith.truncf %30 : vector<16x128xf32> to vector<16x128xbf16>
    %c0_17 = arith.constant 0 : index
    %c0_18 = arith.constant 0 : index
    %c0_19 = arith.constant 0 : index
    %32 = vector.load %arg6[%c0_17, %c0_18, %c0_19] : memref<1x16x128xbf16, #tpu.memory_space<vmem>>, vector<1x16x128xbf16>
    %33 = vector.shape_cast %32 : vector<1x16x128xbf16> to vector<16x128xbf16>
    %34 = vector.shape_cast %31 : vector<16x128xbf16> to vector<1x16x128xbf16>
    tpu.vector_store %arg6[%c0_17, %c0_18, %c0_19], %34 {strides = array<i32>} : memref<1x16x128xbf16, #tpu.memory_space<vmem>>, vector<1x16x128xbf16>,
    return
  }
  func.func @transform_0(%arg0: i32, %arg1: i32) -> (i32, i32, i32) {
    %c0_i32 = arith.constant 0 : i32
    %c0_i32_0 = arith.constant 0 : i32
    return %arg0, %c0_i32, %arg1 : i32, i32, i32
  }
  func.func @transform_1(%arg0: i32, %arg1: i32) -> (i32, i32, i32) {
    %c2_i32 = arith.constant 2 : i32
    %0 = arith.addi %c2_i32, %arg1 : i32
    %c0_i32 = arith.constant 0 : i32
    %c0_i32_0 = arith.constant 0 : i32
    return %arg0, %c0_i32, %0 : i32, i32, i32
  }
  func.func @transform_2(%arg0: i32, %arg1: i32) -> (i32, i32, i32) {
    %c4_i32 = arith.constant 4 : i32
    %0 = arith.addi %c4_i32, %arg1 : i32
    %c0_i32 = arith.constant 0 : i32
    %c0_i32_0 = arith.constant 0 : i32
    return %arg0, %c0_i32, %0 : i32, i32, i32
  }
  func.func @transform_3(%arg0: i32, %arg1: i32) -> (i32, i32, i32) {
    %c0_i32 = arith.constant 0 : i32
    %c0_i32_0 = arith.constant 0 : i32
    %c0_i32_1 = arith.constant 0 : i32
    return %arg0, %c0_i32, %c0_i32_0 : i32, i32, i32
  }
  func.func @transform_4(%arg0: i32, %arg1: i32) -> (i32, i32, i32) {
    %c0_i32 = arith.constant 0 : i32
    %c0_i32_0 = arith.constant 0 : i32
    return %arg0, %c0_i32, %arg1 : i32, i32, i32
  }
}

module attributes {stable_mosaic.version = 11 : i64} {
  func.func @matmul_res_ln_kernel(%arg0: i32, %arg1: i32, %arg2: memref<16x256xbf16, #tpu.memory_space<vmem>>, %arg3: memref<256x256xbf16, #tpu.memory_space<vmem>>, %arg4: memref<1x256xf32, #tpu.memory_space<vmem>>, %arg5: memref<16x256xf32, #tpu.memory_space<vmem>>, %arg6: memref<1x256xf32, #tpu.memory_space<vmem>>, %arg7: memref<1x256xf32, #tpu.memory_space<vmem>>, %arg8: memref<16x256xf32, #tpu.memory_space<vmem>>, %arg9: memref<16x256xf32, #tpu.memory_space<vmem>>) attributes {dimension_semantics = [#tpu.dimension_semantics<parallel>, #tpu.dimension_semantics<arbitrary>], iteration_bounds = array<i64: 2, 1>, scalar_prefetch = 0 : i64, scratch_operands = 1 : i64, tpu.core_type = #tpu.core_type<tc>, window_params = [{transform_indices = @transform_0, window_bounds = array<i64: 16, 256>}, {transform_indices = @transform_1, window_bounds = array<i64: 256, 256>}, {pipeline_mode = #tpu.pipeline_mode<synchronous>, transform_indices = @transform_2, window_bounds = array<i64: 1, 256>}, {transform_indices = @transform_3, window_bounds = array<i64: 16, 256>}, {pipeline_mode = #tpu.pipeline_mode<synchronous>, transform_indices = @transform_4, window_bounds = array<i64: 1, 256>}, {pipeline_mode = #tpu.pipeline_mode<synchronous>, transform_indices = @transform_5, window_bounds = array<i64: 1, 256>}, {transform_indices = @transform_6, window_bounds = array<i64: 16, 256>}]} {
    %c0_i32 = arith.constant 0 : i32
    %0 = arith.cmpi eq, %arg1, %c0_i32 : i32
    %1 = arith.extui %0 : i1 to i32
    %c0_i32_0 = arith.constant 0 : i32
    %2 = arith.cmpi ne, %1, %c0_i32_0 : i32
    scf.if %2 {
      %cst_10 = arith.constant 0.000000e+00 : f32
      %12 = vector.broadcast %cst_10 : f32 to vector<16x256xf32>
      %c0_11 = arith.constant 0 : index
      %c0_12 = arith.constant 0 : index
      %13 = vector.load %arg9[%c0_11, %c0_12] : memref<16x256xf32, #tpu.memory_space<vmem>>, vector<16x256xf32>
      tpu.vector_store %arg9[%c0_11, %c0_12], %12 {strides = array<i32>} : memref<16x256xf32, #tpu.memory_space<vmem>>, vector<16x256xf32>,
    } else {
    }
    %c0 = arith.constant 0 : index
    %c0_1 = arith.constant 0 : index
    %3 = vector.load %arg9[%c0, %c0_1] : memref<16x256xf32, #tpu.memory_space<vmem>>, vector<16x256xf32>
    %c0_2 = arith.constant 0 : index
    %c0_3 = arith.constant 0 : index
    %4 = vector.load %arg2[%c0_2, %c0_3] : memref<16x256xbf16, #tpu.memory_space<vmem>>, vector<16x256xbf16>
    %c0_4 = arith.constant 0 : index
    %c0_5 = arith.constant 0 : index
    %5 = vector.load %arg3[%c0_4, %c0_5] : memref<256x256xbf16, #tpu.memory_space<vmem>>, vector<256x256xbf16>
    %cst = arith.constant dense<0.000000e+00> : vector<16x256xf32>
    %6 = tpu.matmul %4, %5, %cst {dimension_numbers = #tpu.dot_dimension_numbers<[1], [0], [0], [1], [0, 0, 1, 1], [], []>} : vector<16x256xbf16>, vector<256x256xbf16>, vector<16x256xf32> -> vector<16x256xf32>
    %7 = arith.addf %3, %6 : vector<16x256xf32>
    %c0_6 = arith.constant 0 : index
    %c0_7 = arith.constant 0 : index
    %8 = vector.load %arg9[%c0_6, %c0_7] : memref<16x256xf32, #tpu.memory_space<vmem>>, vector<16x256xf32>
    tpu.vector_store %arg9[%c0_6, %c0_7], %7 {strides = array<i32>} : memref<16x256xf32, #tpu.memory_space<vmem>>, vector<16x256xf32>,
    %c0_i32_8 = arith.constant 0 : i32
    %9 = arith.cmpi eq, %arg1, %c0_i32_8 : i32
    %10 = arith.extui %9 : i1 to i32
    %c0_i32_9 = arith.constant 0 : i32
    %11 = arith.cmpi ne, %10, %c0_i32_9 : i32
    scf.if %11 {
      %c0_10 = arith.constant 0 : index
      %c0_11 = arith.constant 0 : index
      %12 = vector.load %arg9[%c0_10, %c0_11] : memref<16x256xf32, #tpu.memory_space<vmem>>, vector<16x256xf32>
      %c0_12 = arith.constant 0 : index
      %c0_13 = arith.constant 0 : index
      %13 = vector.load %arg4[%c0_12, %c0_13] : memref<1x256xf32, #tpu.memory_space<vmem>>, vector<1x256xf32>
      %14 = vector.broadcast %13 : vector<1x256xf32> to vector<16x256xf32>
      %15 = arith.addf %12, %14 : vector<16x256xf32>
      %c0_14 = arith.constant 0 : index
      %c0_15 = arith.constant 0 : index
      %16 = vector.load %arg5[%c0_14, %c0_15] : memref<16x256xf32, #tpu.memory_space<vmem>>, vector<16x256xf32>
      %17 = arith.addf %15, %16 : vector<16x256xf32>
      %cst_16 = arith.constant dense<0.000000e+00> : vector<16xf32>
      %18 = vector.multi_reduction <add>, %17, %cst_16 [1] : vector<16x256xf32> to vector<16xf32>
      %19 = vector.shape_cast %18 : vector<16xf32> to vector<16x1xf32>
      %cst_17 = arith.constant 2.560000e+02 : f32
      %20 = vector.broadcast %cst_17 : f32 to vector<16x1xf32>
      %21 = arith.divf %19, %20 : vector<16x1xf32>
      %22 = vector.broadcast %21 : vector<16x1xf32> to vector<16x256xf32>
      %23 = arith.subf %17, %22 : vector<16x256xf32>
      %24 = arith.mulf %23, %23 : vector<16x256xf32>
      %cst_18 = arith.constant dense<0.000000e+00> : vector<16xf32>
      %25 = vector.multi_reduction <add>, %24, %cst_18 [1] : vector<16x256xf32> to vector<16xf32>
      %26 = vector.shape_cast %25 : vector<16xf32> to vector<16x1xf32>
      %cst_19 = arith.constant 2.560000e+02 : f32
      %27 = vector.broadcast %cst_19 : f32 to vector<16x1xf32>
      %28 = arith.divf %26, %27 : vector<16x1xf32>
      %29 = vector.broadcast %21 : vector<16x1xf32> to vector<16x256xf32>
      %30 = arith.subf %17, %29 : vector<16x256xf32>
      %cst_20 = arith.constant 9.99999997E-7 : f32
      %31 = vector.broadcast %cst_20 : f32 to vector<16x1xf32>
      %32 = arith.addf %28, %31 : vector<16x1xf32>
      %33 = math.rsqrt %32 : vector<16x1xf32>
      %34 = vector.broadcast %33 : vector<16x1xf32> to vector<16x256xf32>
      %35 = arith.mulf %30, %34 : vector<16x256xf32>
      %c0_21 = arith.constant 0 : index
      %c0_22 = arith.constant 0 : index
      %36 = vector.load %arg6[%c0_21, %c0_22] : memref<1x256xf32, #tpu.memory_space<vmem>>, vector<1x256xf32>
      %37 = vector.broadcast %36 : vector<1x256xf32> to vector<16x256xf32>
      %38 = arith.mulf %35, %37 : vector<16x256xf32>
      %c0_23 = arith.constant 0 : index
      %c0_24 = arith.constant 0 : index
      %39 = vector.load %arg7[%c0_23, %c0_24] : memref<1x256xf32, #tpu.memory_space<vmem>>, vector<1x256xf32>
      %40 = vector.broadcast %39 : vector<1x256xf32> to vector<16x256xf32>
      %41 = arith.addf %38, %40 : vector<16x256xf32>
      %c0_25 = arith.constant 0 : index
      %c0_26 = arith.constant 0 : index
      %42 = vector.load %arg8[%c0_25, %c0_26] : memref<16x256xf32, #tpu.memory_space<vmem>>, vector<16x256xf32>
      tpu.vector_store %arg8[%c0_25, %c0_26], %41 {strides = array<i32>} : memref<16x256xf32, #tpu.memory_space<vmem>>, vector<16x256xf32>,
    } else {
    }
    return
  }
  func.func @transform_0(%arg0: i32, %arg1: i32) -> (i32, i32) {
    %c0_i32 = arith.constant 0 : i32
    return %arg0, %arg1 : i32, i32
  }
  func.func @transform_1(%arg0: i32, %arg1: i32) -> (i32, i32) {
    %c0_i32 = arith.constant 0 : i32
    %c0_i32_0 = arith.constant 0 : i32
    return %arg1, %c0_i32 : i32, i32
  }
  func.func @transform_2(%arg0: i32, %arg1: i32) -> (i32, i32) {
    %c0_i32 = arith.constant 0 : i32
    %c0_i32_0 = arith.constant 0 : i32
    %c0_i32_1 = arith.constant 0 : i32
    return %c0_i32, %c0_i32_0 : i32, i32
  }
  func.func @transform_3(%arg0: i32, %arg1: i32) -> (i32, i32) {
    %c0_i32 = arith.constant 0 : i32
    %c0_i32_0 = arith.constant 0 : i32
    return %arg0, %c0_i32 : i32, i32
  }
  func.func @transform_4(%arg0: i32, %arg1: i32) -> (i32, i32) {
    %c0_i32 = arith.constant 0 : i32
    %c0_i32_0 = arith.constant 0 : i32
    %c0_i32_1 = arith.constant 0 : i32
    return %c0_i32, %c0_i32_0 : i32, i32
  }
  func.func @transform_5(%arg0: i32, %arg1: i32) -> (i32, i32) {
    %c0_i32 = arith.constant 0 : i32
    %c0_i32_0 = arith.constant 0 : i32
    %c0_i32_1 = arith.constant 0 : i32
    return %c0_i32, %c0_i32_0 : i32, i32
  }
  func.func @transform_6(%arg0: i32, %arg1: i32) -> (i32, i32) {
    %c0_i32 = arith.constant 0 : i32
    %c0_i32_0 = arith.constant 0 : i32
    return %arg0, %c0_i32 : i32, i32
  }
}

module attributes {stable_mosaic.version = 11 : i64} {
  func.func @ffn_res_ln_kernel(%arg0: i32, %arg1: i32, %arg2: memref<16x256xf32, #tpu.memory_space<vmem>>, %arg3: memref<256x512xbf16, #tpu.memory_space<vmem>>, %arg4: memref<1x512xf32, #tpu.memory_space<vmem>>, %arg5: memref<512x256xbf16, #tpu.memory_space<vmem>>, %arg6: memref<1x256xf32, #tpu.memory_space<vmem>>, %arg7: memref<1x256xf32, #tpu.memory_space<vmem>>, %arg8: memref<1x256xf32, #tpu.memory_space<vmem>>, %arg9: memref<16x256xf32, #tpu.memory_space<vmem>>, %arg10: memref<16x256xf32, #tpu.memory_space<vmem>>) attributes {dimension_semantics = [#tpu.dimension_semantics<parallel>, #tpu.dimension_semantics<arbitrary>], iteration_bounds = array<i64: 2, 1>, scalar_prefetch = 0 : i64, scratch_operands = 1 : i64, tpu.core_type = #tpu.core_type<tc>, window_params = [{transform_indices = @transform_0, window_bounds = array<i64: 16, 256>}, {transform_indices = @transform_1, window_bounds = array<i64: 256, 512>}, {transform_indices = @transform_2, window_bounds = array<i64: 1, 512>}, {transform_indices = @transform_3, window_bounds = array<i64: 512, 256>}, {pipeline_mode = #tpu.pipeline_mode<synchronous>, transform_indices = @transform_4, window_bounds = array<i64: 1, 256>}, {pipeline_mode = #tpu.pipeline_mode<synchronous>, transform_indices = @transform_5, window_bounds = array<i64: 1, 256>}, {pipeline_mode = #tpu.pipeline_mode<synchronous>, transform_indices = @transform_6, window_bounds = array<i64: 1, 256>}, {transform_indices = @transform_7, window_bounds = array<i64: 16, 256>}]} {
    %c0_i32 = arith.constant 0 : i32
    %0 = arith.cmpi eq, %arg1, %c0_i32 : i32
    %1 = arith.extui %0 : i1 to i32
    %c0_i32_0 = arith.constant 0 : i32
    %2 = arith.cmpi ne, %1, %c0_i32_0 : i32
    scf.if %2 {
      %cst_16 = arith.constant 0.000000e+00 : f32
      %21 = vector.broadcast %cst_16 : f32 to vector<16x256xf32>
      %c0_17 = arith.constant 0 : index
      %c0_18 = arith.constant 0 : index
      %22 = vector.load %arg10[%c0_17, %c0_18] : memref<16x256xf32, #tpu.memory_space<vmem>>, vector<16x256xf32>
      tpu.vector_store %arg10[%c0_17, %c0_18], %21 {strides = array<i32>} : memref<16x256xf32, #tpu.memory_space<vmem>>, vector<16x256xf32>,
    } else {
    }
    %c0 = arith.constant 0 : index
    %c0_1 = arith.constant 0 : index
    %3 = vector.load %arg2[%c0, %c0_1] : memref<16x256xf32, #tpu.memory_space<vmem>>, vector<16x256xf32>
    %4 = arith.truncf %3 : vector<16x256xf32> to vector<16x256xbf16>
    %c0_2 = arith.constant 0 : index
    %c0_3 = arith.constant 0 : index
    %5 = vector.load %arg3[%c0_2, %c0_3] : memref<256x512xbf16, #tpu.memory_space<vmem>>, vector<256x512xbf16>
    %cst = arith.constant dense<0.000000e+00> : vector<16x512xf32>
    %6 = tpu.matmul %4, %5, %cst {dimension_numbers = #tpu.dot_dimension_numbers<[1], [0], [0], [1], [0, 0, 1, 1], [], []>} : vector<16x256xbf16>, vector<256x512xbf16>, vector<16x512xf32> -> vector<16x512xf32>
    %c0_4 = arith.constant 0 : index
    %c0_5 = arith.constant 0 : index
    %7 = vector.load %arg4[%c0_4, %c0_5] : memref<1x512xf32, #tpu.memory_space<vmem>>, vector<1x512xf32>
    %8 = vector.broadcast %7 : vector<1x512xf32> to vector<16x512xf32>
    %9 = arith.addf %6, %8 : vector<16x512xf32>
    %cst_6 = arith.constant 0.000000e+00 : f32
    %10 = vector.broadcast %cst_6 : f32 to vector<16x512xf32>
    %11 = arith.maximumf %9, %10 : vector<16x512xf32>
    %c0_7 = arith.constant 0 : index
    %c0_8 = arith.constant 0 : index
    %12 = vector.load %arg10[%c0_7, %c0_8] : memref<16x256xf32, #tpu.memory_space<vmem>>, vector<16x256xf32>
    %13 = arith.truncf %11 : vector<16x512xf32> to vector<16x512xbf16>
    %c0_9 = arith.constant 0 : index
    %c0_10 = arith.constant 0 : index
    %14 = vector.load %arg5[%c0_9, %c0_10] : memref<512x256xbf16, #tpu.memory_space<vmem>>, vector<512x256xbf16>
    %cst_11 = arith.constant dense<0.000000e+00> : vector<16x256xf32>
    %15 = tpu.matmul %13, %14, %cst_11 {dimension_numbers = #tpu.dot_dimension_numbers<[1], [0], [0], [1], [0, 0, 1, 1], [], []>} : vector<16x512xbf16>, vector<512x256xbf16>, vector<16x256xf32> -> vector<16x256xf32>
    %16 = arith.addf %12, %15 : vector<16x256xf32>
    %c0_12 = arith.constant 0 : index
    %c0_13 = arith.constant 0 : index
    %17 = vector.load %arg10[%c0_12, %c0_13] : memref<16x256xf32, #tpu.memory_space<vmem>>, vector<16x256xf32>
    tpu.vector_store %arg10[%c0_12, %c0_13], %16 {strides = array<i32>} : memref<16x256xf32, #tpu.memory_space<vmem>>, vector<16x256xf32>,
    %c0_i32_14 = arith.constant 0 : i32
    %18 = arith.cmpi eq, %arg1, %c0_i32_14 : i32
    %19 = arith.extui %18 : i1 to i32
    %c0_i32_15 = arith.constant 0 : i32
    %20 = arith.cmpi ne, %19, %c0_i32_15 : i32
    scf.if %20 {
      %c0_16 = arith.constant 0 : index
      %c0_17 = arith.constant 0 : index
      %21 = vector.load %arg10[%c0_16, %c0_17] : memref<16x256xf32, #tpu.memory_space<vmem>>, vector<16x256xf32>
      %c0_18 = arith.constant 0 : index
      %c0_19 = arith.constant 0 : index
      %22 = vector.load %arg6[%c0_18, %c0_19] : memref<1x256xf32, #tpu.memory_space<vmem>>, vector<1x256xf32>
      %23 = vector.broadcast %22 : vector<1x256xf32> to vector<16x256xf32>
      %24 = arith.addf %21, %23 : vector<16x256xf32>
      %c0_20 = arith.constant 0 : index
      %c0_21 = arith.constant 0 : index
      %25 = vector.load %arg2[%c0_20, %c0_21] : memref<16x256xf32, #tpu.memory_space<vmem>>, vector<16x256xf32>
      %26 = arith.addf %24, %25 : vector<16x256xf32>
      %cst_22 = arith.constant dense<0.000000e+00> : vector<16xf32>
      %27 = vector.multi_reduction <add>, %26, %cst_22 [1] : vector<16x256xf32> to vector<16xf32>
      %28 = vector.shape_cast %27 : vector<16xf32> to vector<16x1xf32>
      %cst_23 = arith.constant 2.560000e+02 : f32
      %29 = vector.broadcast %cst_23 : f32 to vector<16x1xf32>
      %30 = arith.divf %28, %29 : vector<16x1xf32>
      %31 = vector.broadcast %30 : vector<16x1xf32> to vector<16x256xf32>
      %32 = arith.subf %26, %31 : vector<16x256xf32>
      %33 = arith.mulf %32, %32 : vector<16x256xf32>
      %cst_24 = arith.constant dense<0.000000e+00> : vector<16xf32>
      %34 = vector.multi_reduction <add>, %33, %cst_24 [1] : vector<16x256xf32> to vector<16xf32>
      %35 = vector.shape_cast %34 : vector<16xf32> to vector<16x1xf32>
      %cst_25 = arith.constant 2.560000e+02 : f32
      %36 = vector.broadcast %cst_25 : f32 to vector<16x1xf32>
      %37 = arith.divf %35, %36 : vector<16x1xf32>
      %38 = vector.broadcast %30 : vector<16x1xf32> to vector<16x256xf32>
      %39 = arith.subf %26, %38 : vector<16x256xf32>
      %cst_26 = arith.constant 9.99999997E-7 : f32
      %40 = vector.broadcast %cst_26 : f32 to vector<16x1xf32>
      %41 = arith.addf %37, %40 : vector<16x1xf32>
      %42 = math.rsqrt %41 : vector<16x1xf32>
      %43 = vector.broadcast %42 : vector<16x1xf32> to vector<16x256xf32>
      %44 = arith.mulf %39, %43 : vector<16x256xf32>
      %c0_27 = arith.constant 0 : index
      %c0_28 = arith.constant 0 : index
      %45 = vector.load %arg7[%c0_27, %c0_28] : memref<1x256xf32, #tpu.memory_space<vmem>>, vector<1x256xf32>
      %46 = vector.broadcast %45 : vector<1x256xf32> to vector<16x256xf32>
      %47 = arith.mulf %44, %46 : vector<16x256xf32>
      %c0_29 = arith.constant 0 : index
      %c0_30 = arith.constant 0 : index
      %48 = vector.load %arg8[%c0_29, %c0_30] : memref<1x256xf32, #tpu.memory_space<vmem>>, vector<1x256xf32>
      %49 = vector.broadcast %48 : vector<1x256xf32> to vector<16x256xf32>
      %50 = arith.addf %47, %49 : vector<16x256xf32>
      %c0_31 = arith.constant 0 : index
      %c0_32 = arith.constant 0 : index
      %51 = vector.load %arg9[%c0_31, %c0_32] : memref<16x256xf32, #tpu.memory_space<vmem>>, vector<16x256xf32>
      tpu.vector_store %arg9[%c0_31, %c0_32], %50 {strides = array<i32>} : memref<16x256xf32, #tpu.memory_space<vmem>>, vector<16x256xf32>,
    } else {
    }
    return
  }
  func.func @transform_0(%arg0: i32, %arg1: i32) -> (i32, i32) {
    %c0_i32 = arith.constant 0 : i32
    %c0_i32_0 = arith.constant 0 : i32
    return %arg0, %c0_i32 : i32, i32
  }
  func.func @transform_1(%arg0: i32, %arg1: i32) -> (i32, i32) {
    %c0_i32 = arith.constant 0 : i32
    %c0_i32_0 = arith.constant 0 : i32
    return %c0_i32, %arg1 : i32, i32
  }
  func.func @transform_2(%arg0: i32, %arg1: i32) -> (i32, i32) {
    %c0_i32 = arith.constant 0 : i32
    %c0_i32_0 = arith.constant 0 : i32
    return %c0_i32, %arg1 : i32, i32
  }
  func.func @transform_3(%arg0: i32, %arg1: i32) -> (i32, i32) {
    %c0_i32 = arith.constant 0 : i32
    %c0_i32_0 = arith.constant 0 : i32
    return %arg1, %c0_i32 : i32, i32
  }
  func.func @transform_4(%arg0: i32, %arg1: i32) -> (i32, i32) {
    %c0_i32 = arith.constant 0 : i32
    %c0_i32_0 = arith.constant 0 : i32
    %c0_i32_1 = arith.constant 0 : i32
    return %c0_i32, %c0_i32_0 : i32, i32
  }
  func.func @transform_5(%arg0: i32, %arg1: i32) -> (i32, i32) {
    %c0_i32 = arith.constant 0 : i32
    %c0_i32_0 = arith.constant 0 : i32
    %c0_i32_1 = arith.constant 0 : i32
    return %c0_i32, %c0_i32_0 : i32, i32
  }
  func.func @transform_6(%arg0: i32, %arg1: i32) -> (i32, i32) {
    %c0_i32 = arith.constant 0 : i32
    %c0_i32_0 = arith.constant 0 : i32
    %c0_i32_1 = arith.constant 0 : i32
    return %c0_i32, %c0_i32_0 : i32, i32
  }
  func.func @transform_7(%arg0: i32, %arg1: i32) -> (i32, i32) {
    %c0_i32 = arith.constant 0 : i32
    %c0_i32_0 = arith.constant 0 : i32
    return %arg0, %c0_i32 : i32, i32
  }
}

module attributes {stable_mosaic.version = 11 : i64} {
  func.func @ffn_res_ln_kernel(%arg0: i32, %arg1: i32, %arg2: memref<16x256xf32, #tpu.memory_space<vmem>>, %arg3: memref<256x512xbf16, #tpu.memory_space<vmem>>, %arg4: memref<1x512xf32, #tpu.memory_space<vmem>>, %arg5: memref<512x256xbf16, #tpu.memory_space<vmem>>, %arg6: memref<1x256xf32, #tpu.memory_space<vmem>>, %arg7: memref<1x256xf32, #tpu.memory_space<vmem>>, %arg8: memref<1x256xf32, #tpu.memory_space<vmem>>, %arg9: memref<16x256xf32, #tpu.memory_space<vmem>>, %arg10: memref<16x256xf32, #tpu.memory_space<vmem>>) attributes {dimension_semantics = [#tpu.dimension_semantics<parallel>, #tpu.dimension_semantics<arbitrary>], iteration_bounds = array<i64: 2, 1>, scalar_prefetch = 0 : i64, scratch_operands = 1 : i64, tpu.core_type = #tpu.core_type<tc>, window_params = [{transform_indices = @transform_0, window_bounds = array<i64: 16, 256>}, {transform_indices = @transform_1, window_bounds = array<i64: 256, 512>}, {transform_indices = @transform_2, window_bounds = array<i64: 1, 512>}, {transform_indices = @transform_3, window_bounds = array<i64: 512, 256>}, {pipeline_mode = #tpu.pipeline_mode<synchronous>, transform_indices = @transform_4, window_bounds = array<i64: 1, 256>}, {pipeline_mode = #tpu.pipeline_mode<synchronous>, transform_indices = @transform_5, window_bounds = array<i64: 1, 256>}, {pipeline_mode = #tpu.pipeline_mode<synchronous>, transform_indices = @transform_6, window_bounds = array<i64: 1, 256>}, {transform_indices = @transform_7, window_bounds = array<i64: 16, 256>}]} {
    %c0_i32 = arith.constant 0 : i32
    %0 = arith.cmpi eq, %arg1, %c0_i32 : i32
    %1 = arith.extui %0 : i1 to i32
    %c0_i32_0 = arith.constant 0 : i32
    %2 = arith.cmpi ne, %1, %c0_i32_0 : i32
    scf.if %2 {
      %cst_16 = arith.constant 0.000000e+00 : f32
      %21 = vector.broadcast %cst_16 : f32 to vector<16x256xf32>
      %c0_17 = arith.constant 0 : index
      %c0_18 = arith.constant 0 : index
      %22 = vector.load %arg10[%c0_17, %c0_18] : memref<16x256xf32, #tpu.memory_space<vmem>>, vector<16x256xf32>
      tpu.vector_store %arg10[%c0_17, %c0_18], %21 {strides = array<i32>} : memref<16x256xf32, #tpu.memory_space<vmem>>, vector<16x256xf32>,
    } else {
    }
    %c0 = arith.constant 0 : index
    %c0_1 = arith.constant 0 : index
    %3 = vector.load %arg2[%c0, %c0_1] : memref<16x256xf32, #tpu.memory_space<vmem>>, vector<16x256xf32>
    %4 = arith.truncf %3 : vector<16x256xf32> to vector<16x256xbf16>
    %c0_2 = arith.constant 0 : index
    %c0_3 = arith.constant 0 : index
    %5 = vector.load %arg3[%c0_2, %c0_3] : memref<256x512xbf16, #tpu.memory_space<vmem>>, vector<256x512xbf16>
    %cst = arith.constant dense<0.000000e+00> : vector<16x512xf32>
    %6 = tpu.matmul %4, %5, %cst {dimension_numbers = #tpu.dot_dimension_numbers<[1], [0], [0], [1], [0, 0, 1, 1], [], []>} : vector<16x256xbf16>, vector<256x512xbf16>, vector<16x512xf32> -> vector<16x512xf32>
    %c0_4 = arith.constant 0 : index
    %c0_5 = arith.constant 0 : index
    %7 = vector.load %arg4[%c0_4, %c0_5] : memref<1x512xf32, #tpu.memory_space<vmem>>, vector<1x512xf32>
    %8 = vector.broadcast %7 : vector<1x512xf32> to vector<16x512xf32>
    %9 = arith.addf %6, %8 : vector<16x512xf32>
    %cst_6 = arith.constant 0.000000e+00 : f32
    %10 = vector.broadcast %cst_6 : f32 to vector<16x512xf32>
    %11 = arith.maximumf %9, %10 : vector<16x512xf32>
    %c0_7 = arith.constant 0 : index
    %c0_8 = arith.constant 0 : index
    %12 = vector.load %arg10[%c0_7, %c0_8] : memref<16x256xf32, #tpu.memory_space<vmem>>, vector<16x256xf32>
    %13 = arith.truncf %11 : vector<16x512xf32> to vector<16x512xbf16>
    %c0_9 = arith.constant 0 : index
    %c0_10 = arith.constant 0 : index
    %14 = vector.load %arg5[%c0_9, %c0_10] : memref<512x256xbf16, #tpu.memory_space<vmem>>, vector<512x256xbf16>
    %cst_11 = arith.constant dense<0.000000e+00> : vector<16x256xf32>
    %15 = tpu.matmul %13, %14, %cst_11 {dimension_numbers = #tpu.dot_dimension_numbers<[1], [0], [0], [1], [0, 0, 1, 1], [], []>} : vector<16x512xbf16>, vector<512x256xbf16>, vector<16x256xf32> -> vector<16x256xf32>
    %16 = arith.addf %12, %15 : vector<16x256xf32>
    %c0_12 = arith.constant 0 : index
    %c0_13 = arith.constant 0 : index
    %17 = vector.load %arg10[%c0_12, %c0_13] : memref<16x256xf32, #tpu.memory_space<vmem>>, vector<16x256xf32>
    tpu.vector_store %arg10[%c0_12, %c0_13], %16 {strides = array<i32>} : memref<16x256xf32, #tpu.memory_space<vmem>>, vector<16x256xf32>,
    %c0_i32_14 = arith.constant 0 : i32
    %18 = arith.cmpi eq, %arg1, %c0_i32_14 : i32
    %19 = arith.extui %18 : i1 to i32
    %c0_i32_15 = arith.constant 0 : i32
    %20 = arith.cmpi ne, %19, %c0_i32_15 : i32
    scf.if %20 {
      %c0_16 = arith.constant 0 : index
      %c0_17 = arith.constant 0 : index
      %21 = vector.load %arg10[%c0_16, %c0_17] : memref<16x256xf32, #tpu.memory_space<vmem>>, vector<16x256xf32>
      %c0_18 = arith.constant 0 : index
      %c0_19 = arith.constant 0 : index
      %22 = vector.load %arg6[%c0_18, %c0_19] : memref<1x256xf32, #tpu.memory_space<vmem>>, vector<1x256xf32>
      %23 = vector.broadcast %22 : vector<1x256xf32> to vector<16x256xf32>
      %24 = arith.addf %21, %23 : vector<16x256xf32>
      %c0_20 = arith.constant 0 : index
      %c0_21 = arith.constant 0 : index
      %25 = vector.load %arg2[%c0_20, %c0_21] : memref<16x256xf32, #tpu.memory_space<vmem>>, vector<16x256xf32>
      %26 = arith.addf %24, %25 : vector<16x256xf32>
      %cst_22 = arith.constant dense<0.000000e+00> : vector<16xf32>
      %27 = vector.multi_reduction <add>, %26, %cst_22 [1] : vector<16x256xf32> to vector<16xf32>
      %28 = vector.shape_cast %27 : vector<16xf32> to vector<16x1xf32>
      %cst_23 = arith.constant 2.560000e+02 : f32
      %29 = vector.broadcast %cst_23 : f32 to vector<16x1xf32>
      %30 = arith.divf %28, %29 : vector<16x1xf32>
      %31 = vector.broadcast %30 : vector<16x1xf32> to vector<16x256xf32>
      %32 = arith.subf %26, %31 : vector<16x256xf32>
      %33 = arith.mulf %32, %32 : vector<16x256xf32>
      %cst_24 = arith.constant dense<0.000000e+00> : vector<16xf32>
      %34 = vector.multi_reduction <add>, %33, %cst_24 [1] : vector<16x256xf32> to vector<16xf32>
      %35 = vector.shape_cast %34 : vector<16xf32> to vector<16x1xf32>
      %cst_25 = arith.constant 2.560000e+02 : f32
      %36 = vector.broadcast %cst_25 : f32 to vector<16x1xf32>
      %37 = arith.divf %35, %36 : vector<16x1xf32>
      %38 = vector.broadcast %30 : vector<16x1xf32> to vector<16x256xf32>
      %39 = arith.subf %26, %38 : vector<16x256xf32>
      %cst_26 = arith.constant 9.99999997E-7 : f32
      %40 = vector.broadcast %cst_26 : f32 to vector<16x1xf32>
      %41 = arith.addf %37, %40 : vector<16x1xf32>
      %42 = math.rsqrt %41 : vector<16x1xf32>
      %43 = vector.broadcast %42 : vector<16x1xf32> to vector<16x256xf32>
      %44 = arith.mulf %39, %43 : vector<16x256xf32>
      %c0_27 = arith.constant 0 : index
      %c0_28 = arith.constant 0 : index
      %45 = vector.load %arg7[%c0_27, %c0_28] : memref<1x256xf32, #tpu.memory_space<vmem>>, vector<1x256xf32>
      %46 = vector.broadcast %45 : vector<1x256xf32> to vector<16x256xf32>
      %47 = arith.mulf %44, %46 : vector<16x256xf32>
      %c0_29 = arith.constant 0 : index
      %c0_30 = arith.constant 0 : index
      %48 = vector.load %arg8[%c0_29, %c0_30] : memref<1x256xf32, #tpu.memory_space<vmem>>, vector<1x256xf32>
      %49 = vector.broadcast %48 : vector<1x256xf32> to vector<16x256xf32>
      %50 = arith.addf %47, %49 : vector<16x256xf32>
      %c0_31 = arith.constant 0 : index
      %c0_32 = arith.constant 0 : index
      %51 = vector.load %arg9[%c0_31, %c0_32] : memref<16x256xf32, #tpu.memory_space<vmem>>, vector<16x256xf32>
      tpu.vector_store %arg9[%c0_31, %c0_32], %50 {strides = array<i32>} : memref<16x256xf32, #tpu.memory_space<vmem>>, vector<16x256xf32>,
    } else {
    }
    return
  }
  func.func @transform_0(%arg0: i32, %arg1: i32) -> (i32, i32) {
    %c0_i32 = arith.constant 0 : i32
    %c0_i32_0 = arith.constant 0 : i32
    return %arg0, %c0_i32 : i32, i32
  }
  func.func @transform_1(%arg0: i32, %arg1: i32) -> (i32, i32) {
    %c0_i32 = arith.constant 0 : i32
    %c0_i32_0 = arith.constant 0 : i32
    return %c0_i32, %arg1 : i32, i32
  }
  func.func @transform_2(%arg0: i32, %arg1: i32) -> (i32, i32) {
    %c0_i32 = arith.constant 0 : i32
    %c0_i32_0 = arith.constant 0 : i32
    return %c0_i32, %arg1 : i32, i32
  }
  func.func @transform_3(%arg0: i32, %arg1: i32) -> (i32, i32) {
    %c0_i32 = arith.constant 0 : i32
    %c0_i32_0 = arith.constant 0 : i32
    return %arg1, %c0_i32 : i32, i32
  }
  func.func @transform_4(%arg0: i32, %arg1: i32) -> (i32, i32) {
    %c0_i32 = arith.constant 0 : i32
    %c0_i32_0 = arith.constant 0 : i32
    %c0_i32_1 = arith.constant 0 : i32
    return %c0_i32, %c0_i32_0 : i32, i32
  }
  func.func @transform_5(%arg0: i32, %arg1: i32) -> (i32, i32) {
    %c0_i32 = arith.constant 0 : i32
    %c0_i32_0 = arith.constant 0 : i32
    %c0_i32_1 = arith.constant 0 : i32
    return %c0_i32, %c0_i32_0 : i32, i32
  }
  func.func @transform_6(%arg0: i32, %arg1: i32) -> (i32, i32) {
    %c0_i32 = arith.constant 0 : i32
    %c0_i32_0 = arith.constant 0 : i32
    %c0_i32_1 = arith.constant 0 : i32
    return %c0_i32, %c0_i32_0 : i32, i32
  }
  func.func @transform_7(%arg0: i32, %arg1: i32) -> (i32, i32) {
    %c0_i32 = arith.constant 0 : i32
    %c0_i32_0 = arith.constant 0 : i32
    return %arg0, %c0_i32 : i32, i32
  }
}

</mosaic_0001>

<bundles_post_ra>
// kernel: encoder_forward.9
= control target key start
LH: loop header
LB: loop body
LE: loop exit
PB: predicated region body
PF: predicated region fallthrough
CT: control target
= control target key end

     0   :  { %9 = vsyncpa [#allocation3], 0  ;;  %s619_s15 = smov 0   ;;  %s621_s16 = smov 0   ;;  %s700_s0 = inlined_call_operand.vmem [shape: f32[2,16,256], index: 0, kind: input, shape index: {}]   ;;  %s701_s1 = inlined_call_operand.vmem [shape: f32[16,256], index: 1, kind: input, shape index: {}]   ;;  %s702_s2 = inlined_call_operand.vmem [shape: f32[1,256], index: 2, kind: input, shape index: {}]   ;;  %s703_s3 = inlined_call_operand.hbm [shape: f32[1,256], index: 3, kind: input, shape index: {}]   ;;  %s704_s4 = inlined_call_operand.vmem [shape: f32[2,16,256], index: 4, kind: output, shape index: {}]  }
   0x1   :  { %s623_s17 = smov 0  }
   0x2 LB: > { %s484_s18 = sadd.s32 4294967295, %s591_s17   ;;  %s27_s19 = sadd.s32 1, %s587_s16  ;;  %s591_s17 = sphi %s623_s17, %s15_s17   ;;  %s587_s16 = sphi %s621_s16, %s708_s16   ;;  %s583_s15 = sphi %s619_s15, %s707_s15  }
   0x3   : > { %p29_p0 = scmp.ge.s32.totalorder %s27_s19, 2  ;;  %p486_p1 = scmp.ge.s32.totalorder %s591_s17, 1 }
   0x4   : > { %p156_p2 = scmp.lt.s32.totalorder %s591_s17, 3  ;;  %p644_p4 = scmp.eq.s32.totalorder %s484_s18, 0 }
   0x5   : > { %s710_s19 = smov (%p29_p0, %s27_s19), 0  ;;  %s593_s22 = smov [#allocation2]  }
   0x6   : > { %p640_p3 = pnand %p486_p1, %p156_p2  ;;  %s182_s23 = sshll.u32 %s593_s22, 4  ;;  %s183_s23 = int_to_ptr.vmem [resolvable:$true] %s182_s23 }
   0x7   : > { %s550_s24 = scalar_lea.vmem %s183_s23, 32  ;;  %p558_p11 = scmp.lt.s32.totalorder %s183_s23, %s183_s23 }
   0x8   : > { %p504_p5 = pneg %p640_p3  ;;  %p551_p8 = scmp.ne.s32.totalorder %s183_s23, %s550_s24 }
   0x9   : > { %p559_p12 = scmp.lt.s32.totalorder %s550_s24, %s550_s24 }
   0xa   : > { %p505_p6 = pnand %p644_p4, %p504_p5 }
   0xb   : > { %p560_p13 = por %p559_p12, %p558_p11 }
   0xc   : > { %p541_p7 = pneg %p505_p6 }
   0xe   : > { %p553_p9 = pnand %p551_p8, %p541_p7 }
  0x10   : > { %p554_p10 = pneg %p553_p9 }
  0x12   : > { %p561_p0 = pnand %p560_p13, %p554_p10 }
  0x14   : > { %564 = shalt.err (!%p561_p0)
}
  0x15   : > { %507 = dma.hbm_to_vmem [thread:$0]  (!%p505_p6), %s703_s3, 32, %s183_s23, [#allocation3]  }
  0x16   : > { %209 = sbr.rel (%p640_p3) target bundleno = 351 (0x15f), region = 36 }
  0x1b   : > { %578 = dma.done.wait (%p644_p4), [#allocation3], 32  }
  0x1c   : > { %580 = vsyncadd (%p644_p4), [#allocation3], 4294967264  ;;  %p252_p1 = scmp.lt.s32.totalorder %s583_s15, 1  ;;  %v284_v2 = vld [vmem:[%s701_s1] sm:$0xff]  ;;  %v285_v3 = vld [vmem:[%s701_s1 + $0x8] sm:$0xff]  ;;  %v327_v32 = vlaneseq }
  0x1d   : > { %v286_v8 = vld [vmem:[%s701_s1 + $0x10] sm:$0xff]  ;;  %v287_v9 = vld [vmem:[%s701_s1 + $0x18] sm:$0xff]  ;;  %v325_v38 = vld [vmem:[%s702_s2] sm:$0x3] }
  0x1e   : > { %s712_s15 = smov (!%p252_p1, %s583_s15), 1  ;;  %v328_v35 = vshrl.u32 %v327_v32, 7  ;;  %v341_v39 = vld [vmem:[#allocation2] sm:$0x3] }
  0x1f   : > { %s498_s27 = sshll.u32 %s712_s15, 5 }
  0x20   : > { %s260_s30 = scalar_lea.vmem %s700_s0, %s498_s27  ;;  %v329_v36 = vsub.s32 0, %v328_v35  ;;  %v333_v37 = vsub.s32 1, %v328_v35  ;;  %s278_s21 = scalar_lea.vmem %s704_s4, %s498_s27 }
  0x21   : > { %v280_v0 = vld [vmem:[%s260_s30] sm:$0xff]  ;;  %v281_v1 = vld [vmem:[%s260_s30 + $0x8] sm:$0xff]  ;;  %v282_v5 = vld [vmem:[%s260_s30 + $0x10] sm:$0xff] }
  0x22   : > { %v288_v4 = vadd.f32 %v284_v2, %v280_v0  ;;  %v283_v6 = vld [vmem:[%s260_s30 + $0x18] sm:$0xff]  ;;  %v289_v7 = vadd.f32 %v285_v3, %v281_v1  ;;  %v290_v10 = vadd.f32 %v286_v8, %v282_v5  ;;  %v330_v40 = vrot.slane %v325_v38, %v329_v36 }
  0x23   : > { %v291_v11 = vadd.f32 %v287_v9, %v283_v6  ;;  %v334_v41 = vrot.slane %v325_v38, %v333_v37  ;;  %v346_v43 = vrot.slane %v341_v39, %v329_v36  ;;  %v350_v44 = vrot.slane %v341_v39, %v333_v37 }
  0x24   : > { %v292_v12 = vadd.f32 %v289_v7, %v288_v4 }
  0x25   : > { %v295_v13 = vadd.f32 %v291_v11, %v290_v10 }
  0x26   : > { %293 = vadd.xlane.f32.xlu0 %v292_v12 }
  0x2a   : > { %296 = vadd.xlane.f32.xlu0 %v295_v13 }
  0xaf   : > { %v294_v14 = vpop.xlane.xlu0 %293 }
  0xb0   : > { %v299_v15 = vmul.f32 0.00390625, %v294_v14 }
  0xb2   : > { %v301_v16 = vsub.f32 %v288_v4, %v299_v15  ;;  %v302_v17 = vsub.f32 %v289_v7, %v299_v15 }
  0xb3   : > { %v297_v18 = vpop.xlane.xlu0 %296 }
  0xb4   : > { %v300_v19 = vmul.f32 0.00390625, %v297_v18  ;;  %v305_v20 = vmul.f32 %v301_v16, %v301_v16  ;;  %v306_v21 = vmul.f32 %v302_v17, %v302_v17 }
  0xb6   : > { %v303_v22 = vsub.f32 %v290_v10, %v300_v19  ;;  %v304_v23 = vsub.f32 %v291_v11, %v300_v19  ;;  %v309_v24 = vadd.f32 %v306_v21, %v305_v20 }
  0xb8   : > { %310 = vadd.xlane.f32.xlu1 %v309_v24  ;;  %v307_v25 = vmul.f32 %v303_v22, %v303_v22  ;;  %v308_v26 = vmul.f32 %v304_v23, %v304_v23 }
  0xba   : > { %v312_v27 = vadd.f32 %v308_v26, %v307_v25 }
  0xbc   : > { %313 = vadd.xlane.f32.xlu1 %v312_v27 }
 0x141   : > { %v311_v28 = vpop.xlane.xlu1 %310 }
 0x142   : > { %v315_v29 = vmul.f32 0.00390625, %v311_v28 }
 0x144   : > { %v317_v30 = vadd.f32 1e-06, %v315_v29 }
 0x145   : > { %v314_v31 = vpop.xlane.xlu1 %313 }
 0x146   : > { %535 = vrsqrt.f32 %v317_v30  ;;  %v316_v33 = vmul.f32 0.00390625, %v314_v31 }
 0x148   : > { %v318_v34 = vadd.f32 1e-06, %v316_v33 }
 0x14a   : > { %537 = vrsqrt.f32 %v318_v34 }
 0x153   : > { %v536_v42 = vpop.eup %535 }
 0x154   : > { %v321_v45 = vmul.f32 %v536_v42, %v301_v16  ;;  %v322_v46 = vmul.f32 %v536_v42, %v302_v17 }
 0x156   : > { %v337_v47 = vmul.f32 %v330_v40, %v321_v45  ;;  %v338_v48 = vmul.f32 %v334_v41, %v322_v46 }
 0x157   : > { %v538_v49 = vpop.eup %537 }
 0x158   : > { %v353_v50 = vadd.f32 %v346_v43, %v337_v47  ;;  %v354_v51 = vadd.f32 %v350_v44, %v338_v48  ;;  %v323_v52 = vmul.f32 %v538_v49, %v303_v22  ;;  %v324_v53 = vmul.f32 %v538_v49, %v304_v23 }
 0x15a   : > { %357 = vst [vmem:[%s278_s21] sm:$0xff] %v353_v50  ;;  %358 = vst [vmem:[%s278_s21 + $0x8] sm:$0xff] %v354_v51  ;;  %v339_v54 = vmul.f32 %v330_v40, %v323_v52  ;;  %v340_v55 = vmul.f32 %v334_v41, %v324_v53 }
 0x15c   : > { %v355_v56 = vadd.f32 %v346_v43, %v339_v54  ;;  %v356_v57 = vadd.f32 %v350_v44, %v340_v55 }
 0x15e   : > { %359 = vst [vmem:[%s278_s21 + $0x10] sm:$0xff] %v355_v56  ;;  %360 = vst [vmem:[%s278_s21 + $0x18] sm:$0xff] %v356_v57 }
 0x15f PF: > { %s15_s17 = sadd.s32 1, %s591_s17   ;;  %s707_s15 = smov %s587_s16 }
 0x160   : > { %p12_p2 = scmp.ge.s32.totalorder %s15_s17, 4   ;;  %s708_s16 = smov %s710_s19 }
 0x162   :  { %14 = sbr.rel (!%p12_p2) target bundleno = 2 (0x2), region = 74 }
 0x167   :  { %393 = vsyncpa [#allocation3], 1 }
 0x168   :  { %395 = vsyncpa [#allocation3 + $0x1], 1 }

// kernel: encoder_forward.11
= control target key start
LH: loop header
LB: loop body
LE: loop exit
PB: predicated region body
PF: predicated region fallthrough
CT: control target
= control target key end

     0   :  { %s1231_s0 = inlined_call_operand.vmem [shape: bf16[2,16,768], index: 0, kind: input, shape index: {}, may-alias: {0,1,2}]   ;;  %s1232_s1 = inlined_call_operand.vmem [shape: bf16[2,16,768], index: 1, kind: input, shape index: {}, may-alias: {0,1,2}]   ;;  %s1233_s2 = inlined_call_operand.vmem [shape: bf16[2,16,768], index: 2, kind: input, shape index: {}, may-alias: {0,1,2}]   ;;  %s1234_s3 = inlined_call_operand.vmem [shape: f32[2,1,16], index: 3, kind: input, shape index: {}]   ;;  %s1235_s4 = inlined_call_operand.vmem [shape: bf16[2,16,256], index: 4, kind: output, shape index: {}]  }
   0x1   :  { %1238 = sst [smem:[#allocation10_spill]] %s1235_s4 }
   0x2   :  { %s1027_s15 = smov 0   ;;  %s1029_s16 = smov 0  }
   0x3   :  { %s1031_s17 = smov 0   ;;  %s1033_s18 = smov 0  }
   0x4   :  { %s1035_s19 = smov 0   ;;  %s1037_s20 = smov 0  }
   0x5   :  { %s1039_s21 = smov 0   ;;  %s1041_s22 = smov 0  }
   0x6   :  { %s1043_s23 = smov 0   ;;  %s1045_s24 = smov 0  }
   0x7   :  { %s1047_s25 = smov 0  }
   0x8 LB: > { %1239 = sst [smem:[#allocation6_spill]] %s981_s21  ;;  %s23_s27 = sadd.s32 1, %s989_s23  ;;  %s997_s25 = sphi %s1047_s25, %s14_s25   ;;  %s993_s24 = sphi %s1045_s24, %s1262_s24   ;;  %s989_s23 = sphi %s1043_s23, %s1261_s23   ;;  %s985_s22 = sphi %s1041_s22, %s1260_s22   ;;  %s981_s21 = sphi %s1039_s21, %s1259_s21   ;;  %s977_s20 = sphi %s1037_s20, %s1258_s20   ;;  %s973_s19 = sphi %s1035_s19, %s1257_s19   ;;  %s969_s18 = sphi %s1033_s18, %s1256_s18   ;;  %s965_s17 = sphi %s1031_s17, %s1255_s17   ;;  %s961_s16 = sphi %s1029_s16, %s1254_s16   ;;  %s957_s15 = sphi %s1027_s15, %s1253_s15  }
   0x9   : > { %p24_p0 = scmp.ge.s32.totalorder %s23_s27, 2  ;;  %s26_s28 = sadd.s32 1, %s993_s24 }
   0xa   : > { %s35_s29 = sadd.s32 1, %s977_s20  ;;  %p42_p1 = scmp.ne.s32.totalorder %s977_s20, %s973_s19 }
   0xb   : > { %s1264_s27 = smov (%p24_p0, %s23_s27), 0  ;;  %s1266_s28 = smov (!%p24_p0, %s26_s28), %s993_s24 }
   0xc   : > { %1240 = sst [smem:[#allocation7_spill]] %s1264_s27  ;;  %s31_s30 = ssub.s32 %s989_s23, %s1264_s27 }
   0xd   : > { %p43_p2 = scmp.eq.s32.totalorder %s997_s25, 0  ;;  %p28_p3 = scmp.ge.s32.totalorder %s1266_s28, 2 }
   0xe   : > { %s58_s5 = sadd.s32 2, %s989_s23  ;;  %s59_s7 = sadd.s32 2, %s1264_s27 }
   0xf   : > { %p1100_p4 = por %p43_p2, %p42_p1  ;;  %s1268_s28 = smov (%p28_p3, %s1266_s28), 0 }
  0x10   : > { %1242 = sst [smem:[#allocation8_spill]] %s1268_s28  ;;  %s61_s8 = ssub.s32 %s58_s5, %s59_s7 }
  0x11   : > { %s65_s9 = sadd.s32 1, %s969_s18  ;;  %s30_s10 = ssub.s32 %s993_s24, %s1268_s28 }
  0x12   : > { %p72_p5 = scmp.ne.s32.totalorder %s969_s18, %s965_s17  ;;  %s32_s11 = sor.u32 %s31_s30, %s30_s10 }
  0x13   : > { %s62_s12 = sor.u32 %s61_s8, %s30_s10  ;;  %p33_p6 = scmp.eq.s32.totalorder %s32_s11, 0 }
  0x14   : > { %p63_p7 = scmp.eq.s32.totalorder %s62_s12, 0  ;;  %p1114_p8 = por %p72_p5, %p43_p2 }
  0x15   : > { %s88_s14 = sadd.s32 4, %s989_s23  ;;  %s89_s7 = sadd.s32 4, %s1264_s27 }
  0x16   : > { %s1120_s26 = scalar_select %p33_p6, %s977_s20, %s35_s29  }
  0x17   : > { %s1123_s5 = scalar_select %p63_p7, %s969_s18, %s65_s9  }
  0x18   : > { %1244 = sst [smem:[#allocation9_spill]] %s1120_s26  ;;  %s95_s28 = sadd.s32 1, %s961_s16 }
  0x19   : > { %s91_s4 = ssub.s32 %s88_s14, %s89_s7  ;;  %p102_p9 = scmp.ne.s32.totalorder %s961_s16, %s957_s15 }
  0x1a   : > { %s92_s30 = sor.u32 %s91_s4, %s30_s10  ;;  %s1245_s21 = sadd.s32 4294967295, %s997_s25  }
  0x1b   : > { %p160_p10 = scmp.eq.s32.totalorder %s1245_s21, 3  ;;  %p93_p11 = scmp.eq.s32.totalorder %s92_s30, 0 }
  0x1c   : > { %p1133_p12 = por %p102_p9, %p43_p2  ;;  %p756_p0 = scmp.ge.s32.totalorder %s997_s25, 4 }
  0x1d   : > { %p1140_p13 = por %p160_p10, %p42_p1 }
  0x1e   : > { %s1145_s29 = scalar_select %p93_p11, %s961_s16, %s95_s28  }
  0x1f   : > { %182 = sbr.rel (%p756_p0) target bundleno = 60 (0x3c), region = 16 }
  0x24   : > { %185 = sbr.rel (!%p1100_p4) target bundleno = 44 (0x2c), region = 20  ;;  %s187_s4 = sand.u32 (%p1100_p4), 1, %s977_s20  }
  0x25   : > { %s809_s21 = smul.u32 (%p1100_p4), 12, %s993_s24  ;;  %s757_s9 = sshll.u32 (%p1100_p4), %s187_s4, 3 }
  0x26   : > { %s189_s28 = scalar_lea.vmem (%p1100_p4), [#allocation2], %s757_s9 }
  0x27   : > { %s191_s10 = sadd.s32 (%p1100_p4), %s989_s23, %s809_s21 }
  0x28   : > { %s758_s12 = sshll.u32 (%p1100_p4), %s191_s10, 2 }
  0x29   : > { %s193_s30 = scalar_lea.vmem %s1231_s0, %s758_s12 }
  0x2a   : > { %v210_v0 = vld [vmem:[%s193_s30] sm:$0xf]  ;;  %v212_v1 = vld [vmem:[%s193_s30 + $0x18] sm:$0xf] }
  0x2b   : > { %211 = vst [vmem:[%s189_s28] sm:$0xf] %v210_v0  ;;  %213 = vst [vmem:[%s189_s28 + $0x4] sm:$0xf] %v212_v1 }
  0x2c PF: > { %241 = sbr.rel (!%p1114_p8) target bundleno = 52 (0x34), region = 61  ;;  %s243_s6 = sand.u32 (%p1114_p8), 1, %s969_s18  }
  0x2d   : > { %s650_s4 = smul.u32 (%p1114_p8), 12, %s993_s24  ;;  %s759_s21 = sshll.u32 (%p1114_p8), %s243_s6, 3 }
  0x2e   : > { %s245_s9 = scalar_lea.vmem (%p1114_p8), [#allocation3], %s759_s21 }
  0x2f   : > { %s651_s10 = sadd.s32 (%p1114_p8), %s989_s23, %s650_s4 }
  0x30   : > { %s760_s27 = sshll.u32 (%p1114_p8), %s651_s10, 2 }
  0x31   : > { %s653_s12 = scalar_lea.vmem %s1232_s1, %s760_s27 }
  0x32   : > { %v761_v2 = vld [vmem:[%s653_s12 + $0x8] sm:$0xf]  ;;  %v762_v3 = vld [vmem:[%s653_s12 + $0x20] sm:$0xf] }
  0x33   : > { %268 = vst [vmem:[%s245_s9] sm:$0xf] %v761_v2  ;;  %270 = vst [vmem:[%s245_s9 + $0x4] sm:$0xf] %v762_v3 }
  0x34 PF: > { %298 = sbr.rel (!%p1133_p12) target bundleno = 60 (0x3c), region = 102  ;;  %s300_s13 = sand.u32 (%p1133_p12), 1, %s961_s16  }
  0x35   : > { %s657_s7 = smul.u32 (%p1133_p12), 12, %s993_s24  ;;  %s763_s30 = sshll.u32 (%p1133_p12), %s300_s13, 3 }
  0x36   : > { %s302_s21 = scalar_lea.vmem (%p1133_p12), [#allocation4], %s763_s30 }
  0x37   : > { %s658_s28 = sadd.s32 (%p1133_p12), %s989_s23, %s657_s7 }
  0x38   : > { %s764_s6 = sshll.u32 (%p1133_p12), %s658_s28, 2 }
  0x39   : > { %s660_s27 = scalar_lea.vmem %s1233_s2, %s764_s6 }
  0x3a   : > { %v765_v4 = vld [vmem:[%s660_s27 + $0x10] sm:$0xf]  ;;  %v766_v5 = vld [vmem:[%s660_s27 + $0x28] sm:$0xf] }
  0x3b   : > { %325 = vst [vmem:[%s302_s21] sm:$0xf] %v765_v4  ;;  %327 = vst [vmem:[%s302_s21 + $0x4] sm:$0xf] %v766_v5 }
  0x3c PF: > { %p767_p1 = scmp.ge.s32.totalorder %s997_s25, 1  ;;  %p360_p2 = scmp.lt.s32.totalorder %s997_s25, 5 }
  0x3e   : > { %p361_p3 = pnand %p767_p1, %p360_p2 }
  0x3f   : > { %s374_s8 = sand.u32 (!%p361_p3), 1, %s965_s17   ;;  %s367_s10 = sand.u32 (!%p361_p3), 1, %s973_s19  }
  0x40   : > { %364 = sbr.rel (%p361_p3) target bundleno = 799 (0x31f), region = 147  ;;  %s769_s14 = sshll.u32 (!%p361_p3), %s374_s8, 3 }
  0x41   : > { %s1176_s12 = sshll.u32 (!%p361_p3), %s367_s10, 3  ;;  %s376_s9 = scalar_lea.vmem (!%p361_p3), [#allocation3], %s769_s14 }
  0x42   : > { %s369_s13 = scalar_lea.vmem (!%p361_p3), [#allocation2], %s1176_s12  ;;  %p418_p4 = scmp.lt.s32.totalorder (!%p361_p3), %s985_s22, 1 }
  0x43   : > { %s381_s28 = sand.u32 (!%p361_p3), 1, %s957_s15   ;;  %s415_s15 = scalar_lea.vmem (!%p361_p3), [#allocation5], %s1176_s12 }
  0x44   : > { %s770_s6 = sshll.u32 (!%p361_p3), %s381_s28, 3 }
  0x45   : > { %v999_v6 = vmov 0.0   ;;  %vm1000_vm0 = vmmov 0   ;;  %v901_v7 = vld [vmem:[%s376_s9] sm:$0xff]   ;;  %v785_v8 = vld [vmem:[%s369_s13] sm:$0xff]   ;;  %s419_s17 = scalar_select %p418_p4, %s985_s22, 1  ;;  %v483_v14 = vlaneseq  ;;  %v1001_v18 = vmov 0  }
  0x46   : > { %797 = vmatprep.subr.bf16.mxu0 %v999_v6  ;;  %799 = vmatprep.mubr.msk.bf16.mxu0 %vm1000_vm0, %v999_v6  ;;  %v786_v9 = vunpack.c.l.bf16 %v785_v8  ;;  %v787_v10 = vunpack.c.h.bf16 %v785_v8  ;;  %vm490_vm3 = vcmask 130048   ;;  %s383_s4 = scalar_lea.vmem [#allocation4], %s770_s6  ;;  %s1248_s26 = sld [smem:[#allocation6_spill]] (%p1140_p13) }
  0x47   : > { %803 = vmatprep.subr.bf16.mxu1 %v999_v6  ;;  %805 = vmatprep.mubr.msk.bf16.mxu1 %vm1000_vm0, %v999_v6  ;;  %s420_s30 = scalar_lea.vmem %s1234_s3, %s419_s17  ;;  %v484_v16 = vshrl.u32 %v483_v14, 7  ;;  %v902_v39 = vld [vmem:[%s383_s4] sm:$0xff]   ;;  %s778_s27 = sshll.u32 (%p1140_p13), %s985_s22, 2 }
  0x48   : > { %798 = vmatpush3.bf16.xpose.msra.mxu0 %v901_v7  ;;  %v426_v11 = vmul.f32 0.088388346, %v786_v9  ;;  %v427_v12 = vmul.f32 0.088388346, %v787_v10  ;;  %v433_v15 = vld [vmem:[%s420_s30] sm:$0x1]  ;;  %804 = vmatpush3.bf16.msra.mxu1 %v902_v39 }
  0x49   : > { %vm481_vm1 = vcmp.gt.f32.partialorder %v433_v15, 0.0  ;;  %v485_v17 = vsub.s32 0, %v484_v16  ;;  %s1249_s9 = sld [smem:[#allocation10_spill]] (%p1140_p13) }
  0x4a   : > { %v428_v13 = vpack.c.bf16 %v427_v12, %v426_v11  ;;  %v482_v19 = vsel %vm481_vm1, 1, %v1001_v18 }
  0x4b   : > { %v486_v20 = vrot.slane %v482_v19, %v485_v17 }
  0x4c   : > { %s582_s21 = sadd.s32 (%p1140_p13), %s1248_s26, %s778_s27 }
  0x4d   : > { %vm487_vm2 = vcmp.eq.s32.totalorder %v486_v20, 1  ;;  %s779_s8 = sshll.u32 (%p1140_p13), %s582_s21, 2 }
  0x4f   : > { %800 = vmatmul.mubr.bf16.vlgmr.msra.gmra.mxu0 %v428_v13  ;;  %s584_s13 = scalar_lea.vmem (%p1140_p13), %s1249_s9, %s779_s8 }
 0x10f   : > { %v474_v21 = vpop.f32.mrf.mxu0 }
 0x110   : > { %v488_v22 = vsel %vm487_vm2, %v474_v21, -1e+09 }
 0x111   : > { %v801_v23 = vpop.f32.mrf.mxu0  ;;  %v491_v24 = vsel %vm490_vm3, %v488_v22, -inf }
 0x112   : > { %492 = vmax.xlane.f32.xlu0 %v491_v24 }
 0x113   : > { %v477_v25 = vpop.f32.mrf.mxu0 }
 0x114   : > { %v489_v26 = vsel %vm487_vm2, %v477_v25, -1e+09 }
 0x115   : > { %v802_v27 = vpop.f32.mrf.mxu0  ;;  %v494_v28 = vsel %vm490_vm3, %v489_v26, -inf }
 0x116   : > { %495 = vmax.xlane.f32.xlu0 %v494_v28 }
 0x19b   : > { %v493_v29 = vpop.xlane.xlu0 %492 }
 0x19c   : > { %v497_v30 = vsub.f32 %v488_v22, %v493_v29 }
 0x19e   : > { %v499_v31 = vmul.f32 1.442695, %v497_v30 }
 0x19f   : > { %v496_v32 = vpop.xlane.xlu0 %495 }
 0x1a0   : > { %903 = vpow2.f32 %v499_v31  ;;  %v498_v33 = vsub.f32 %v489_v26, %v496_v32 }
 0x1a2   : > { %v501_v34 = vmul.f32 1.442695, %v498_v33 }
 0x1a4   : > { %905 = vpow2.f32 %v501_v34 }
 0x1ad   : > { %v904_v35 = vpop.eup %903 }
 0x1ae   : > { %v503_v36 = vsel %vm490_vm3, %v904_v35, 0.0 }
 0x1af   : > { %504 = vadd.xlane.f32.xlu1 %v503_v36 }
 0x1b1   : > { %v906_v37 = vpop.eup %905 }
 0x1b2   : > { %v506_v38 = vsel %vm490_vm3, %v906_v37, 0.0 }
 0x1b3   : > { %507 = vadd.xlane.f32.xlu1 %v506_v38 }
 0x238   : > { %v505_v40 = vpop.xlane.xlu1 %504 }
 0x239   : > { %907 = vrcp.f32 %v505_v40 }
 0x23c   : > { %v508_v41 = vpop.xlane.xlu1 %507 }
 0x23d   : > { %909 = vrcp.f32 %v508_v41 }
 0x246   : > { %v908_v42 = vpop.eup %907 }
 0x247   : > { %v511_v44 = vmul.f32 %v908_v42, %v904_v35 }
 0x24a   : > { %v910_v43 = vpop.eup %909 }
 0x24b   : > { %v512_v45 = vmul.f32 %v910_v43, %v906_v37 }
 0x24d   : > { %v513_v46 = vpack.c.bf16 %v512_v45, %v511_v44 }
 0x24f   : > { %806 = vmatmul.mubr.msk.bf16.vlgmr.msra.gmra.mxu1 %vm490_vm3, %v513_v46 }
 0x30f   : > { %v557_v47 = vpop.f32.mrf.mxu1 }
 0x311   : > { %v807_v48 = vpop.f32.mrf.mxu1 }
 0x312   : > { %580 = sbr.rel (!%p1140_p13) target bundleno = 799 (0x31f), region = 163 }
 0x313   : > { %v560_v49 = vpop.f32.mrf.mxu1 }
 0x314   : > { %v791_v50 = vpack.c.bf16 %v560_v49, %v557_v47 }
 0x315   : > { %v808_v51 = vpop.f32.mrf.mxu1 }
 0x316   : > { %792 = vst [vmem:[%s415_s15] sm:$0xff] %v791_v50  }
 0x31d   : > { %v601_v52 = vld [vmem:[%s415_s15] sm:$0xf]  ;;  %v603_v53 = vld [vmem:[%s415_s15 + $0x4] sm:$0xf] }
 0x31e   : > { %602 = vst [vmem:[%s584_s13] sm:$0xf] %v601_v52  ;;  %604 = vst [vmem:[%s584_s13 + $0x8] sm:$0xf] %v603_v53 }
 0x31f PF: > { %s14_s25 = sadd.s32 1, %s997_s25   ;;  %s1250_s22 = sld [smem:[#allocation9_spill]] }
 0x320   : > { %p11_p5 = scmp.ge.s32.totalorder %s14_s25, 6   ;;  %s1251_s11 = sld [smem:[#allocation7_spill]] }
 0x321   : > { %s1252_s12 = sld [smem:[#allocation8_spill]]  ;;  %s1253_s15 = smov %s961_s16 }
 0x322   : > { %s1254_s16 = smov %s1145_s29  ;;  %s1255_s17 = smov %s969_s18 }
 0x323   : > { %s1256_s18 = smov %s1123_s5  ;;  %s1257_s19 = smov %s977_s20 }
 0x324   : > { %s1259_s21 = smov %s989_s23  ;;  %13 = sbr.rel (!%p11_p5) target bundleno = 8 (0x8), region = 254 }
 0x325   : > { %s1258_s20 = smov %s1250_s22  ;;  %s1260_s22 = smov %s993_s24 }
 0x326   : > { %s1261_s23 = smov %s1251_s11 }
 0x327   : > { %s1262_s24 = smov %s1252_s12 }

// kernel: encoder_forward.12
= control target key start
LH: loop header
LB: loop body
LE: loop exit
PB: predicated region body
PF: predicated region fallthrough
CT: control target
= control target key end

     0   :  { %s997_s21 = smov 0   ;;  %s999_s22 = smov 0   ;;  %s1150_s0 = inlined_call_operand.vmem [shape: bf16[32,256], index: 0, kind: input, shape index: {}]   ;;  %s1151_s1 = inlined_call_operand.vmem [shape: bf16[256,256], index: 1, kind: input, shape index: {}]   ;;  %s1152_s2 = inlined_call_operand.vmem [shape: f32[1,256], index: 2, kind: input, shape index: {}]   ;;  %s1153_s3 = inlined_call_operand.vmem [shape: f32[32,256], index: 3, kind: input, shape index: {}]   ;;  %s1154_s4 = inlined_call_operand.vmem [shape: f32[1,256], index: 4, kind: input, shape index: {}]   ;;  %s1155_s5 = inlined_call_operand.vmem [shape: f32[1,256], index: 5, kind: input, shape index: {}]   ;;  %s1156_s6 = inlined_call_operand.vmem [shape: f32[32,256], index: 6, kind: output, shape index: {}]  }
   0x1   :  { %s1001_s23 = smov 0  }
   0x2 LB: > { %s28_s24 = sadd.s32 1, %s956_s22  ;;  %p810_p0 = scmp.ge.s32.totalorder %s960_s23, 1  ;;  %s960_s23 = sphi %s1001_s23, %s16_s23   ;;  %s956_s22 = sphi %s999_s22, %s1158_s22   ;;  %s952_s21 = sphi %s997_s21, %s1157_s21  }
   0x3   : > { %p30_p1 = scmp.ge.s32.totalorder %s28_s24, 2  ;;  %p257_p2 = scmp.lt.s32.totalorder %s960_s23, 3 }
   0x5   : > { %s1160_s24 = smov (%p30_p1, %s28_s24), 0  ;;  %p258_p3 = pnand %p810_p0, %p257_p2 }
   0x6   : > { %s811_s11 = sshll.u32 (!%p258_p3), %s952_s21, 1 }
   0x7   : > { %261 = sbr.rel (%p258_p3) target bundleno = 591 (0x24f), region = 44  ;;  %p307_p4 = scmp.lt.s32.totalorder (!%p258_p3), %s811_s11, 3 }
   0xc   : > { %v883_v0 = vld [vmem:[%s1151_s1 + $0x74] ss:$8 sps:$4 sm:$0xff]   ;;  %v885_v1 = vld [vmem:[%s1151_s1 + $0x70] ss:$8 sps:$4 sm:$0xff]   ;;  %v886_v2 = vld [vmem:[%s1151_s1 + $0x64] ss:$8 sps:$4 sm:$0xff]   ;;  %v614_v34 = vlaneseq }
   0xd   : > { %554 = vmatprep.subr.bf16.mxu0 %v883_v0  ;;  %v888_v3 = vld [vmem:[%s1151_s1 + $0x60] ss:$8 sps:$4 sm:$0xff]   ;;  %v889_v4 = vld [vmem:[%s1151_s1 + $0x54] ss:$8 sps:$4 sm:$0xff]   ;;  %v891_v5 = vld [vmem:[%s1151_s1 + $0x50] ss:$8 sps:$4 sm:$0xff]  }
   0xe   : > { %555 = vmatpush1.bf16.msra.mxu0 %v885_v1  ;;  %v892_v6 = vld [vmem:[%s1151_s1 + $0x44] ss:$8 sps:$4 sm:$0xff]   ;;  %v894_v7 = vld [vmem:[%s1151_s1 + $0x40] ss:$8 sps:$4 sm:$0xff]   ;;  %v895_v8 = vld [vmem:[%s1151_s1 + $0x34] ss:$8 sps:$4 sm:$0xff]  }
   0xf   : > { %556 = vmatprep.subr.bf16.mxu0 %v886_v2  ;;  %s1162_s11 = smov (!%p307_p4, %s811_s11), 3  ;;  %v897_v9 = vld [vmem:[%s1151_s1 + $0x30] ss:$8 sps:$4 sm:$0xff]   ;;  %v898_v10 = vld [vmem:[%s1151_s1 + $0x24] ss:$8 sps:$4 sm:$0xff]   ;;  %v615_v35 = vshrl.u32 %v614_v34, 7 }
  0x10   : > { %s856_s27 = sshll.u32 %s1162_s11, 3  ;;  %v900_v11 = vld [vmem:[%s1151_s1 + $0x20] ss:$8 sps:$4 sm:$0xff]   ;;  %v901_v12 = vld [vmem:[%s1151_s1 + $0x14] ss:$8 sps:$4 sm:$0xff]   ;;  %s857_s14 = sshll.u32 %s1162_s11, 4 }
  0x11   : > { %s1057_s8 = scalar_lea.vmem %s1150_s0, %s856_s27  ;;  %v903_v14 = vld [vmem:[%s1151_s1 + $0x10] ss:$8 sps:$4 sm:$0xff]   ;;  %v904_v15 = vld [vmem:[%s1151_s1 + $0x4] ss:$8 sps:$4 sm:$0xff]   ;;  %v906_v16 = vld [vmem:[%s1151_s1] ss:$8 sps:$4 sm:$0xff]   ;;  %s329_s17 = scalar_lea.vmem %s1153_s3, %s857_s14 }
  0x12   : > { %557 = vmatpush1.bf16.msra.mxu0 %v888_v3  ;;  %v933_v13 = vld [vmem:[%s1057_s8 + $0x4] ss:$8 sps:$4 sm:$0xff]   ;;  %v907_v17 = vld [vmem:[%s1151_s1 + $0xf4] ss:$8 sps:$4 sm:$0xff]   ;;  %v909_v18 = vld [vmem:[%s1151_s1 + $0xf0] ss:$8 sps:$4 sm:$0xff]   ;;  %s336_s26 = scalar_lea.vmem %s1156_s6, %s857_s14 }
  0x13   : > { %558 = vmatprep.subr.bf16.mxu0 %v889_v4  ;;  %586 = vmatprep.mubr.bf16.mxu0 %v933_v13  ;;  %v910_v19 = vld [vmem:[%s1151_s1 + $0xe4] ss:$8 sps:$4 sm:$0xff]   ;;  %v912_v20 = vld [vmem:[%s1151_s1 + $0xe0] ss:$8 sps:$4 sm:$0xff]   ;;  %v913_v21 = vld [vmem:[%s1151_s1 + $0xd4] ss:$8 sps:$4 sm:$0xff]  }
  0x14   : > { %v915_v22 = vld [vmem:[%s1151_s1 + $0xd0] ss:$8 sps:$4 sm:$0xff]   ;;  %v916_v23 = vld [vmem:[%s1151_s1 + $0xc4] ss:$8 sps:$4 sm:$0xff]   ;;  %v918_v24 = vld [vmem:[%s1151_s1 + $0xc0] ss:$8 sps:$4 sm:$0xff]  }
  0x15   : > { %v919_v25 = vld [vmem:[%s1151_s1 + $0xb4] ss:$8 sps:$4 sm:$0xff]   ;;  %v921_v26 = vld [vmem:[%s1151_s1 + $0xb0] ss:$8 sps:$4 sm:$0xff]   ;;  %v922_v27 = vld [vmem:[%s1151_s1 + $0xa4] ss:$8 sps:$4 sm:$0xff]  }
  0x16   : > { %559 = vmatpush1.bf16.msra.mxu0 %v891_v5  ;;  %v924_v28 = vld [vmem:[%s1151_s1 + $0xa0] ss:$8 sps:$4 sm:$0xff]   ;;  %v925_v29 = vld [vmem:[%s1151_s1 + $0x94] ss:$8 sps:$4 sm:$0xff]   ;;  %v927_v30 = vld [vmem:[%s1151_s1 + $0x90] ss:$8 sps:$4 sm:$0xff]  }
  0x17   : > { %560 = vmatprep.subr.bf16.mxu0 %v892_v6  ;;  %v928_v31 = vld [vmem:[%s1151_s1 + $0x84] ss:$8 sps:$4 sm:$0xff]   ;;  %v930_v32 = vld [vmem:[%s1151_s1 + $0x80] ss:$8 sps:$4 sm:$0xff]   ;;  %v616_v36 = vsub.s32 0, %v615_v35  ;;  %v620_v38 = vsub.s32 1, %v615_v35 }
  0x18   : > { %v931_v33 = vld [vmem:[%s1057_s8] ss:$8 sps:$4 sm:$0xff]   ;;  %v630_v51 = vld [vmem:[%s329_s17 + $0x10] sm:$0xff]  ;;  %v631_v53 = vld [vmem:[%s329_s17 + $0x18] sm:$0xff] }
  0x19   : > { %v612_v37 = vld [vmem:[%s1152_s2] sm:$0x3]  ;;  %v629_v45 = vld [vmem:[%s329_s17 + $0x8] sm:$0xff] }
  0x1a   : > { %561 = vmatpush1.bf16.msra.mxu0 %v894_v7  ;;  %v617_v39 = vrot.slane %v612_v37, %v616_v36  ;;  %v621_v40 = vrot.slane %v612_v37, %v620_v38  ;;  %v628_v44 = vld [vmem:[%s329_s17] sm:$0xff] }
  0x1b   : > { %562 = vmatprep.subr.bf16.mxu0 %v895_v8 }
  0x1e   : > { %563 = vmatpush1.bf16.msra.mxu0 %v897_v9 }
  0x1f   : > { %564 = vmatprep.subr.bf16.mxu0 %v898_v10 }
  0x22   : > { %565 = vmatpush1.bf16.msra.mxu0 %v900_v11 }
  0x23   : > { %566 = vmatprep.subr.bf16.mxu0 %v901_v12 }
  0x26   : > { %567 = vmatpush1.bf16.msra.mxu0 %v903_v14 }
  0x27   : > { %568 = vmatprep.subr.bf16.mxu0 %v904_v15  ;;  %v669_v15 = vld [vmem:[%s1154_s4] sm:$0x3] }
  0x2a   : > { %569 = vmatpush1.bf16.msra.mxu0 %v906_v16  ;;  %v685_v16 = vld [vmem:[%s1155_s5] sm:$0x3] }
  0x2b   : > { %570 = vmatprep.subr.bf16.mxu0 %v907_v17  ;;  %v674_v17 = vrot.slane %v669_v15, %v616_v36 }
  0x2e   : > { %571 = vmatpush2.bf16.msra.mxu0 %v909_v18  ;;  %v678_v18 = vrot.slane %v669_v15, %v620_v38 }
  0x2f   : > { %572 = vmatprep.subr.bf16.mxu0 %v910_v19 }
  0x32   : > { %573 = vmatpush2.bf16.msra.mxu0 %v912_v20  ;;  %v690_v20 = vrot.slane %v685_v16, %v616_v36 }
  0x33   : > { %574 = vmatprep.subr.bf16.mxu0 %v913_v21  ;;  %v694_v21 = vrot.slane %v685_v16, %v620_v38 }
  0x36   : > { %575 = vmatpush2.bf16.msra.mxu0 %v915_v22 }
  0x37   : > { %576 = vmatprep.subr.bf16.mxu0 %v916_v23 }
  0x3a   : > { %577 = vmatpush2.bf16.msra.mxu0 %v918_v24 }
  0x3b   : > { %578 = vmatprep.subr.bf16.mxu0 %v919_v25 }
  0x3e   : > { %579 = vmatpush2.bf16.msra.mxu0 %v921_v26 }
  0x3f   : > { %580 = vmatprep.subr.bf16.mxu0 %v922_v27 }
  0x42   : > { %581 = vmatpush2.bf16.msra.mxu0 %v924_v28 }
  0x43   : > { %582 = vmatprep.subr.bf16.mxu0 %v925_v29 }
  0x46   : > { %583 = vmatpush2.bf16.msra.mxu0 %v927_v30 }
  0x47   : > { %584 = vmatprep.subr.bf16.mxu0 %v928_v31 }
  0x4a   : > { %585 = vmatpush2.bf16.msra.mxu0 %v930_v32 }
  0x4d   : > { %587 = vmatmul.mubr.bf16.vlgmr.msra.gmra.mxu0 %v931_v33 }
 0x10d   : > { %v588_v41 = vpop.f32.mrf.mxu0 }
 0x10e   : > { %v624_v42 = vadd.f32 %v617_v39, %v588_v41 }
 0x10f   : > { %v590_v43 = vpop.f32.mrf.mxu0 }
 0x110   : > { %v625_v46 = vadd.f32 %v621_v40, %v590_v43  ;;  %v632_v49 = vadd.f32 %v628_v44, %v624_v42 }
 0x111   : > { %v592_v47 = vpop.f32.mrf.mxu0 }
 0x112   : > { %v626_v48 = vadd.f32 %v617_v39, %v592_v47  ;;  %v633_v50 = vadd.f32 %v629_v45, %v625_v46 }
 0x113   : > { %v594_v52 = vpop.f32.mrf.mxu0 }
 0x114   : > { %v627_v54 = vadd.f32 %v621_v40, %v594_v52  ;;  %v636_v55 = vadd.f32 %v633_v50, %v632_v49  ;;  %v634_v56 = vadd.f32 %v630_v51, %v626_v48 }
 0x116   : > { %v635_v57 = vadd.f32 %v631_v53, %v627_v54  ;;  %637 = vadd.xlane.f32.xlu0 %v636_v55 }
 0x118   : > { %v639_v58 = vadd.f32 %v635_v57, %v634_v56 }
 0x11a   : > { %640 = vadd.xlane.f32.xlu0 %v639_v58 }
 0x19f   : > { %v638_v59 = vpop.xlane.xlu0 %637 }
 0x1a0   : > { %v643_v60 = vmul.f32 0.00390625, %v638_v59 }
 0x1a2   : > { %v645_v61 = vsub.f32 %v632_v49, %v643_v60  ;;  %v646_v62 = vsub.f32 %v633_v50, %v643_v60 }
 0x1a3   : > { %v641_v63 = vpop.xlane.xlu0 %640 }
 0x1a4   : > { %v644_v0 = vmul.f32 0.00390625, %v641_v63  ;;  %v649_v1 = vmul.f32 %v645_v61, %v645_v61  ;;  %v650_v2 = vmul.f32 %v646_v62, %v646_v62 }
 0x1a6   : > { %v647_v3 = vsub.f32 %v634_v56, %v644_v0  ;;  %v648_v4 = vsub.f32 %v635_v57, %v644_v0  ;;  %v653_v5 = vadd.f32 %v650_v2, %v649_v1 }
 0x1a8   : > { %654 = vadd.xlane.f32.xlu1 %v653_v5  ;;  %v651_v6 = vmul.f32 %v647_v3, %v647_v3  ;;  %v652_v7 = vmul.f32 %v648_v4, %v648_v4 }
 0x1aa   : > { %v656_v8 = vadd.f32 %v652_v7, %v651_v6 }
 0x1ac   : > { %657 = vadd.xlane.f32.xlu1 %v656_v8 }
 0x231   : > { %v655_v9 = vpop.xlane.xlu1 %654 }
 0x232   : > { %v659_v10 = vmul.f32 0.00390625, %v655_v9 }
 0x234   : > { %v661_v11 = vadd.f32 1e-06, %v659_v10 }
 0x235   : > { %v658_v12 = vpop.xlane.xlu1 %657 }
 0x236   : > { %934 = vrsqrt.f32 %v661_v11  ;;  %v660_v13 = vmul.f32 0.00390625, %v658_v12 }
 0x238   : > { %v662_v14 = vadd.f32 1e-06, %v660_v13 }
 0x23a   : > { %936 = vrsqrt.f32 %v662_v14 }
 0x243   : > { %v935_v19 = vpop.eup %934 }
 0x244   : > { %v665_v22 = vmul.f32 %v935_v19, %v645_v61  ;;  %v666_v23 = vmul.f32 %v935_v19, %v646_v62 }
 0x246   : > { %v681_v24 = vmul.f32 %v674_v17, %v665_v22  ;;  %v682_v25 = vmul.f32 %v678_v18, %v666_v23 }
 0x247   : > { %v937_v26 = vpop.eup %936 }
 0x248   : > { %v697_v27 = vadd.f32 %v690_v20, %v681_v24  ;;  %v698_v28 = vadd.f32 %v694_v21, %v682_v25  ;;  %v667_v29 = vmul.f32 %v937_v26, %v647_v3  ;;  %v668_v30 = vmul.f32 %v937_v26, %v648_v4 }
 0x24a   : > { %701 = vst [vmem:[%s336_s26] sm:$0xff] %v697_v27  ;;  %702 = vst [vmem:[%s336_s26 + $0x8] sm:$0xff] %v698_v28  ;;  %v683_v31 = vmul.f32 %v674_v17, %v667_v29  ;;  %v684_v32 = vmul.f32 %v678_v18, %v668_v30 }
 0x24c   : > { %v699_v33 = vadd.f32 %v690_v20, %v683_v31  ;;  %v700_v34 = vadd.f32 %v694_v21, %v684_v32 }
 0x24e   : > { %703 = vst [vmem:[%s336_s26 + $0x10] sm:$0xff] %v699_v33  ;;  %704 = vst [vmem:[%s336_s26 + $0x18] sm:$0xff] %v700_v34 }
 0x24f PF: > { %s16_s23 = sadd.s32 1, %s960_s23   ;;  %s1157_s21 = smov %s956_s22 }
 0x250   : > { %p13_p5 = scmp.ge.s32.totalorder %s16_s23, 4   ;;  %s1158_s22 = smov %s1160_s24 }
 0x252   :  { %15 = sbr.rel (!%p13_p5) target bundleno = 2 (0x2), region = 88 }

// kernel: encoder_forward.10
= control target key start
LH: loop header
LB: loop body
LE: loop exit
PB: predicated region body
PF: predicated region fallthrough
CT: control target
= control target key end

     0   :  { %s1611_s12 = smov 0   ;;  %s1613_s13 = smov 0   ;;  %s1963_s0 = inlined_call_operand.vmem [shape: f32[32,256], index: 0, kind: input, shape index: {}]   ;;  %s1964_s1 = inlined_call_operand.vmem [shape: bf16[256,768], index: 1, kind: input, shape index: {}]   ;;  %s1965_s2 = inlined_call_operand.vmem [shape: f32[1,768], index: 2, kind: input, shape index: {}]   ;;  %s1966_s3 = inlined_call_operand.vmem [shape: bf16[32,768], index: 3, kind: output, shape index: {}]  }
   0x1   :  { %s1615_s14 = smov 0  }
   0x2 LB: > { %s32_s15 = sadd.s32 1, %s1585_s13  ;;  %p1281_p0 = scmp.ge.s32.totalorder %s1589_s14, 1  ;;  %s1589_s14 = sphi %s1615_s14, %s13_s14   ;;  %s1585_s13 = sphi %s1613_s13, %s1968_s13   ;;  %s1581_s12 = sphi %s1611_s12, %s1967_s12  }
   0x3   : > { %p34_p1 = scmp.ge.s32.totalorder %s32_s15, 2  ;;  %p196_p2 = scmp.lt.s32.totalorder %s1589_s14, 3 }
   0x5   : > { %s1970_s15 = smov (%p34_p1, %s32_s15), 0  ;;  %p197_p3 = pnand %p1281_p0, %p196_p2 }
   0x6   : > { %s1282_s26 = sshll.u32 (!%p197_p3), %s1581_s12, 1 }
   0x7   : > { %200 = sbr.rel (%p197_p3) target bundleno = 345 (0x159), region = 32  ;;  %p246_p4 = scmp.lt.s32.totalorder (!%p197_p3), %s1282_s26, 3 }
   0xc   : > { %v1423_v0 = vld [vmem:[%s1964_s1 + $0x154] ss:$24 sps:$4 sm:$0xff]   ;;  %v1425_v1 = vld [vmem:[%s1964_s1 + $0x150] ss:$24 sps:$4 sm:$0xff]   ;;  %v1426_v2 = vld [vmem:[%s1964_s1 + $0x124] ss:$24 sps:$4 sm:$0xff]  }
   0xd   : > { %895 = vmatprep.subr.bf16.mxu0 %v1423_v0  ;;  %v1428_v3 = vld [vmem:[%s1964_s1 + $0x120] ss:$24 sps:$4 sm:$0xff]   ;;  %v1429_v4 = vld [vmem:[%s1964_s1 + $0xf4] ss:$24 sps:$4 sm:$0xff]   ;;  %v1431_v5 = vld [vmem:[%s1964_s1 + $0xf0] ss:$24 sps:$4 sm:$0xff]  }
   0xe   : > { %896 = vmatpush1.bf16.msra.mxu0 %v1425_v1  ;;  %v1432_v6 = vld [vmem:[%s1964_s1 + $0xc4] ss:$24 sps:$4 sm:$0xff]   ;;  %v1434_v7 = vld [vmem:[%s1964_s1 + $0xc0] ss:$24 sps:$4 sm:$0xff]   ;;  %v1435_v8 = vld [vmem:[%s1964_s1 + $0x94] ss:$24 sps:$4 sm:$0xff]  }
   0xf   : > { %897 = vmatprep.subr.bf16.mxu0 %v1426_v2  ;;  %s1972_s26 = smov (!%p246_p4, %s1282_s26), 3  ;;  %v1437_v9 = vld [vmem:[%s1964_s1 + $0x90] ss:$24 sps:$4 sm:$0xff]   ;;  %v1438_v10 = vld [vmem:[%s1964_s1 + $0x64] ss:$24 sps:$4 sm:$0xff]  }
  0x10   : > { %s1391_s12 = sshll.u32 %s1972_s26, 4  ;;  %v1440_v11 = vld [vmem:[%s1964_s1 + $0x60] ss:$24 sps:$4 sm:$0xff]   ;;  %v1441_v12 = vld [vmem:[%s1964_s1 + $0x34] ss:$24 sps:$4 sm:$0xff]   ;;  %s1398_s7 = smul.u32 24, %s1972_s26 }
  0x11   : > { %v1468_v13 = vld [vmem:[%s1964_s1 + $0x15c] ss:$24 sps:$4 sm:$0xff]   ;;  %s1677_s24 = scalar_lea.vmem %s1963_s0, %s1391_s12  ;;  %v1470_v14 = vld [vmem:[%s1964_s1 + $0x158] ss:$24 sps:$4 sm:$0xff]   ;;  %v1474_v16 = vld [vmem:[%s1964_s1 + $0x12c] ss:$24 sps:$4 sm:$0xff]  }
  0x12   : > { %898 = vmatpush1.bf16.msra.mxu0 %v1428_v3  ;;  %v1443_v15 = vld [vmem:[%s1964_s1 + $0x30] ss:$24 sps:$4 sm:$0xff]   ;;  %938 = vmatprep.subr.bf16.mxu1 %v1468_v13  ;;  %v1444_v18 = vld [vmem:[%s1964_s1 + $0x4] ss:$24 sps:$4 sm:$0xff]   ;;  %v1446_v22 = vld [vmem:[%s1964_s1] ss:$24 sps:$4 sm:$0xff]   ;;  %s1946_s10 = scalar_lea.vmem %s1966_s3, %s1398_s7 }
  0x13   : > { %899 = vmatprep.subr.bf16.mxu0 %v1429_v4  ;;  %939 = vmatpush1.bf16.msra.mxu1 %v1470_v14  ;;  %v314_v17 = vld [vmem:[%s1677_s24 + $0x8] sm:$0xff]  ;;  %v316_v19 = vld [vmem:[%s1677_s24 + $0x18] sm:$0xff]  ;;  %v313_v56 = vld [vmem:[%s1677_s24] sm:$0xff] }
  0x14   : > { %v1476_v20 = vld [vmem:[%s1964_s1 + $0x128] ss:$24 sps:$4 sm:$0xff]   ;;  %940 = vmatprep.subr.bf16.mxu1 %v1474_v16  ;;  %v1696_v21 = vpack.c.bf16 %v316_v19, %v314_v17  ;;  %v1447_v23 = vld [vmem:[%s1964_s1 + $0x2d4] ss:$24 sps:$4 sm:$0xff]   ;;  %v1482_v25 = vld [vmem:[%s1964_s1 + $0xf8] ss:$24 sps:$4 sm:$0xff]  }
  0x15   : > { %v1480_v24 = vld [vmem:[%s1964_s1 + $0xfc] ss:$24 sps:$4 sm:$0xff]   ;;  %v1486_v26 = vld [vmem:[%s1964_s1 + $0xcc] ss:$24 sps:$4 sm:$0xff]   ;;  %v1449_v27 = vld [vmem:[%s1964_s1 + $0x2d0] ss:$24 sps:$4 sm:$0xff]  }
  0x16   : > { %900 = vmatpush1.bf16.msra.mxu0 %v1431_v5  ;;  %927 = vmatprep.mubr.bf16.mxu0 %v1696_v21  ;;  %v1450_v28 = vld [vmem:[%s1964_s1 + $0x2a4] ss:$24 sps:$4 sm:$0xff]   ;;  %v1488_v29 = vld [vmem:[%s1964_s1 + $0xc8] ss:$24 sps:$4 sm:$0xff]   ;;  %v1453_v32 = vld [vmem:[%s1964_s1 + $0x274] ss:$24 sps:$4 sm:$0xff]  }
  0x17   : > { %901 = vmatprep.subr.bf16.mxu0 %v1432_v6  ;;  %941 = vmatpush1.bf16.msra.mxu1 %v1476_v20  ;;  %v1492_v30 = vld [vmem:[%s1964_s1 + $0x9c] ss:$24 sps:$4 sm:$0xff]   ;;  %v1452_v31 = vld [vmem:[%s1964_s1 + $0x2a0] ss:$24 sps:$4 sm:$0xff]   ;;  %v1498_v34 = vld [vmem:[%s1964_s1 + $0x6c] ss:$24 sps:$4 sm:$0xff]  }
  0x18   : > { %942 = vmatprep.subr.bf16.mxu1 %v1480_v24  ;;  %970 = vmatprep.mubr.bf16.mxu1 %v1696_v21  ;;  %v1494_v33 = vld [vmem:[%s1964_s1 + $0x98] ss:$24 sps:$4 sm:$0xff]   ;;  %v1456_v36 = vld [vmem:[%s1964_s1 + $0x244] ss:$24 sps:$4 sm:$0xff]   ;;  %v1500_v37 = vld [vmem:[%s1964_s1 + $0x68] ss:$24 sps:$4 sm:$0xff]  }
  0x19   : > { %v1455_v35 = vld [vmem:[%s1964_s1 + $0x270] ss:$24 sps:$4 sm:$0xff]   ;;  %v1504_v38 = vld [vmem:[%s1964_s1 + $0x3c] ss:$24 sps:$4 sm:$0xff]   ;;  %v1458_v39 = vld [vmem:[%s1964_s1 + $0x240] ss:$24 sps:$4 sm:$0xff]  }
  0x1a   : > { %902 = vmatpush1.bf16.msra.mxu0 %v1434_v7  ;;  %v1459_v40 = vld [vmem:[%s1964_s1 + $0x214] ss:$24 sps:$4 sm:$0xff]   ;;  %v1506_v41 = vld [vmem:[%s1964_s1 + $0x38] ss:$24 sps:$4 sm:$0xff]   ;;  %v1462_v44 = vld [vmem:[%s1964_s1 + $0x1e4] ss:$24 sps:$4 sm:$0xff]  }
  0x1b   : > { %903 = vmatprep.subr.bf16.mxu0 %v1435_v8  ;;  %943 = vmatpush1.bf16.msra.mxu1 %v1482_v25  ;;  %v1510_v42 = vld [vmem:[%s1964_s1 + $0xc] ss:$24 sps:$4 sm:$0xff]   ;;  %v1461_v43 = vld [vmem:[%s1964_s1 + $0x210] ss:$24 sps:$4 sm:$0xff]   ;;  %v1516_v46 = vld [vmem:[%s1964_s1 + $0x2dc] ss:$24 sps:$4 sm:$0xff]  }
  0x1c   : > { %944 = vmatprep.subr.bf16.mxu1 %v1486_v26  ;;  %v1512_v45 = vld [vmem:[%s1964_s1 + $0x8] ss:$24 sps:$4 sm:$0xff]   ;;  %v1465_v48 = vld [vmem:[%s1964_s1 + $0x1b4] ss:$24 sps:$4 sm:$0xff]   ;;  %v1518_v49 = vld [vmem:[%s1964_s1 + $0x2d8] ss:$24 sps:$4 sm:$0xff]  }
  0x1d   : > { %v1464_v47 = vld [vmem:[%s1964_s1 + $0x1e0] ss:$24 sps:$4 sm:$0xff]   ;;  %v1522_v50 = vld [vmem:[%s1964_s1 + $0x2ac] ss:$24 sps:$4 sm:$0xff]   ;;  %v1467_v51 = vld [vmem:[%s1964_s1 + $0x1b0] ss:$24 sps:$4 sm:$0xff]  }
  0x1e   : > { %904 = vmatpush1.bf16.msra.mxu0 %v1437_v9  ;;  %v1471_v52 = vld [vmem:[%s1964_s1 + $0x184] ss:$24 sps:$4 sm:$0xff]   ;;  %v1524_v53 = vld [vmem:[%s1964_s1 + $0x2a8] ss:$24 sps:$4 sm:$0xff]   ;;  %v315_v57 = vld [vmem:[%s1677_s24 + $0x10] sm:$0xff] }
  0x1f   : > { %905 = vmatprep.subr.bf16.mxu0 %v1438_v10  ;;  %945 = vmatpush1.bf16.msra.mxu1 %v1488_v29  ;;  %v1528_v54 = vld [vmem:[%s1964_s1 + $0x27c] ss:$24 sps:$4 sm:$0xff]   ;;  %v1473_v55 = vld [vmem:[%s1964_s1 + $0x180] ss:$24 sps:$4 sm:$0xff]   ;;  %v1534_v60 = vld [vmem:[%s1964_s1 + $0x24c] ss:$24 sps:$4 sm:$0xff]   ;;  %v1813_v61 = vpack.c.bf16 %v315_v57, %v313_v56 }
  0x20   : > { %946 = vmatprep.subr.bf16.mxu1 %v1492_v30  ;;  %v1479_v58 = vld [vmem:[%s1964_s1 + $0x164] ss:$24 sps:$4 sm:$0xff]   ;;  %v1530_v59 = vld [vmem:[%s1964_s1 + $0x278] ss:$24 sps:$4 sm:$0xff]   ;;  %v1485_v63 = vld [vmem:[%s1964_s1 + $0x134] ss:$24 sps:$4 sm:$0xff]  }
  0x21   : > { %v1477_v62 = vld [vmem:[%s1964_s1 + $0x160] ss:$24 sps:$4 sm:$0xff]   ;;  %v1540_v1 = vld [vmem:[%s1964_s1 + $0x21c] ss:$24 sps:$4 sm:$0xff]   ;;  %v1483_v2 = vld [vmem:[%s1964_s1 + $0x130] ss:$24 sps:$4 sm:$0xff]  }
  0x22   : > { %906 = vmatpush1.bf16.msra.mxu0 %v1440_v11  ;;  %v1536_v0 = vld [vmem:[%s1964_s1 + $0x248] ss:$24 sps:$4 sm:$0xff]   ;;  %v1491_v3 = vld [vmem:[%s1964_s1 + $0x104] ss:$24 sps:$4 sm:$0xff]   ;;  %v1542_v4 = vld [vmem:[%s1964_s1 + $0x218] ss:$24 sps:$4 sm:$0xff]  }
  0x23   : > { %907 = vmatprep.subr.bf16.mxu0 %v1441_v12  ;;  %947 = vmatpush1.bf16.msra.mxu1 %v1494_v33  ;;  %v1546_v5 = vld [vmem:[%s1964_s1 + $0x1ec] ss:$24 sps:$4 sm:$0xff]   ;;  %v1489_v6 = vld [vmem:[%s1964_s1 + $0x100] ss:$24 sps:$4 sm:$0xff]   ;;  %v1552_v9 = vld [vmem:[%s1964_s1 + $0x1bc] ss:$24 sps:$4 sm:$0xff]  }
  0x24   : > { %948 = vmatprep.subr.bf16.mxu1 %v1498_v34  ;;  %v1497_v7 = vld [vmem:[%s1964_s1 + $0xd4] ss:$24 sps:$4 sm:$0xff]   ;;  %v1548_v8 = vld [vmem:[%s1964_s1 + $0x1e8] ss:$24 sps:$4 sm:$0xff]   ;;  %v1503_v11 = vld [vmem:[%s1964_s1 + $0xa4] ss:$24 sps:$4 sm:$0xff]  }
  0x25   : > { %v1495_v10 = vld [vmem:[%s1964_s1 + $0xd0] ss:$24 sps:$4 sm:$0xff]   ;;  %v1558_v13 = vld [vmem:[%s1964_s1 + $0x18c] ss:$24 sps:$4 sm:$0xff]   ;;  %v1501_v14 = vld [vmem:[%s1964_s1 + $0xa0] ss:$24 sps:$4 sm:$0xff]  }
  0x26   : > { %908 = vmatpush1.bf16.msra.mxu0 %v1443_v15  ;;  %v1554_v12 = vld [vmem:[%s1964_s1 + $0x1b8] ss:$24 sps:$4 sm:$0xff]   ;;  %v1509_v15 = vld [vmem:[%s1964_s1 + $0x74] ss:$24 sps:$4 sm:$0xff]   ;;  %v1560_v16 = vld [vmem:[%s1964_s1 + $0x188] ss:$24 sps:$4 sm:$0xff]  }
  0x27   : > { %909 = vmatprep.subr.bf16.mxu0 %v1444_v18  ;;  %949 = vmatpush1.bf16.msra.mxu1 %v1500_v37  ;;  %v1507_v17 = vld [vmem:[%s1964_s1 + $0x70] ss:$24 sps:$4 sm:$0xff]   ;;  %v1515_v18 = vld [vmem:[%s1964_s1 + $0x44] ss:$24 sps:$4 sm:$0xff]   ;;  %v1513_v19 = vld [vmem:[%s1964_s1 + $0x40] ss:$24 sps:$4 sm:$0xff]  }
  0x28   : > { %950 = vmatprep.subr.bf16.mxu1 %v1504_v38  ;;  %v1521_v20 = vld [vmem:[%s1964_s1 + $0x14] ss:$24 sps:$4 sm:$0xff]   ;;  %v1531_v25 = vld [vmem:[%s1964_s1 + $0x2b0] ss:$24 sps:$4 sm:$0xff]   ;;  %v1539_v26 = vld [vmem:[%s1964_s1 + $0x284] ss:$24 sps:$4 sm:$0xff]   ;;  %v1065_v38 = vlaneseq }
  0x29   : > { %v1533_v24 = vld [vmem:[%s1964_s1 + $0x2b4] ss:$24 sps:$4 sm:$0xff]   ;;  %v1543_v29 = vld [vmem:[%s1964_s1 + $0x250] ss:$24 sps:$4 sm:$0xff]   ;;  %v1551_v30 = vld [vmem:[%s1964_s1 + $0x224] ss:$24 sps:$4 sm:$0xff]  }
  0x2a   : > { %910 = vmatpush1.bf16.msra.mxu0 %v1446_v22  ;;  %v1527_v22 = vld [vmem:[%s1964_s1 + $0x2e4] ss:$24 sps:$4 sm:$0xff]   ;;  %v1555_v33 = vld [vmem:[%s1964_s1 + $0x1f0] ss:$24 sps:$4 sm:$0xff]  }
  0x2b   : > { %911 = vmatprep.subr.bf16.mxu0 %v1447_v23  ;;  %951 = vmatpush1.bf16.msra.mxu1 %v1506_v41  ;;  %v1525_v23 = vld [vmem:[%s1964_s1 + $0x2e0] ss:$24 sps:$4 sm:$0xff]   ;;  %v1563_v34 = vld [vmem:[%s1964_s1 + $0x1c4] ss:$24 sps:$4 sm:$0xff]   ;;  %v1564_v37 = vld [vmem:[%s1964_s1 + $0x190] ss:$24 sps:$4 sm:$0xff]  }
  0x2c   : > { %952 = vmatprep.subr.bf16.mxu1 %v1510_v42  ;;  %v1063_v41 = vld [vmem:[%s1965_s2] sm:$0x3f] }
  0x2e   : > { %912 = vmatpush2.bf16.msra.mxu0 %v1449_v27  ;;  %v1537_v27 = vld [vmem:[%s1964_s1 + $0x280] ss:$24 sps:$4 sm:$0xff]  }
  0x2f   : > { %913 = vmatprep.subr.bf16.mxu0 %v1450_v28  ;;  %953 = vmatpush1.bf16.msra.mxu1 %v1512_v45  ;;  %v1545_v28 = vld [vmem:[%s1964_s1 + $0x254] ss:$24 sps:$4 sm:$0xff]  }
  0x30   : > { %954 = vmatprep.subr.bf16.mxu1 %v1516_v46 }
  0x32   : > { %914 = vmatpush2.bf16.msra.mxu0 %v1452_v31  ;;  %v1549_v31 = vld [vmem:[%s1964_s1 + $0x220] ss:$24 sps:$4 sm:$0xff]  }
  0x33   : > { %915 = vmatprep.subr.bf16.mxu0 %v1453_v32  ;;  %955 = vmatpush2.bf16.msra.mxu1 %v1518_v49  ;;  %v1557_v32 = vld [vmem:[%s1964_s1 + $0x1f4] ss:$24 sps:$4 sm:$0xff]  }
  0x34   : > { %956 = vmatprep.subr.bf16.mxu1 %v1522_v50 }
  0x36   : > { %916 = vmatpush2.bf16.msra.mxu0 %v1455_v35  ;;  %v1561_v35 = vld [vmem:[%s1964_s1 + $0x1c0] ss:$24 sps:$4 sm:$0xff]  }
  0x37   : > { %917 = vmatprep.subr.bf16.mxu0 %v1456_v36  ;;  %957 = vmatpush2.bf16.msra.mxu1 %v1524_v53  ;;  %v1566_v36 = vld [vmem:[%s1964_s1 + $0x194] ss:$24 sps:$4 sm:$0xff]  }
  0x38   : > { %958 = vmatprep.subr.bf16.mxu1 %v1528_v54 }
  0x3a   : > { %918 = vmatpush2.bf16.msra.mxu0 %v1458_v39  ;;  %v1066_v39 = vshrl.u32 %v1065_v38, 7 }
  0x3b   : > { %919 = vmatprep.subr.bf16.mxu0 %v1459_v40  ;;  %959 = vmatpush2.bf16.msra.mxu1 %v1530_v59 }
  0x3c   : > { %960 = vmatprep.subr.bf16.mxu1 %v1534_v60  ;;  %v1083_v40 = vsub.s32 4, %v1066_v39  ;;  %v1067_v45 = vsub.s32 0, %v1066_v39  ;;  %v1071_v46 = vsub.s32 1, %v1066_v39  ;;  %v1075_v59 = vsub.s32 2, %v1066_v39 }
  0x3d   : > { %v1079_v60 = vsub.s32 3, %v1066_v39 }
  0x3e   : > { %920 = vmatpush2.bf16.msra.mxu0 %v1461_v43  ;;  %v1084_v42 = vrot.slane %v1063_v41, %v1083_v40  ;;  %v1087_v43 = vsub.s32 5, %v1066_v39 }
  0x3f   : > { %921 = vmatprep.subr.bf16.mxu0 %v1462_v44  ;;  %961 = vmatpush2.bf16.msra.mxu1 %v1536_v0 }
  0x40   : > { %962 = vmatprep.subr.bf16.mxu1 %v1540_v1  ;;  %v1088_v44 = vrot.slane %v1063_v41, %v1087_v43 }
  0x42   : > { %922 = vmatpush2.bf16.msra.mxu0 %v1464_v47  ;;  %v1068_v47 = vrot.slane %v1063_v41, %v1067_v45 }
  0x43   : > { %923 = vmatprep.subr.bf16.mxu0 %v1465_v48  ;;  %963 = vmatpush2.bf16.msra.mxu1 %v1542_v4  ;;  %v1072_v48 = vrot.slane %v1063_v41, %v1071_v46 }
  0x44   : > { %964 = vmatprep.subr.bf16.mxu1 %v1546_v5 }
  0x46   : > { %924 = vmatpush2.bf16.msra.mxu0 %v1467_v51 }
  0x47   : > { %925 = vmatprep.subr.bf16.mxu0 %v1471_v52  ;;  %965 = vmatpush2.bf16.msra.mxu1 %v1548_v8 }
  0x48   : > { %966 = vmatprep.subr.bf16.mxu1 %v1552_v9 }
  0x4a   : > { %926 = vmatpush2.bf16.msra.mxu0 %v1473_v55 }
  0x4b   : > { %981 = vmatprep.subr.bf16.mxu0 %v1479_v58  ;;  %967 = vmatpush2.bf16.msra.mxu1 %v1554_v12 }
  0x4c   : > { %968 = vmatprep.subr.bf16.mxu1 %v1558_v13 }
  0x4d   : > { %928 = vmatmul.mubr.bf16.vlgmr.msra.gmra.mxu0 %v1813_v61 }
  0x4e   : > { %982 = vmatpush1.bf16.msra.mxu0 %v1477_v62  ;;  %1013 = vmatprep.mubr.bf16.mxu0 %v1696_v21  ;;  %v1519_v21 = vld [vmem:[%s1964_s1 + $0x10] ss:$24 sps:$4 sm:$0xff]   ;;  %v1080_v62 = vrot.slane %v1063_v41, %v1079_v60 }
  0x4f   : > { %983 = vmatprep.subr.bf16.mxu0 %v1485_v63  ;;  %969 = vmatpush2.bf16.msra.mxu1 %v1560_v16 }
  0x52   : > { %984 = vmatpush1.bf16.msra.mxu0 %v1483_v2  ;;  %971 = vmatmul.mubr.bf16.vlgmr.msra.gmra.mxu1 %v1813_v61 }
  0x53   : > { %985 = vmatprep.subr.bf16.mxu0 %v1491_v3 }
  0x56   : > { %986 = vmatpush1.bf16.msra.mxu0 %v1489_v6 }
  0x57   : > { %987 = vmatprep.subr.bf16.mxu0 %v1497_v7 }
  0x5a   : > { %988 = vmatpush1.bf16.msra.mxu0 %v1495_v10 }
  0x5b   : > { %989 = vmatprep.subr.bf16.mxu0 %v1503_v11 }
  0x5e   : > { %990 = vmatpush1.bf16.msra.mxu0 %v1501_v14 }
  0x5f   : > { %991 = vmatprep.subr.bf16.mxu0 %v1509_v15 }
  0x62   : > { %992 = vmatpush1.bf16.msra.mxu0 %v1507_v17 }
  0x63   : > { %993 = vmatprep.subr.bf16.mxu0 %v1515_v18 }
  0x66   : > { %994 = vmatpush1.bf16.msra.mxu0 %v1513_v19 }
  0x67   : > { %995 = vmatprep.subr.bf16.mxu0 %v1521_v20 }
  0x6a   : > { %996 = vmatpush1.bf16.msra.mxu0 %v1519_v21 }
  0x6b   : > { %997 = vmatprep.subr.bf16.mxu0 %v1527_v22 }
  0x6e   : > { %998 = vmatpush2.bf16.msra.mxu0 %v1525_v23 }
  0x6f   : > { %999 = vmatprep.subr.bf16.mxu0 %v1533_v24 }
  0x72   : > { %1000 = vmatpush2.bf16.msra.mxu0 %v1531_v25 }
  0x73   : > { %1001 = vmatprep.subr.bf16.mxu0 %v1539_v26 }
  0x76   : > { %1002 = vmatpush2.bf16.msra.mxu0 %v1537_v27 }
  0x77   : > { %1003 = vmatprep.subr.bf16.mxu0 %v1545_v28 }
  0x7a   : > { %1004 = vmatpush2.bf16.msra.mxu0 %v1543_v29 }
  0x7b   : > { %1005 = vmatprep.subr.bf16.mxu0 %v1551_v30 }
  0x7e   : > { %1006 = vmatpush2.bf16.msra.mxu0 %v1549_v31 }
  0x7f   : > { %1007 = vmatprep.subr.bf16.mxu0 %v1557_v32 }
  0x82   : > { %1008 = vmatpush2.bf16.msra.mxu0 %v1555_v33 }
  0x83   : > { %1009 = vmatprep.subr.bf16.mxu0 %v1563_v34 }
  0x86   : > { %1010 = vmatpush2.bf16.msra.mxu0 %v1561_v35 }
  0x87   : > { %1011 = vmatprep.subr.bf16.mxu0 %v1566_v36 }
  0x8a   : > { %1012 = vmatpush2.bf16.msra.mxu0 %v1564_v37 }
  0x8d   : > { %1014 = vmatmul.mubr.bf16.vlgmr.msra.gmra.mxu0 %v1813_v61  ;;  %v1076_v61 = vrot.slane %v1063_v41, %v1075_v59 }
 0x10d   : > { %v929_v49 = vpop.f32.mrf.mxu0 }
 0x10e   : > { %v1095_v50 = vadd.f32 %v1068_v47, %v929_v49 }
 0x10f   : > { %v931_v51 = vpop.f32.mrf.mxu0 }
 0x110   : > { %v1096_v52 = vadd.f32 %v1072_v48, %v931_v51 }
 0x111   : > { %v933_v53 = vpop.f32.mrf.mxu0 }
 0x112   : > { %v1392_v54 = vpack.c.bf16 %v1096_v52, %v1095_v50  ;;  %v1101_v56 = vadd.f32 %v1068_v47, %v933_v53  ;;  %v972_v63 = vpop.f32.mrf.mxu1 }
 0x113   : > { %v935_v55 = vpop.f32.mrf.mxu0  ;;  %v1097_v0 = vadd.f32 %v1076_v61, %v972_v63 }
 0x114   : > { %1143 = vst [vmem:[%s1946_s10] sm:$0xff] %v1392_v54  ;;  %v1102_v57 = vadd.f32 %v1072_v48, %v935_v55  ;;  %v974_v1 = vpop.f32.mrf.mxu1 }
 0x115   : > { %v1098_v2 = vadd.f32 %v1080_v62, %v974_v1 }
 0x116   : > { %v1395_v58 = vpack.c.bf16 %v1102_v57, %v1101_v56  ;;  %v976_v3 = vpop.f32.mrf.mxu1 }
 0x117   : > { %v1393_v4 = vpack.c.bf16 %v1098_v2, %v1097_v0  ;;  %v1103_v5 = vadd.f32 %v1076_v61, %v976_v3 }
 0x118   : > { %1146 = vst [vmem:[%s1946_s10 + $0x18] sm:$0xff] %v1395_v58  ;;  %v978_v6 = vpop.f32.mrf.mxu1 }
 0x119   : > { %1144 = vst [vmem:[%s1946_s10 + $0x8] sm:$0xff] %v1393_v4  ;;  %v1104_v7 = vadd.f32 %v1080_v62, %v978_v6 }
 0x11b   : > { %v1396_v8 = vpack.c.bf16 %v1104_v7, %v1103_v5 }
 0x11d   : > { %1147 = vst [vmem:[%s1946_s10 + $0x20] sm:$0xff] %v1396_v8 }
 0x14d   : > { %v1015_v9 = vpop.f32.mrf.mxu0 }
 0x14e   : > { %v1099_v11 = vadd.f32 %v1084_v42, %v1015_v9 }
 0x14f   : > { %v1017_v10 = vpop.f32.mrf.mxu0 }
 0x150   : > { %v1100_v12 = vadd.f32 %v1088_v44, %v1017_v10 }
 0x151   : > { %v1019_v13 = vpop.f32.mrf.mxu0 }
 0x152   : > { %v1394_v14 = vpack.c.bf16 %v1100_v12, %v1099_v11  ;;  %v1105_v16 = vadd.f32 %v1084_v42, %v1019_v13 }
 0x153   : > { %v1021_v15 = vpop.f32.mrf.mxu0 }
 0x154   : > { %1145 = vst [vmem:[%s1946_s10 + $0x10] sm:$0xff] %v1394_v14  ;;  %v1106_v17 = vadd.f32 %v1088_v44, %v1021_v15 }
 0x156   : > { %v1397_v18 = vpack.c.bf16 %v1106_v17, %v1105_v16 }
 0x158   : > { %1148 = vst [vmem:[%s1946_s10 + $0x28] sm:$0xff] %v1397_v18 }
 0x159 PF: > { %s13_s14 = sadd.s32 1, %s1589_s14   ;;  %s1967_s12 = smov %s1585_s13 }
 0x15a   : > { %p10_p5 = scmp.ge.s32.totalorder %s13_s14, 4   ;;  %s1968_s13 = smov %s1970_s15 }
 0x15c   :  { %12 = sbr.rel (!%p10_p5) target bundleno = 2 (0x2), region = 76 }

// kernel: encoder_forward.13
= control target key start
LH: loop header
LB: loop body
LE: loop exit
PB: predicated region body
PF: predicated region fallthrough
CT: control target
= control target key end

     0   :  { %s2004_s24 = smov 0   ;;  %s2006_s25 = smov 0   ;;  %s2477_s0 = inlined_call_operand.vmem [shape: f32[32,256], index: 0, kind: input, shape index: {}]   ;;  %s2478_s1 = inlined_call_operand.vmem [shape: bf16[256,512], index: 1, kind: input, shape index: {}]   ;;  %s2479_s2 = inlined_call_operand.vmem [shape: f32[1,512], index: 2, kind: input, shape index: {}]   ;;  %s2480_s3 = inlined_call_operand.vmem [shape: bf16[512,256], index: 3, kind: input, shape index: {}]   ;;  %s2481_s4 = inlined_call_operand.vmem [shape: f32[1,256], index: 4, kind: input, shape index: {}]   ;;  %s2482_s5 = inlined_call_operand.vmem [shape: f32[1,256], index: 5, kind: input, shape index: {}]   ;;  %s2483_s6 = inlined_call_operand.vmem [shape: f32[1,256], index: 6, kind: input, shape index: {}]   ;;  %s2484_s7 = inlined_call_operand.vmem [shape: f32[32,256], index: 7, kind: output, shape index: {}]  }
   0x1   :  { %s2008_s26 = smov 0  }
   0x2 LB: > { %s29_s27 = sadd.s32 1, %s1958_s25  ;;  %p1581_p0 = scmp.ge.s32.totalorder %s1962_s26, 1  ;;  %s1962_s26 = sphi %s2008_s26, %s17_s26   ;;  %s1958_s25 = sphi %s2006_s25, %s2486_s25   ;;  %s1954_s24 = sphi %s2004_s24, %s2485_s24  }
   0x3   : > { %p31_p1 = scmp.ge.s32.totalorder %s29_s27, 2  ;;  %p284_p2 = scmp.lt.s32.totalorder %s1962_s26, 3 }
   0x5   : > { %s2488_s27 = smov (%p31_p1, %s29_s27), 0  ;;  %p285_p3 = pnand %p1581_p0, %p284_p2 }
   0x6   : > { %s1582_s8 = sshll.u32 (!%p285_p3), %s1954_s24, 1 }
   0x7   : > { %288 = sbr.rel (%p285_p3) target bundleno = 799 (0x31f), region = 48  ;;  %p334_p4 = scmp.lt.s32.totalorder (!%p285_p3), %s1582_s8, 3 }
   0xc   : > { %v1744_v0 = vld [vmem:[%s2478_s1 + $0xe4] ss:$16 sps:$4 sm:$0xff]   ;;  %v1746_v1 = vld [vmem:[%s2478_s1 + $0xec] ss:$16 sps:$4 sm:$0xff]   ;;  %v1748_v2 = vld [vmem:[%s2478_s1 + $0xe0] ss:$16 sps:$4 sm:$0xff]  }
   0xd   : > { %785 = vmatprep.subr.bf16.mxu0 %v1744_v0  ;;  %v1749_v3 = vld [vmem:[%s2478_s1 + $0xe8] ss:$16 sps:$4 sm:$0xff]   ;;  %828 = vmatprep.subr.bf16.mxu1 %v1746_v1  ;;  %v1750_v4 = vld [vmem:[%s2478_s1 + $0xc4] ss:$16 sps:$4 sm:$0xff]   ;;  %v1752_v5 = vld [vmem:[%s2478_s1 + $0xcc] ss:$16 sps:$4 sm:$0xff]  }
   0xe   : > { %786 = vmatpush1.bf16.msra.mxu0 %v1748_v2  ;;  %829 = vmatpush1.bf16.msra.mxu1 %v1749_v3  ;;  %v1754_v6 = vld [vmem:[%s2478_s1 + $0xc0] ss:$16 sps:$4 sm:$0xff]   ;;  %v1755_v7 = vld [vmem:[%s2478_s1 + $0xc8] ss:$16 sps:$4 sm:$0xff]   ;;  %v1756_v8 = vld [vmem:[%s2478_s1 + $0xa4] ss:$16 sps:$4 sm:$0xff]  }
   0xf   : > { %787 = vmatprep.subr.bf16.mxu0 %v1750_v4  ;;  %830 = vmatprep.subr.bf16.mxu1 %v1752_v5  ;;  %v1758_v9 = vld [vmem:[%s2478_s1 + $0xac] ss:$16 sps:$4 sm:$0xff]   ;;  %v1760_v10 = vld [vmem:[%s2478_s1 + $0xa0] ss:$16 sps:$4 sm:$0xff]   ;;  %v1761_v11 = vld [vmem:[%s2478_s1 + $0xa8] ss:$16 sps:$4 sm:$0xff]  }
  0x10   : > { %v1762_v12 = vld [vmem:[%s2478_s1 + $0x84] ss:$16 sps:$4 sm:$0xff]   ;;  %v1764_v13 = vld [vmem:[%s2478_s1 + $0x8c] ss:$16 sps:$4 sm:$0xff]   ;;  %v1766_v14 = vld [vmem:[%s2478_s1 + $0x80] ss:$16 sps:$4 sm:$0xff]  }
  0x11   : > { %v1767_v15 = vld [vmem:[%s2478_s1 + $0x88] ss:$16 sps:$4 sm:$0xff]   ;;  %v1768_v16 = vld [vmem:[%s2478_s1 + $0x64] ss:$16 sps:$4 sm:$0xff]   ;;  %v1770_v17 = vld [vmem:[%s2478_s1 + $0x6c] ss:$16 sps:$4 sm:$0xff]  }
  0x12   : > { %788 = vmatpush1.bf16.msra.mxu0 %v1754_v6  ;;  %831 = vmatpush1.bf16.msra.mxu1 %v1755_v7  ;;  %v1772_v18 = vld [vmem:[%s2478_s1 + $0x60] ss:$16 sps:$4 sm:$0xff]   ;;  %v1773_v19 = vld [vmem:[%s2478_s1 + $0x68] ss:$16 sps:$4 sm:$0xff]   ;;  %v1774_v20 = vld [vmem:[%s2478_s1 + $0x44] ss:$16 sps:$4 sm:$0xff]  }
  0x13   : > { %789 = vmatprep.subr.bf16.mxu0 %v1756_v8  ;;  %832 = vmatprep.subr.bf16.mxu1 %v1758_v9  ;;  %v1776_v21 = vld [vmem:[%s2478_s1 + $0x4c] ss:$16 sps:$4 sm:$0xff]   ;;  %v1778_v22 = vld [vmem:[%s2478_s1 + $0x40] ss:$16 sps:$4 sm:$0xff]   ;;  %v1779_v23 = vld [vmem:[%s2478_s1 + $0x48] ss:$16 sps:$4 sm:$0xff]  }
  0x14   : > { %v1780_v24 = vld [vmem:[%s2478_s1 + $0x24] ss:$16 sps:$4 sm:$0xff]   ;;  %v1782_v25 = vld [vmem:[%s2478_s1 + $0x2c] ss:$16 sps:$4 sm:$0xff]   ;;  %v1784_v26 = vld [vmem:[%s2478_s1 + $0x20] ss:$16 sps:$4 sm:$0xff]  }
  0x15   : > { %v1785_v27 = vld [vmem:[%s2478_s1 + $0x28] ss:$16 sps:$4 sm:$0xff]   ;;  %v1786_v28 = vld [vmem:[%s2478_s1 + $0x4] ss:$16 sps:$4 sm:$0xff]   ;;  %v1788_v29 = vld [vmem:[%s2478_s1 + $0xc] ss:$16 sps:$4 sm:$0xff]  }
  0x16   : > { %790 = vmatpush1.bf16.msra.mxu0 %v1760_v10  ;;  %833 = vmatpush1.bf16.msra.mxu1 %v1761_v11  ;;  %v1790_v30 = vld [vmem:[%s2478_s1] ss:$16 sps:$4 sm:$0xff]   ;;  %v1791_v31 = vld [vmem:[%s2478_s1 + $0x8] ss:$16 sps:$4 sm:$0xff]   ;;  %v1792_v32 = vld [vmem:[%s2478_s1 + $0x1e4] ss:$16 sps:$4 sm:$0xff]  }
  0x17   : > { %791 = vmatprep.subr.bf16.mxu0 %v1762_v12  ;;  %834 = vmatprep.subr.bf16.mxu1 %v1764_v13  ;;  %v1794_v33 = vld [vmem:[%s2478_s1 + $0x1ec] ss:$16 sps:$4 sm:$0xff]   ;;  %v1796_v34 = vld [vmem:[%s2478_s1 + $0x1e0] ss:$16 sps:$4 sm:$0xff]   ;;  %v1797_v35 = vld [vmem:[%s2478_s1 + $0x1e8] ss:$16 sps:$4 sm:$0xff]  }
  0x18   : > { %v1798_v36 = vld [vmem:[%s2478_s1 + $0x1c4] ss:$16 sps:$4 sm:$0xff]   ;;  %s2490_s8 = smov (!%p334_p4, %s1582_s8), 3  ;;  %v1800_v37 = vld [vmem:[%s2478_s1 + $0x1cc] ss:$16 sps:$4 sm:$0xff]  }
  0x19   : > { %v1802_v38 = vld [vmem:[%s2478_s1 + $0x1c0] ss:$16 sps:$4 sm:$0xff]   ;;  %v1803_v39 = vld [vmem:[%s2478_s1 + $0x1c8] ss:$16 sps:$4 sm:$0xff]   ;;  %v1804_v40 = vld [vmem:[%s2478_s1 + $0x1a4] ss:$16 sps:$4 sm:$0xff]  }
  0x1a   : > { %792 = vmatpush1.bf16.msra.mxu0 %v1766_v14  ;;  %835 = vmatpush1.bf16.msra.mxu1 %v1767_v15  ;;  %s1718_s12 = sshll.u32 %s2490_s8, 4  ;;  %v1806_v41 = vld [vmem:[%s2478_s1 + $0x1ac] ss:$16 sps:$4 sm:$0xff]   ;;  %v1808_v42 = vld [vmem:[%s2478_s1 + $0x1a0] ss:$16 sps:$4 sm:$0xff]  }
  0x1b   : > { %793 = vmatprep.subr.bf16.mxu0 %v1768_v16  ;;  %836 = vmatprep.subr.bf16.mxu1 %v1770_v17  ;;  %v1809_v43 = vld [vmem:[%s2478_s1 + $0x1a8] ss:$16 sps:$4 sm:$0xff]   ;;  %s2165_s20 = scalar_lea.vmem %s2477_s0, %s1718_s12  ;;  %v1810_v44 = vld [vmem:[%s2478_s1 + $0x184] ss:$16 sps:$4 sm:$0xff]   ;;  %v1812_v45 = vld [vmem:[%s2478_s1 + $0x18c] ss:$16 sps:$4 sm:$0xff]   ;;  %s363_s21 = scalar_lea.vmem %s2484_s7, %s1718_s12 }
  0x1c   : > { %v2174_v46 = vld [vmem:[%s2165_s20 + $0x8] sm:$0xff]  ;;  %v1814_v47 = vld [vmem:[%s2478_s1 + $0x180] ss:$16 sps:$4 sm:$0xff]   ;;  %v2183_v49 = vld [vmem:[%s2165_s20 + $0x18] sm:$0xff] }
  0x1d   : > { %v1815_v48 = vld [vmem:[%s2478_s1 + $0x188] ss:$16 sps:$4 sm:$0xff]   ;;  %v1816_v50 = vld [vmem:[%s2478_s1 + $0x164] ss:$16 sps:$4 sm:$0xff]   ;;  %v378_v51 = vpack.c.bf16 %v2183_v49, %v2174_v46  ;;  %v1818_v52 = vld [vmem:[%s2478_s1 + $0x16c] ss:$16 sps:$4 sm:$0xff]  }
  0x1e   : > { %794 = vmatpush1.bf16.msra.mxu0 %v1772_v18  ;;  %837 = vmatpush1.bf16.msra.mxu1 %v1773_v19  ;;  %v1820_v53 = vld [vmem:[%s2478_s1 + $0x160] ss:$16 sps:$4 sm:$0xff]   ;;  %v1821_v54 = vld [vmem:[%s2478_s1 + $0x168] ss:$16 sps:$4 sm:$0xff]   ;;  %v1822_v55 = vld [vmem:[%s2478_s1 + $0x144] ss:$16 sps:$4 sm:$0xff]  }
  0x1f   : > { %795 = vmatprep.subr.bf16.mxu0 %v1774_v20  ;;  %838 = vmatprep.subr.bf16.mxu1 %v1776_v21  ;;  %v1824_v56 = vld [vmem:[%s2478_s1 + $0x14c] ss:$16 sps:$4 sm:$0xff]   ;;  %v1826_v57 = vld [vmem:[%s2478_s1 + $0x140] ss:$16 sps:$4 sm:$0xff]   ;;  %v1827_v58 = vld [vmem:[%s2478_s1 + $0x148] ss:$16 sps:$4 sm:$0xff]  }
  0x20   : > { %817 = vmatprep.mubr.bf16.mxu0 %v378_v51  ;;  %860 = vmatprep.mubr.bf16.mxu1 %v378_v51  ;;  %v1828_v59 = vld [vmem:[%s2478_s1 + $0x124] ss:$16 sps:$4 sm:$0xff]   ;;  %v1830_v60 = vld [vmem:[%s2478_s1 + $0x12c] ss:$16 sps:$4 sm:$0xff]   ;;  %v1832_v61 = vld [vmem:[%s2478_s1 + $0x120] ss:$16 sps:$4 sm:$0xff]  }
  0x21   : > { %v1833_v62 = vld [vmem:[%s2478_s1 + $0x128] ss:$16 sps:$4 sm:$0xff]   ;;  %v1834_v63 = vld [vmem:[%s2478_s1 + $0x104] ss:$16 sps:$4 sm:$0xff]   ;;  %v1836_v0 = vld [vmem:[%s2478_s1 + $0x10c] ss:$16 sps:$4 sm:$0xff]  }
  0x22   : > { %796 = vmatpush1.bf16.msra.mxu0 %v1778_v22  ;;  %839 = vmatpush1.bf16.msra.mxu1 %v1779_v23  ;;  %v1838_v1 = vld [vmem:[%s2478_s1 + $0x100] ss:$16 sps:$4 sm:$0xff]   ;;  %v1839_v2 = vld [vmem:[%s2478_s1 + $0x108] ss:$16 sps:$4 sm:$0xff]   ;;  %v1842_v5 = vld [vmem:[%s2480_s3 + $0x74] ss:$8 sps:$4 sm:$0xff]  }
  0x23   : > { %797 = vmatprep.subr.bf16.mxu0 %v1780_v24  ;;  %840 = vmatprep.subr.bf16.mxu1 %v1782_v25  ;;  %v2236_v3 = vld [vmem:[%s2165_s20] sm:$0xff]  ;;  %v2239_v4 = vld [vmem:[%s2165_s20 + $0x10] sm:$0xff] }
  0x24   : > { %v1845_v6 = vld [vmem:[%s2480_s3 + $0x174] ss:$8 sps:$4 sm:$0xff]   ;;  %v377_v7 = vpack.c.bf16 %v2239_v4, %v2236_v3  ;;  %v1840_v8 = vld [vmem:[%s2480_s3 + $0x70] ss:$8 sps:$4 sm:$0xff]   ;;  %v1848_v10 = vld [vmem:[%s2480_s3 + $0x64] ss:$8 sps:$4 sm:$0xff]  }
  0x25   : > { %v1843_v9 = vld [vmem:[%s2480_s3 + $0x170] ss:$8 sps:$4 sm:$0xff]   ;;  %v1851_v11 = vld [vmem:[%s2480_s3 + $0x164] ss:$8 sps:$4 sm:$0xff]   ;;  %v1846_v12 = vld [vmem:[%s2480_s3 + $0x60] ss:$8 sps:$4 sm:$0xff]  }
  0x26   : > { %798 = vmatpush1.bf16.msra.mxu0 %v1784_v26  ;;  %841 = vmatpush1.bf16.msra.mxu1 %v1785_v27  ;;  %v1849_v13 = vld [vmem:[%s2480_s3 + $0x160] ss:$8 sps:$4 sm:$0xff]   ;;  %v1854_v14 = vld [vmem:[%s2480_s3 + $0x54] ss:$8 sps:$4 sm:$0xff]   ;;  %v1852_v16 = vld [vmem:[%s2480_s3 + $0x50] ss:$8 sps:$4 sm:$0xff]  }
  0x27   : > { %799 = vmatprep.subr.bf16.mxu0 %v1786_v28  ;;  %842 = vmatprep.subr.bf16.mxu1 %v1788_v29  ;;  %v1857_v15 = vld [vmem:[%s2480_s3 + $0x154] ss:$8 sps:$4 sm:$0xff]   ;;  %v1855_v17 = vld [vmem:[%s2480_s3 + $0x150] ss:$8 sps:$4 sm:$0xff]   ;;  %v1860_v18 = vld [vmem:[%s2480_s3 + $0x44] ss:$8 sps:$4 sm:$0xff]  }
  0x28   : > { %v1863_v19 = vld [vmem:[%s2480_s3 + $0x144] ss:$8 sps:$4 sm:$0xff]   ;;  %v1858_v20 = vld [vmem:[%s2480_s3 + $0x40] ss:$8 sps:$4 sm:$0xff]   ;;  %v1866_v22 = vld [vmem:[%s2480_s3 + $0x34] ss:$8 sps:$4 sm:$0xff]  }
  0x29   : > { %v1861_v21 = vld [vmem:[%s2480_s3 + $0x140] ss:$8 sps:$4 sm:$0xff]   ;;  %v1869_v23 = vld [vmem:[%s2480_s3 + $0x134] ss:$8 sps:$4 sm:$0xff]   ;;  %v1864_v24 = vld [vmem:[%s2480_s3 + $0x30] ss:$8 sps:$4 sm:$0xff]  }
  0x2a   : > { %800 = vmatpush1.bf16.msra.mxu0 %v1790_v30  ;;  %843 = vmatpush1.bf16.msra.mxu1 %v1791_v31  ;;  %v1867_v25 = vld [vmem:[%s2480_s3 + $0x130] ss:$8 sps:$4 sm:$0xff]   ;;  %v1872_v26 = vld [vmem:[%s2480_s3 + $0x24] ss:$8 sps:$4 sm:$0xff]   ;;  %v1870_v28 = vld [vmem:[%s2480_s3 + $0x20] ss:$8 sps:$4 sm:$0xff]  }
  0x2b   : > { %801 = vmatprep.subr.bf16.mxu0 %v1792_v32  ;;  %844 = vmatprep.subr.bf16.mxu1 %v1794_v33  ;;  %v1875_v27 = vld [vmem:[%s2480_s3 + $0x124] ss:$8 sps:$4 sm:$0xff]   ;;  %v1873_v29 = vld [vmem:[%s2480_s3 + $0x120] ss:$8 sps:$4 sm:$0xff]   ;;  %v1878_v30 = vld [vmem:[%s2480_s3 + $0x14] ss:$8 sps:$4 sm:$0xff]  }
  0x2c   : > { %v1881_v31 = vld [vmem:[%s2480_s3 + $0x114] ss:$8 sps:$4 sm:$0xff]   ;;  %v1876_v32 = vld [vmem:[%s2480_s3 + $0x10] ss:$8 sps:$4 sm:$0xff]  }
  0x2d   : > { %v1879_v33 = vld [vmem:[%s2480_s3 + $0x110] ss:$8 sps:$4 sm:$0xff]  }
  0x2e   : > { %802 = vmatpush2.bf16.msra.mxu0 %v1796_v34  ;;  %845 = vmatpush2.bf16.msra.mxu1 %v1797_v35  ;;  %v1884_v34 = vld [vmem:[%s2480_s3 + $0x4] ss:$8 sps:$4 sm:$0xff]   ;;  %v1903_v51 = vld [vmem:[%s2480_s3 + $0x1d0] ss:$8 sps:$4 sm:$0xff]  }
  0x2f   : > { %803 = vmatprep.subr.bf16.mxu0 %v1798_v36  ;;  %846 = vmatprep.subr.bf16.mxu1 %v1800_v37  ;;  %v1887_v35 = vld [vmem:[%s2480_s3 + $0x104] ss:$8 sps:$4 sm:$0xff]   ;;  %v1882_v36 = vld [vmem:[%s2480_s3] ss:$8 sps:$4 sm:$0xff]  }
  0x30   : > { %v1885_v37 = vld [vmem:[%s2480_s3 + $0x100] ss:$8 sps:$4 sm:$0xff]  }
  0x32   : > { %804 = vmatpush2.bf16.msra.mxu0 %v1802_v38  ;;  %847 = vmatpush2.bf16.msra.mxu1 %v1803_v39  ;;  %v1890_v38 = vld [vmem:[%s2480_s3 + $0xf4] ss:$8 sps:$4 sm:$0xff]  }
  0x33   : > { %805 = vmatprep.subr.bf16.mxu0 %v1804_v40  ;;  %848 = vmatprep.subr.bf16.mxu1 %v1806_v41  ;;  %v1893_v39 = vld [vmem:[%s2480_s3 + $0x1f4] ss:$8 sps:$4 sm:$0xff]   ;;  %v1888_v40 = vld [vmem:[%s2480_s3 + $0xf0] ss:$8 sps:$4 sm:$0xff]  }
  0x34   : > { %v1891_v41 = vld [vmem:[%s2480_s3 + $0x1f0] ss:$8 sps:$4 sm:$0xff]  }
  0x36   : > { %806 = vmatpush2.bf16.msra.mxu0 %v1808_v42  ;;  %849 = vmatpush2.bf16.msra.mxu1 %v1809_v43  ;;  %v1896_v42 = vld [vmem:[%s2480_s3 + $0xe4] ss:$8 sps:$4 sm:$0xff]  }
  0x37   : > { %807 = vmatprep.subr.bf16.mxu0 %v1810_v44  ;;  %850 = vmatprep.subr.bf16.mxu1 %v1812_v45  ;;  %v1899_v43 = vld [vmem:[%s2480_s3 + $0x1e4] ss:$8 sps:$4 sm:$0xff]   ;;  %v1894_v44 = vld [vmem:[%s2480_s3 + $0xe0] ss:$8 sps:$4 sm:$0xff]  }
  0x38   : > { %v1897_v45 = vld [vmem:[%s2480_s3 + $0x1e0] ss:$8 sps:$4 sm:$0xff]  }
  0x3a   : > { %808 = vmatpush2.bf16.msra.mxu0 %v1814_v47  ;;  %851 = vmatpush2.bf16.msra.mxu1 %v1815_v48  ;;  %v1902_v47 = vld [vmem:[%s2480_s3 + $0xd4] ss:$8 sps:$4 sm:$0xff]  }
  0x3b   : > { %809 = vmatprep.subr.bf16.mxu0 %v1816_v50  ;;  %852 = vmatprep.subr.bf16.mxu1 %v1818_v52  ;;  %v1905_v48 = vld [vmem:[%s2480_s3 + $0x1d4] ss:$8 sps:$4 sm:$0xff]   ;;  %v1900_v50 = vld [vmem:[%s2480_s3 + $0xd0] ss:$8 sps:$4 sm:$0xff]   ;;  %v1908_v52 = vld [vmem:[%s2480_s3 + $0xc4] ss:$8 sps:$4 sm:$0xff]  }
  0x3e   : > { %810 = vmatpush2.bf16.msra.mxu0 %v1820_v53  ;;  %853 = vmatpush2.bf16.msra.mxu1 %v1821_v54  ;;  %v1911_v53 = vld [vmem:[%s2480_s3 + $0x1c4] ss:$8 sps:$4 sm:$0xff]   ;;  %v1906_v54 = vld [vmem:[%s2480_s3 + $0xc0] ss:$8 sps:$4 sm:$0xff]  }
  0x3f   : > { %811 = vmatprep.subr.bf16.mxu0 %v1822_v55  ;;  %854 = vmatprep.subr.bf16.mxu1 %v1824_v56  ;;  %v1909_v55 = vld [vmem:[%s2480_s3 + $0x1c0] ss:$8 sps:$4 sm:$0xff]   ;;  %v1914_v56 = vld [vmem:[%s2480_s3 + $0xb4] ss:$8 sps:$4 sm:$0xff]  }
  0x42   : > { %812 = vmatpush2.bf16.msra.mxu0 %v1826_v57  ;;  %855 = vmatpush2.bf16.msra.mxu1 %v1827_v58  ;;  %v1917_v57 = vld [vmem:[%s2480_s3 + $0x1b4] ss:$8 sps:$4 sm:$0xff]   ;;  %v1912_v58 = vld [vmem:[%s2480_s3 + $0xb0] ss:$8 sps:$4 sm:$0xff]  }
  0x43   : > { %813 = vmatprep.subr.bf16.mxu0 %v1828_v59  ;;  %856 = vmatprep.subr.bf16.mxu1 %v1830_v60  ;;  %v1915_v59 = vld [vmem:[%s2480_s3 + $0x1b0] ss:$8 sps:$4 sm:$0xff]   ;;  %v1920_v60 = vld [vmem:[%s2480_s3 + $0xa4] ss:$8 sps:$4 sm:$0xff]  }
  0x46   : > { %814 = vmatpush2.bf16.msra.mxu0 %v1832_v61  ;;  %857 = vmatpush2.bf16.msra.mxu1 %v1833_v62  ;;  %v1923_v61 = vld [vmem:[%s2480_s3 + $0x1a4] ss:$8 sps:$4 sm:$0xff]   ;;  %v1918_v62 = vld [vmem:[%s2480_s3 + $0xa0] ss:$8 sps:$4 sm:$0xff]  }
  0x47   : > { %815 = vmatprep.subr.bf16.mxu0 %v1834_v63  ;;  %858 = vmatprep.subr.bf16.mxu1 %v1836_v0  ;;  %v1921_v63 = vld [vmem:[%s2480_s3 + $0x1a0] ss:$8 sps:$4 sm:$0xff]   ;;  %v1926_v0 = vld [vmem:[%s2480_s3 + $0x94] ss:$8 sps:$4 sm:$0xff]  }
  0x4a   : > { %816 = vmatpush2.bf16.msra.mxu0 %v1838_v1  ;;  %859 = vmatpush2.bf16.msra.mxu1 %v1839_v2  ;;  %v1929_v1 = vld [vmem:[%s2480_s3 + $0x194] ss:$8 sps:$4 sm:$0xff]   ;;  %v1924_v2 = vld [vmem:[%s2480_s3 + $0x90] ss:$8 sps:$4 sm:$0xff]  }
  0x4b   : > { %1271 = vmatprep.subr.bf16.mxu0 %v1842_v5  ;;  %1314 = vmatprep.subr.bf16.mxu1 %v1845_v6  ;;  %v1927_v5 = vld [vmem:[%s2480_s3 + $0x190] ss:$8 sps:$4 sm:$0xff]   ;;  %v1932_v6 = vld [vmem:[%s2480_s3 + $0x84] ss:$8 sps:$4 sm:$0xff]  }
  0x4d   : > { %818 = vmatmul.mubr.bf16.vlgmr.msra.gmra.mxu0 %v377_v7  ;;  %861 = vmatmul.mubr.bf16.vlgmr.msra.gmra.mxu1 %v377_v7  ;;  %v1935_v7 = vld [vmem:[%s2480_s3 + $0x184] ss:$8 sps:$4 sm:$0xff]  }
  0x4e   : > { %1272 = vmatpush1.bf16.msra.mxu0 %v1840_v8  ;;  %1315 = vmatpush1.bf16.msra.mxu1 %v1843_v9  ;;  %v1930_v8 = vld [vmem:[%s2480_s3 + $0x80] ss:$8 sps:$4 sm:$0xff]  }
  0x4f   : > { %1273 = vmatprep.subr.bf16.mxu0 %v1848_v10  ;;  %1316 = vmatprep.subr.bf16.mxu1 %v1851_v11  ;;  %v1933_v9 = vld [vmem:[%s2480_s3 + $0x180] ss:$8 sps:$4 sm:$0xff]   ;;  %v445_v10 = vlaneseq }
  0x51   : > { %v446_v11 = vshrl.u32 %v445_v10, 7 }
  0x52   : > { %1274 = vmatpush1.bf16.msra.mxu0 %v1846_v12  ;;  %1317 = vmatpush1.bf16.msra.mxu1 %v1849_v13 }
  0x53   : > { %1275 = vmatprep.subr.bf16.mxu0 %v1854_v14  ;;  %1318 = vmatprep.subr.bf16.mxu1 %v1857_v15  ;;  %v2435_v12 = vsub.s32 1, %v446_v11  ;;  %v459_v13 = vsub.s32 3, %v446_v11  ;;  %v2437_v14 = vsub.s32 0, %v446_v11  ;;  %v455_v15 = vsub.s32 2, %v446_v11 }
  0x56   : > { %1276 = vmatpush1.bf16.msra.mxu0 %v1852_v16  ;;  %1319 = vmatpush1.bf16.msra.mxu1 %v1855_v17  ;;  %v443_v16 = vld [vmem:[%s2479_s2] sm:$0xf] }
  0x57   : > { %1277 = vmatprep.subr.bf16.mxu0 %v1860_v18  ;;  %1320 = vmatprep.subr.bf16.mxu1 %v1863_v19  ;;  %v452_v19 = vrot.slane %v443_v16, %v2435_v12 }
  0x5a   : > { %1278 = vmatpush1.bf16.msra.mxu0 %v1858_v20  ;;  %1321 = vmatpush1.bf16.msra.mxu1 %v1861_v21  ;;  %v460_v20 = vrot.slane %v443_v16, %v459_v13  ;;  %v448_v21 = vrot.slane %v443_v16, %v2437_v14 }
  0x5b   : > { %1279 = vmatprep.subr.bf16.mxu0 %v1866_v22  ;;  %1322 = vmatprep.subr.bf16.mxu1 %v1869_v23  ;;  %v456_v22 = vrot.slane %v443_v16, %v455_v15 }
  0x5e   : > { %1280 = vmatpush1.bf16.msra.mxu0 %v1864_v24  ;;  %1323 = vmatpush1.bf16.msra.mxu1 %v1867_v25 }
  0x5f   : > { %1281 = vmatprep.subr.bf16.mxu0 %v1872_v26  ;;  %1324 = vmatprep.subr.bf16.mxu1 %v1875_v27 }
  0x62   : > { %1282 = vmatpush1.bf16.msra.mxu0 %v1870_v28  ;;  %1325 = vmatpush1.bf16.msra.mxu1 %v1873_v29 }
  0x63   : > { %1283 = vmatprep.subr.bf16.mxu0 %v1878_v30  ;;  %1326 = vmatprep.subr.bf16.mxu1 %v1881_v31 }
  0x66   : > { %1284 = vmatpush1.bf16.msra.mxu0 %v1876_v32  ;;  %1327 = vmatpush1.bf16.msra.mxu1 %v1879_v33 }
  0x67   : > { %1285 = vmatprep.subr.bf16.mxu0 %v1884_v34  ;;  %1328 = vmatprep.subr.bf16.mxu1 %v1887_v35 }
  0x6a   : > { %1286 = vmatpush1.bf16.msra.mxu0 %v1882_v36  ;;  %1329 = vmatpush1.bf16.msra.mxu1 %v1885_v37 }
  0x6b   : > { %1287 = vmatprep.subr.bf16.mxu0 %v1890_v38  ;;  %1330 = vmatprep.subr.bf16.mxu1 %v1893_v39 }
  0x6e   : > { %1288 = vmatpush2.bf16.msra.mxu0 %v1888_v40  ;;  %1331 = vmatpush2.bf16.msra.mxu1 %v1891_v41 }
  0x6f   : > { %1289 = vmatprep.subr.bf16.mxu0 %v1896_v42  ;;  %1332 = vmatprep.subr.bf16.mxu1 %v1899_v43 }
  0x72   : > { %1290 = vmatpush2.bf16.msra.mxu0 %v1894_v44  ;;  %1333 = vmatpush2.bf16.msra.mxu1 %v1897_v45 }
  0x73   : > { %1291 = vmatprep.subr.bf16.mxu0 %v1902_v47  ;;  %1334 = vmatprep.subr.bf16.mxu1 %v1905_v48 }
  0x76   : > { %1292 = vmatpush2.bf16.msra.mxu0 %v1900_v50  ;;  %1335 = vmatpush2.bf16.msra.mxu1 %v1903_v51  ;;  %v1372_v51 = vld [vmem:[%s2481_s4] sm:$0x3] }
  0x77   : > { %1293 = vmatprep.subr.bf16.mxu0 %v1908_v52  ;;  %1336 = vmatprep.subr.bf16.mxu1 %v1911_v53  ;;  %v1377_v52 = vrot.slane %v1372_v51, %v2437_v14 }
  0x7a   : > { %1294 = vmatpush2.bf16.msra.mxu0 %v1906_v54  ;;  %1337 = vmatpush2.bf16.msra.mxu1 %v1909_v55 }
  0x7b   : > { %1295 = vmatprep.subr.bf16.mxu0 %v1914_v56  ;;  %1338 = vmatprep.subr.bf16.mxu1 %v1917_v57  ;;  %v1381_v56 = vrot.slane %v1372_v51, %v2435_v12 }
  0x7e   : > { %1296 = vmatpush2.bf16.msra.mxu0 %v1912_v58  ;;  %1339 = vmatpush2.bf16.msra.mxu1 %v1915_v59 }
  0x7f   : > { %1297 = vmatprep.subr.bf16.mxu0 %v1920_v60  ;;  %1340 = vmatprep.subr.bf16.mxu1 %v1923_v61 }
  0x82   : > { %1298 = vmatpush2.bf16.msra.mxu0 %v1918_v62  ;;  %1341 = vmatpush2.bf16.msra.mxu1 %v1921_v63 }
  0x83   : > { %1299 = vmatprep.subr.bf16.mxu0 %v1926_v0  ;;  %1342 = vmatprep.subr.bf16.mxu1 %v1929_v1 }
  0x86   : > { %1300 = vmatpush2.bf16.msra.mxu0 %v1924_v2  ;;  %1343 = vmatpush2.bf16.msra.mxu1 %v1927_v5 }
  0x87   : > { %1301 = vmatprep.subr.bf16.mxu0 %v1932_v6  ;;  %1344 = vmatprep.subr.bf16.mxu1 %v1935_v7 }
  0x8a   : > { %1302 = vmatpush2.bf16.msra.mxu0 %v1930_v8  ;;  %1345 = vmatpush2.bf16.msra.mxu1 %v1933_v9 }
 0x10d   : > { %v819_v17 = vpop.f32.mrf.mxu0  ;;  %v862_v18 = vpop.f32.mrf.mxu1 }
 0x10e   : > { %v820_v31 = vadd.f32 %v819_v17, %v448_v21  ;;  %v863_v32 = vadd.f32 %v862_v18, %v456_v22 }
 0x10f   : > { %v821_v23 = vpop.f32.mrf.mxu0  ;;  %v864_v24 = vpop.f32.mrf.mxu1 }
 0x110   : > { %v822_v27 = vadd.f32 %v821_v23, %v452_v19  ;;  %v865_v28 = vadd.f32 %v864_v24, %v460_v20  ;;  %v871_v43 = vmax.f32 %v820_v31, 0.0  ;;  %v873_v44 = vmax.f32 %v863_v32, 0.0  ;;  %v1429_v32 = vld [vmem:[%s2482_s5] sm:$0x3] }
 0x111   : > { %v823_v25 = vpop.f32.mrf.mxu0  ;;  %v866_v26 = vpop.f32.mrf.mxu1 }
 0x112   : > { %v824_v29 = vadd.f32 %v823_v25, %v448_v21  ;;  %v867_v30 = vadd.f32 %v866_v26, %v456_v22  ;;  %v872_v39 = vmax.f32 %v822_v27, 0.0  ;;  %v874_v40 = vmax.f32 %v865_v28, 0.0 }
 0x113   : > { %v825_v33 = vpop.f32.mrf.mxu0  ;;  %v868_v34 = vpop.f32.mrf.mxu1 }
 0x114   : > { %v826_v35 = vadd.f32 %v825_v33, %v452_v19  ;;  %v869_v36 = vadd.f32 %v868_v34, %v460_v20  ;;  %v875_v37 = vmax.f32 %v824_v29, 0.0  ;;  %v877_v38 = vmax.f32 %v867_v30, 0.0  ;;  %v1445_v33 = vld [vmem:[%s2483_s6] sm:$0x3] }
 0x115   : > { %v1434_v34 = vrot.slane %v1429_v32, %v2437_v14 }
 0x116   : > { %v876_v41 = vmax.f32 %v826_v35, 0.0  ;;  %v878_v42 = vmax.f32 %v869_v36, 0.0  ;;  %v883_v48 = vpack.c.bf16 %v875_v37, %v871_v43  ;;  %v885_v50 = vpack.c.bf16 %v877_v38, %v873_v44 }
 0x117   : > { %v1438_v35 = vrot.slane %v1429_v32, %v2435_v12  ;;  %v1450_v37 = vrot.slane %v1445_v33, %v2437_v14  ;;  %v1454_v38 = vrot.slane %v1445_v33, %v2435_v12 }
 0x118   : > { %v884_v45 = vpack.c.bf16 %v876_v41, %v872_v39  ;;  %v886_v47 = vpack.c.bf16 %v878_v42, %v874_v40 }
 0x11a   : > { %1303 = vmatprep.mubr.bf16.mxu0 %v884_v45  ;;  %1346 = vmatprep.mubr.bf16.mxu1 %v886_v47 }
 0x11b   : > { %1304 = vmatmul.mubr.bf16.vlgmr.msra.gmra.mxu0 %v883_v48  ;;  %1347 = vmatmul.mubr.bf16.vlgmr.msra.gmra.mxu1 %v885_v50 }
 0x1db   : > { %v1305_v53 = vpop.f32.mrf.mxu0  ;;  %v1348_v54 = vpop.f32.mrf.mxu1 }
 0x1dc   : > { %v1349_v55 = vadd.f32 %v1348_v54, %v1305_v53 }
 0x1dd   : > { %v1307_v57 = vpop.f32.mrf.mxu0  ;;  %v1350_v58 = vpop.f32.mrf.mxu1 }
 0x1de   : > { %v1384_v59 = vadd.f32 %v1377_v52, %v1349_v55  ;;  %v1351_v60 = vadd.f32 %v1350_v58, %v1307_v57 }
 0x1df   : > { %v1309_v61 = vpop.f32.mrf.mxu0  ;;  %v1352_v62 = vpop.f32.mrf.mxu1 }
 0x1e0   : > { %v1385_v63 = vadd.f32 %v1381_v56, %v1351_v60  ;;  %v1353_v0 = vadd.f32 %v1352_v62, %v1309_v61  ;;  %v1392_v7 = vadd.f32 %v1384_v59, %v2236_v3 }
 0x1e1   : > { %v1311_v1 = vpop.f32.mrf.mxu0  ;;  %v1354_v2 = vpop.f32.mrf.mxu1 }
 0x1e2   : > { %v1386_v5 = vadd.f32 %v1377_v52, %v1353_v0  ;;  %v1355_v6 = vadd.f32 %v1354_v2, %v1311_v1  ;;  %v1393_v8 = vadd.f32 %v1385_v63, %v2174_v46 }
 0x1e4   : > { %v1387_v9 = vadd.f32 %v1381_v56, %v1355_v6  ;;  %v1396_v10 = vadd.f32 %v1393_v8, %v1392_v7  ;;  %v1394_v11 = vadd.f32 %v1386_v5, %v2239_v4 }
 0x1e6   : > { %1397 = vadd.xlane.f32.xlu0 %v1396_v10  ;;  %v1395_v13 = vadd.f32 %v1387_v9, %v2183_v49 }
 0x1e8   : > { %v1399_v15 = vadd.f32 %v1395_v13, %v1394_v11 }
 0x1ea   : > { %1400 = vadd.xlane.f32.xlu0 %v1399_v15 }
 0x26f   : > { %v1398_v16 = vpop.xlane.xlu0 %1397 }
 0x270   : > { %v1403_v17 = vmul.f32 0.00390625, %v1398_v16 }
 0x272   : > { %v1405_v18 = vsub.f32 %v1392_v7, %v1403_v17  ;;  %v1406_v19 = vsub.f32 %v1393_v8, %v1403_v17 }
 0x273   : > { %v1401_v20 = vpop.xlane.xlu0 %1400 }
 0x274   : > { %v1404_v21 = vmul.f32 0.00390625, %v1401_v20  ;;  %v1409_v22 = vmul.f32 %v1405_v18, %v1405_v18  ;;  %v1410_v23 = vmul.f32 %v1406_v19, %v1406_v19 }
 0x276   : > { %v1407_v3 = vsub.f32 %v1394_v11, %v1404_v21  ;;  %v1408_v24 = vsub.f32 %v1395_v13, %v1404_v21  ;;  %v1413_v46 = vadd.f32 %v1410_v23, %v1409_v22 }
 0x278   : > { %1414 = vadd.xlane.f32.xlu1 %v1413_v46  ;;  %v1411_v25 = vmul.f32 %v1407_v3, %v1407_v3  ;;  %v1412_v26 = vmul.f32 %v1408_v24, %v1408_v24 }
 0x27a   : > { %v1416_v27 = vadd.f32 %v1412_v26, %v1411_v25 }
 0x27c   : > { %1417 = vadd.xlane.f32.xlu1 %v1416_v27 }
 0x301   : > { %v1415_v4 = vpop.xlane.xlu1 %1414 }
 0x302   : > { %v1419_v49 = vmul.f32 0.00390625, %v1415_v4 }
 0x304   : > { %v1421_v28 = vadd.f32 1e-06, %v1419_v49 }
 0x305   : > { %v1418_v29 = vpop.xlane.xlu1 %1417 }
 0x306   : > { %1936 = vrsqrt.f32 %v1421_v28  ;;  %v1420_v30 = vmul.f32 0.00390625, %v1418_v29 }
 0x308   : > { %v1422_v31 = vadd.f32 1e-06, %v1420_v30 }
 0x30a   : > { %1938 = vrsqrt.f32 %v1422_v31 }
 0x313   : > { %v1937_v36 = vpop.eup %1936 }
 0x314   : > { %v1425_v39 = vmul.f32 %v1937_v36, %v1405_v18  ;;  %v1426_v40 = vmul.f32 %v1937_v36, %v1406_v19 }
 0x316   : > { %v1441_v41 = vmul.f32 %v1434_v34, %v1425_v39  ;;  %v1442_v42 = vmul.f32 %v1438_v35, %v1426_v40 }
 0x317   : > { %v1939_v43 = vpop.eup %1938 }
 0x318   : > { %v1457_v44 = vadd.f32 %v1450_v37, %v1441_v41  ;;  %v1458_v45 = vadd.f32 %v1454_v38, %v1442_v42  ;;  %v1427_v47 = vmul.f32 %v1939_v43, %v1407_v3  ;;  %v1428_v48 = vmul.f32 %v1939_v43, %v1408_v24 }
 0x31a   : > { %1461 = vst [vmem:[%s363_s21] sm:$0xff] %v1457_v44  ;;  %1462 = vst [vmem:[%s363_s21 + $0x8] sm:$0xff] %v1458_v45  ;;  %v1443_v50 = vmul.f32 %v1434_v34, %v1427_v47  ;;  %v1444_v14 = vmul.f32 %v1438_v35, %v1428_v48 }
 0x31c   : > { %v1459_v51 = vadd.f32 %v1450_v37, %v1443_v50  ;;  %v1460_v12 = vadd.f32 %v1454_v38, %v1444_v14 }
 0x31e   : > { %1463 = vst [vmem:[%s363_s21 + $0x10] sm:$0xff] %v1459_v51  ;;  %1464 = vst [vmem:[%s363_s21 + $0x18] sm:$0xff] %v1460_v12 }
 0x31f PF: > { %s17_s26 = sadd.s32 1, %s1962_s26   ;;  %s2485_s24 = smov %s1958_s25 }
 0x320   : > { %p14_p5 = scmp.ge.s32.totalorder %s17_s26, 4   ;;  %s2486_s25 = smov %s2488_s27 }
 0x322   :  { %16 = sbr.rel (!%p14_p5) target bundleno = 2 (0x2), region = 95 }

// kernel: encoder_forward.17
= control target key start
LH: loop header
LB: loop body
LE: loop exit
PB: predicated region body
PF: predicated region fallthrough
CT: control target
= control target key end

     0   :  { %12 = vsyncpa [#allocation4], 0  ;;  %s2654_s0 = inlined_call_operand.vmem [shape: f32[32,256], index: 0, kind: input, shape index: {}]   ;;  %s2655_s1 = inlined_call_operand.vmem [shape: bf16[256,512], index: 1, kind: input, shape index: {}]   ;;  %s2656_s2 = inlined_call_operand.vmem [shape: f32[1,512], index: 2, kind: input, shape index: {}]   ;;  %s2657_s3 = inlined_call_operand.vmem [shape: bf16[512,256], index: 3, kind: input, shape index: {}]   ;;  %s2658_s4 = inlined_call_operand.vmem [shape: f32[1,256], index: 4, kind: input, shape index: {}]   ;;  %s2659_s5 = inlined_call_operand.vmem [shape: f32[1,256], index: 5, kind: input, shape index: {}]   ;;  %s2660_s6 = inlined_call_operand.vmem [shape: f32[1,256], index: 6, kind: input, shape index: {}]   ;;  %s2661_s7 = inlined_call_operand.hbm [shape: f32[32,256], index: 7, kind: output, shape index: {}]  }
   0x1   :  { %14 = vsyncpa [#allocation4 + $0x1], 0  ;;  %s2111_s24 = smov 0   ;;  %s2113_s25 = smov 0  }
   0x2   :  { %s2115_s26 = smov 0   ;;  %s2117_s27 = smov 0  }
   0x3   :  { %s2119_s28 = smov 0   ;;  %s2121_s29 = smov 0  }
   0x4 LB: > { %s1588_s30 = sadd.s32 4294967295, %s2066_s29   ;;  %s1589_s8 = sadd.s32 4294967294, %s2066_s29   ;;  %s2066_s29 = sphi %s2121_s29, %s20_s29   ;;  %s2062_s28 = sphi %s2119_s28, %s2668_s28   ;;  %s2058_s27 = sphi %s2117_s27, %s2667_s27   ;;  %s2054_s26 = sphi %s2115_s26, %s2666_s26   ;;  %s2050_s25 = sphi %s2113_s25, %s2665_s25   ;;  %s2046_s24 = sphi %s2111_s24, %s2664_s24  }
   0x5   : > { %s32_s9 = sadd.s32 1, %s2062_s28  ;;  %s206_s10 = sadd.s32 1, %s2054_s26 }
   0x6   : > { %p34_p0 = scmp.ge.s32.totalorder %s32_s9, 2  ;;  %p216_p1 = scmp.ne.s32.totalorder %s2054_s26, %s2050_s25 }
   0x7   : > { %p217_p2 = scmp.eq.s32.totalorder %s1588_s30, 1  ;;  %p222_p3 = scmp.ne.s32.totalorder %s2050_s25, %s2046_s24 }
   0x8   : > { %s2670_s9 = smov (%p34_p0, %s32_s9), 0  ;;  %p223_p5 = scmp.eq.s32.totalorder %s1589_s8, 1 }
   0x9   : > { %p2151_p4 = por %p217_p2, %p216_p1  ;;  %s203_s12 = ssub.s32 %s2062_s28, %s2670_s9 }
   0xa   : > { %p1595_p6 = scmp.ge.s32.totalorder %s2066_s29, 1  ;;  %p204_p7 = scmp.eq.s32.totalorder %s203_s12, 0 }
   0xb   : > { %p2158_p8 = por %p223_p5, %p222_p3  ;;  %p287_p9 = scmp.lt.s32.totalorder %s2066_s29, 3 }
   0xc   : > { %s2164_s14 = scalar_select %p204_p7, %s2054_s26, %s206_s10  }
   0xd   : > { %p288_p10 = pnand %p1595_p6, %p287_p9 }
   0xe   : > { %s1597_s23 = sshll.u32 (!%p288_p10), %s2058_s27, 1  ;;  %s1736_s17 = sshll.u32 (!%p288_p10), %s2058_s27, 9 }
   0xf   : > { %291 = sbr.rel (%p288_p10) target bundleno = 820 (0x334), region = 48  ;;  %p336_p11 = scmp.lt.s32.totalorder (!%p288_p10), %s1597_s23, 3 }
  0x10   : > { %s2605_s30 = scalar_lea.hbm (!%p288_p10), %s2661_s7, %s1736_s17 }
  0x14   : > { %v1794_v0 = vld [vmem:[%s2655_s1 + $0xe4] ss:$16 sps:$4 sm:$0xff]   ;;  %v1796_v1 = vld [vmem:[%s2655_s1 + $0xec] ss:$16 sps:$4 sm:$0xff]   ;;  %v1798_v2 = vld [vmem:[%s2655_s1 + $0xe0] ss:$16 sps:$4 sm:$0xff]  }
  0x15   : > { %781 = vmatprep.subr.bf16.mxu0 %v1794_v0  ;;  %v1799_v3 = vld [vmem:[%s2655_s1 + $0xe8] ss:$16 sps:$4 sm:$0xff]   ;;  %824 = vmatprep.subr.bf16.mxu1 %v1796_v1  ;;  %v1800_v4 = vld [vmem:[%s2655_s1 + $0xc4] ss:$16 sps:$4 sm:$0xff]   ;;  %v1802_v5 = vld [vmem:[%s2655_s1 + $0xcc] ss:$16 sps:$4 sm:$0xff]  }
  0x16   : > { %782 = vmatpush1.bf16.msra.mxu0 %v1798_v2  ;;  %825 = vmatpush1.bf16.msra.mxu1 %v1799_v3  ;;  %v1804_v6 = vld [vmem:[%s2655_s1 + $0xc0] ss:$16 sps:$4 sm:$0xff]   ;;  %v1805_v7 = vld [vmem:[%s2655_s1 + $0xc8] ss:$16 sps:$4 sm:$0xff]   ;;  %v1806_v8 = vld [vmem:[%s2655_s1 + $0xa4] ss:$16 sps:$4 sm:$0xff]  }
  0x17   : > { %783 = vmatprep.subr.bf16.mxu0 %v1800_v4  ;;  %826 = vmatprep.subr.bf16.mxu1 %v1802_v5  ;;  %v1808_v9 = vld [vmem:[%s2655_s1 + $0xac] ss:$16 sps:$4 sm:$0xff]   ;;  %v1810_v10 = vld [vmem:[%s2655_s1 + $0xa0] ss:$16 sps:$4 sm:$0xff]   ;;  %v1811_v11 = vld [vmem:[%s2655_s1 + $0xa8] ss:$16 sps:$4 sm:$0xff]  }
  0x18   : > { %v1812_v12 = vld [vmem:[%s2655_s1 + $0x84] ss:$16 sps:$4 sm:$0xff]   ;;  %v1814_v13 = vld [vmem:[%s2655_s1 + $0x8c] ss:$16 sps:$4 sm:$0xff]   ;;  %v1816_v14 = vld [vmem:[%s2655_s1 + $0x80] ss:$16 sps:$4 sm:$0xff]  }
  0x19   : > { %v1817_v15 = vld [vmem:[%s2655_s1 + $0x88] ss:$16 sps:$4 sm:$0xff]   ;;  %v1818_v16 = vld [vmem:[%s2655_s1 + $0x64] ss:$16 sps:$4 sm:$0xff]   ;;  %v1820_v17 = vld [vmem:[%s2655_s1 + $0x6c] ss:$16 sps:$4 sm:$0xff]  }
  0x1a   : > { %784 = vmatpush1.bf16.msra.mxu0 %v1804_v6  ;;  %827 = vmatpush1.bf16.msra.mxu1 %v1805_v7  ;;  %v1822_v18 = vld [vmem:[%s2655_s1 + $0x60] ss:$16 sps:$4 sm:$0xff]   ;;  %v1823_v19 = vld [vmem:[%s2655_s1 + $0x68] ss:$16 sps:$4 sm:$0xff]   ;;  %v1824_v20 = vld [vmem:[%s2655_s1 + $0x44] ss:$16 sps:$4 sm:$0xff]  }
  0x1b   : > { %785 = vmatprep.subr.bf16.mxu0 %v1806_v8  ;;  %828 = vmatprep.subr.bf16.mxu1 %v1808_v9  ;;  %v1826_v21 = vld [vmem:[%s2655_s1 + $0x4c] ss:$16 sps:$4 sm:$0xff]   ;;  %v1828_v22 = vld [vmem:[%s2655_s1 + $0x40] ss:$16 sps:$4 sm:$0xff]   ;;  %v1829_v23 = vld [vmem:[%s2655_s1 + $0x48] ss:$16 sps:$4 sm:$0xff]  }
  0x1c   : > { %v1830_v24 = vld [vmem:[%s2655_s1 + $0x24] ss:$16 sps:$4 sm:$0xff]   ;;  %v1832_v25 = vld [vmem:[%s2655_s1 + $0x2c] ss:$16 sps:$4 sm:$0xff]   ;;  %v1834_v26 = vld [vmem:[%s2655_s1 + $0x20] ss:$16 sps:$4 sm:$0xff]  }
  0x1d   : > { %v1835_v27 = vld [vmem:[%s2655_s1 + $0x28] ss:$16 sps:$4 sm:$0xff]   ;;  %v1836_v28 = vld [vmem:[%s2655_s1 + $0x4] ss:$16 sps:$4 sm:$0xff]   ;;  %v1838_v29 = vld [vmem:[%s2655_s1 + $0xc] ss:$16 sps:$4 sm:$0xff]  }
  0x1e   : > { %786 = vmatpush1.bf16.msra.mxu0 %v1810_v10  ;;  %829 = vmatpush1.bf16.msra.mxu1 %v1811_v11  ;;  %v1840_v30 = vld [vmem:[%s2655_s1] ss:$16 sps:$4 sm:$0xff]   ;;  %v1841_v31 = vld [vmem:[%s2655_s1 + $0x8] ss:$16 sps:$4 sm:$0xff]   ;;  %v1842_v32 = vld [vmem:[%s2655_s1 + $0x1e4] ss:$16 sps:$4 sm:$0xff]  }
  0x1f   : > { %787 = vmatprep.subr.bf16.mxu0 %v1812_v12  ;;  %830 = vmatprep.subr.bf16.mxu1 %v1814_v13  ;;  %v1844_v33 = vld [vmem:[%s2655_s1 + $0x1ec] ss:$16 sps:$4 sm:$0xff]   ;;  %v1846_v34 = vld [vmem:[%s2655_s1 + $0x1e0] ss:$16 sps:$4 sm:$0xff]   ;;  %v1847_v35 = vld [vmem:[%s2655_s1 + $0x1e8] ss:$16 sps:$4 sm:$0xff]  }
  0x20   : > { %v1848_v36 = vld [vmem:[%s2655_s1 + $0x1c4] ss:$16 sps:$4 sm:$0xff]   ;;  %s2672_s23 = smov (!%p336_p11, %s1597_s23), 3  ;;  %v1850_v37 = vld [vmem:[%s2655_s1 + $0x1cc] ss:$16 sps:$4 sm:$0xff]  }
  0x21   : > { %v1852_v38 = vld [vmem:[%s2655_s1 + $0x1c0] ss:$16 sps:$4 sm:$0xff]   ;;  %v1853_v39 = vld [vmem:[%s2655_s1 + $0x1c8] ss:$16 sps:$4 sm:$0xff]   ;;  %v1854_v40 = vld [vmem:[%s2655_s1 + $0x1a4] ss:$16 sps:$4 sm:$0xff]  }
  0x22   : > { %788 = vmatpush1.bf16.msra.mxu0 %v1816_v14  ;;  %831 = vmatpush1.bf16.msra.mxu1 %v1817_v15  ;;  %s1734_s21 = sshll.u32 %s2672_s23, 4  ;;  %v1856_v41 = vld [vmem:[%s2655_s1 + $0x1ac] ss:$16 sps:$4 sm:$0xff]   ;;  %v1858_v42 = vld [vmem:[%s2655_s1 + $0x1a0] ss:$16 sps:$4 sm:$0xff]  }
  0x23   : > { %789 = vmatprep.subr.bf16.mxu0 %v1818_v16  ;;  %832 = vmatprep.subr.bf16.mxu1 %v1820_v17  ;;  %v1859_v43 = vld [vmem:[%s2655_s1 + $0x1a8] ss:$16 sps:$4 sm:$0xff]   ;;  %s2302_s18 = scalar_lea.vmem %s2654_s0, %s1734_s21  ;;  %v1860_v44 = vld [vmem:[%s2655_s1 + $0x184] ss:$16 sps:$4 sm:$0xff]   ;;  %v1862_v45 = vld [vmem:[%s2655_s1 + $0x18c] ss:$16 sps:$4 sm:$0xff]  }
  0x24   : > { %v2311_v46 = vld [vmem:[%s2302_s18 + $0x8] sm:$0xff]  ;;  %v1864_v47 = vld [vmem:[%s2655_s1 + $0x180] ss:$16 sps:$4 sm:$0xff]   ;;  %v2320_v49 = vld [vmem:[%s2302_s18 + $0x18] sm:$0xff]  ;;  %s2068_s21 = smov [#allocation3]  }
  0x25   : > { %v1865_v48 = vld [vmem:[%s2655_s1 + $0x188] ss:$16 sps:$4 sm:$0xff]   ;;  %v1866_v50 = vld [vmem:[%s2655_s1 + $0x164] ss:$16 sps:$4 sm:$0xff]   ;;  %v374_v51 = vpack.c.bf16 %v2320_v49, %v2311_v46  ;;  %v1868_v52 = vld [vmem:[%s2655_s1 + $0x16c] ss:$16 sps:$4 sm:$0xff]  }
  0x26   : > { %790 = vmatpush1.bf16.msra.mxu0 %v1822_v18  ;;  %833 = vmatpush1.bf16.msra.mxu1 %v1823_v19  ;;  %v1870_v53 = vld [vmem:[%s2655_s1 + $0x160] ss:$16 sps:$4 sm:$0xff]   ;;  %v1871_v54 = vld [vmem:[%s2655_s1 + $0x168] ss:$16 sps:$4 sm:$0xff]   ;;  %v1872_v55 = vld [vmem:[%s2655_s1 + $0x144] ss:$16 sps:$4 sm:$0xff]  }
  0x27   : > { %791 = vmatprep.subr.bf16.mxu0 %v1824_v20  ;;  %834 = vmatprep.subr.bf16.mxu1 %v1826_v21  ;;  %v1874_v56 = vld [vmem:[%s2655_s1 + $0x14c] ss:$16 sps:$4 sm:$0xff]   ;;  %v1876_v57 = vld [vmem:[%s2655_s1 + $0x140] ss:$16 sps:$4 sm:$0xff]   ;;  %v1877_v58 = vld [vmem:[%s2655_s1 + $0x148] ss:$16 sps:$4 sm:$0xff]  }
  0x28   : > { %813 = vmatprep.mubr.bf16.mxu0 %v374_v51  ;;  %856 = vmatprep.mubr.bf16.mxu1 %v374_v51  ;;  %v1878_v59 = vld [vmem:[%s2655_s1 + $0x124] ss:$16 sps:$4 sm:$0xff]   ;;  %v1880_v60 = vld [vmem:[%s2655_s1 + $0x12c] ss:$16 sps:$4 sm:$0xff]   ;;  %v1882_v61 = vld [vmem:[%s2655_s1 + $0x120] ss:$16 sps:$4 sm:$0xff]  }
  0x29   : > { %v1883_v62 = vld [vmem:[%s2655_s1 + $0x128] ss:$16 sps:$4 sm:$0xff]   ;;  %v1884_v63 = vld [vmem:[%s2655_s1 + $0x104] ss:$16 sps:$4 sm:$0xff]   ;;  %v1886_v0 = vld [vmem:[%s2655_s1 + $0x10c] ss:$16 sps:$4 sm:$0xff]  }
  0x2a   : > { %792 = vmatpush1.bf16.msra.mxu0 %v1828_v22  ;;  %835 = vmatpush1.bf16.msra.mxu1 %v1829_v23  ;;  %v1888_v1 = vld [vmem:[%s2655_s1 + $0x100] ss:$16 sps:$4 sm:$0xff]   ;;  %v1889_v2 = vld [vmem:[%s2655_s1 + $0x108] ss:$16 sps:$4 sm:$0xff]   ;;  %v1892_v5 = vld [vmem:[%s2657_s3 + $0x74] ss:$8 sps:$4 sm:$0xff]  }
  0x2b   : > { %793 = vmatprep.subr.bf16.mxu0 %v1830_v24  ;;  %836 = vmatprep.subr.bf16.mxu1 %v1832_v25  ;;  %v2373_v3 = vld [vmem:[%s2302_s18] sm:$0xff]  ;;  %v2376_v4 = vld [vmem:[%s2302_s18 + $0x10] sm:$0xff]  ;;  %s332_s18 = sand.u32 1, %s2050_s25   ;;  %s1994_s10 = sshll.u32 %s2068_s21, 4  ;;  %s1995_s10 = int_to_ptr.vmem [resolvable:$false] %s1994_s10 }
  0x2c   : > { %v1895_v6 = vld [vmem:[%s2657_s3 + $0x174] ss:$8 sps:$4 sm:$0xff]   ;;  %v373_v7 = vpack.c.bf16 %v2376_v4, %v2373_v3  ;;  %v1890_v8 = vld [vmem:[%s2657_s3 + $0x70] ss:$8 sps:$4 sm:$0xff]   ;;  %v1898_v10 = vld [vmem:[%s2657_s3 + $0x64] ss:$8 sps:$4 sm:$0xff]  }
  0x2d   : > { %v1893_v9 = vld [vmem:[%s2657_s3 + $0x170] ss:$8 sps:$4 sm:$0xff]   ;;  %v1901_v11 = vld [vmem:[%s2657_s3 + $0x164] ss:$8 sps:$4 sm:$0xff]   ;;  %v1896_v12 = vld [vmem:[%s2657_s3 + $0x60] ss:$8 sps:$4 sm:$0xff]  }
  0x2e   : > { %794 = vmatpush1.bf16.msra.mxu0 %v1834_v26  ;;  %837 = vmatpush1.bf16.msra.mxu1 %v1835_v27  ;;  %v1899_v13 = vld [vmem:[%s2657_s3 + $0x160] ss:$8 sps:$4 sm:$0xff]   ;;  %v1904_v14 = vld [vmem:[%s2657_s3 + $0x54] ss:$8 sps:$4 sm:$0xff]   ;;  %v1902_v16 = vld [vmem:[%s2657_s3 + $0x50] ss:$8 sps:$4 sm:$0xff]  }
  0x2f   : > { %795 = vmatprep.subr.bf16.mxu0 %v1836_v28  ;;  %838 = vmatprep.subr.bf16.mxu1 %v1838_v29  ;;  %v1907_v15 = vld [vmem:[%s2657_s3 + $0x154] ss:$8 sps:$4 sm:$0xff]   ;;  %v1905_v17 = vld [vmem:[%s2657_s3 + $0x150] ss:$8 sps:$4 sm:$0xff]   ;;  %v1910_v18 = vld [vmem:[%s2657_s3 + $0x44] ss:$8 sps:$4 sm:$0xff]  }
  0x30   : > { %v1913_v19 = vld [vmem:[%s2657_s3 + $0x144] ss:$8 sps:$4 sm:$0xff]   ;;  %v1908_v20 = vld [vmem:[%s2657_s3 + $0x40] ss:$8 sps:$4 sm:$0xff]   ;;  %v1916_v22 = vld [vmem:[%s2657_s3 + $0x34] ss:$8 sps:$4 sm:$0xff]  }
  0x31   : > { %v1911_v21 = vld [vmem:[%s2657_s3 + $0x140] ss:$8 sps:$4 sm:$0xff]   ;;  %v1919_v23 = vld [vmem:[%s2657_s3 + $0x134] ss:$8 sps:$4 sm:$0xff]   ;;  %v1914_v24 = vld [vmem:[%s2657_s3 + $0x30] ss:$8 sps:$4 sm:$0xff]  }
  0x32   : > { %796 = vmatpush1.bf16.msra.mxu0 %v1840_v30  ;;  %839 = vmatpush1.bf16.msra.mxu1 %v1841_v31  ;;  %v1917_v25 = vld [vmem:[%s2657_s3 + $0x130] ss:$8 sps:$4 sm:$0xff]   ;;  %v1922_v26 = vld [vmem:[%s2657_s3 + $0x24] ss:$8 sps:$4 sm:$0xff]   ;;  %v1920_v28 = vld [vmem:[%s2657_s3 + $0x20] ss:$8 sps:$4 sm:$0xff]  }
  0x33   : > { %797 = vmatprep.subr.bf16.mxu0 %v1842_v32  ;;  %840 = vmatprep.subr.bf16.mxu1 %v1844_v33  ;;  %v1925_v27 = vld [vmem:[%s2657_s3 + $0x124] ss:$8 sps:$4 sm:$0xff]   ;;  %v1923_v29 = vld [vmem:[%s2657_s3 + $0x120] ss:$8 sps:$4 sm:$0xff]   ;;  %v1928_v30 = vld [vmem:[%s2657_s3 + $0x14] ss:$8 sps:$4 sm:$0xff]  }
  0x34   : > { %v1931_v31 = vld [vmem:[%s2657_s3 + $0x114] ss:$8 sps:$4 sm:$0xff]   ;;  %v1926_v32 = vld [vmem:[%s2657_s3 + $0x10] ss:$8 sps:$4 sm:$0xff]   ;;  %s1596_s16 = sshll.u32 %s332_s18, 5  ;;  %s2609_s27 = scalar_lea.sflag [#allocation4], %s332_s18 }
  0x35   : > { %v1929_v33 = vld [vmem:[%s2657_s3 + $0x110] ss:$8 sps:$4 sm:$0xff]   ;;  %s334_s23 = scalar_lea.vmem [#allocation3], %s1596_s16  ;;  %s1996_s12 = scalar_lea.vmem %s1995_s10, 1024 }
  0x36   : > { %798 = vmatpush2.bf16.msra.mxu0 %v1846_v34  ;;  %841 = vmatpush2.bf16.msra.mxu1 %v1847_v35  ;;  %v1934_v34 = vld [vmem:[%s2657_s3 + $0x4] ss:$8 sps:$4 sm:$0xff]   ;;  %v1953_v51 = vld [vmem:[%s2657_s3 + $0x1d0] ss:$8 sps:$4 sm:$0xff]   ;;  %s1476_s19 = sshll.u32 %s334_s23, 4  ;;  %s2607_s19 = int_to_ptr.vmem [resolvable:$true] %s1476_s19 }
  0x37   : > { %799 = vmatprep.subr.bf16.mxu0 %v1848_v36  ;;  %842 = vmatprep.subr.bf16.mxu1 %v1850_v37  ;;  %v1937_v35 = vld [vmem:[%s2657_s3 + $0x104] ss:$8 sps:$4 sm:$0xff]   ;;  %v1932_v36 = vld [vmem:[%s2657_s3] ss:$8 sps:$4 sm:$0xff]   ;;  %s1990_s8 = scalar_lea.vmem %s2607_s19, 512  ;;  %p1997_p1 = scmp.lt.s32.totalorder %s2607_s19, %s1995_s10 }
  0x38   : > { %v1935_v37 = vld [vmem:[%s2657_s3 + $0x100] ss:$8 sps:$4 sm:$0xff]   ;;  %p1991_p12 = scmp.ne.s32.totalorder %s2607_s19, %s1990_s8  ;;  %p1998_p2 = scmp.lt.s32.totalorder %s1996_s12, %s1990_s8 }
  0x3a   : > { %800 = vmatpush2.bf16.msra.mxu0 %v1852_v38  ;;  %843 = vmatpush2.bf16.msra.mxu1 %v1853_v39  ;;  %v1940_v38 = vld [vmem:[%s2657_s3 + $0xf4] ss:$8 sps:$4 sm:$0xff]   ;;  %p1992_p13 = pnand %p1991_p12, %p2151_p4  ;;  %p1999_p3 = por %p1998_p2, %p1997_p1 }
  0x3b   : > { %801 = vmatprep.subr.bf16.mxu0 %v1854_v40  ;;  %844 = vmatprep.subr.bf16.mxu1 %v1856_v41  ;;  %v1943_v39 = vld [vmem:[%s2657_s3 + $0x1f4] ss:$8 sps:$4 sm:$0xff]   ;;  %v1938_v40 = vld [vmem:[%s2657_s3 + $0xf0] ss:$8 sps:$4 sm:$0xff]  }
  0x3c   : > { %v1941_v41 = vld [vmem:[%s2657_s3 + $0x1f0] ss:$8 sps:$4 sm:$0xff]   ;;  %p1993_p0 = pneg %p1992_p13 }
  0x3e   : > { %802 = vmatpush2.bf16.msra.mxu0 %v1858_v42  ;;  %845 = vmatpush2.bf16.msra.mxu1 %v1859_v43  ;;  %v1946_v42 = vld [vmem:[%s2657_s3 + $0xe4] ss:$8 sps:$4 sm:$0xff]   ;;  %p2000_p5 = pnand %p1999_p3, %p1993_p0 }
  0x3f   : > { %803 = vmatprep.subr.bf16.mxu0 %v1860_v44  ;;  %846 = vmatprep.subr.bf16.mxu1 %v1862_v45  ;;  %v1949_v43 = vld [vmem:[%s2657_s3 + $0x1e4] ss:$8 sps:$4 sm:$0xff]   ;;  %v1944_v44 = vld [vmem:[%s2657_s3 + $0xe0] ss:$8 sps:$4 sm:$0xff]  }
  0x40   : > { %v1947_v45 = vld [vmem:[%s2657_s3 + $0x1e0] ss:$8 sps:$4 sm:$0xff]  }
  0x42   : > { %804 = vmatpush2.bf16.msra.mxu0 %v1864_v47  ;;  %847 = vmatpush2.bf16.msra.mxu1 %v1865_v48  ;;  %v1952_v47 = vld [vmem:[%s2657_s3 + $0xd4] ss:$8 sps:$4 sm:$0xff]  }
  0x43   : > { %805 = vmatprep.subr.bf16.mxu0 %v1866_v50  ;;  %848 = vmatprep.subr.bf16.mxu1 %v1868_v52  ;;  %v1955_v48 = vld [vmem:[%s2657_s3 + $0x1d4] ss:$8 sps:$4 sm:$0xff]   ;;  %v1950_v50 = vld [vmem:[%s2657_s3 + $0xd0] ss:$8 sps:$4 sm:$0xff]   ;;  %v1958_v52 = vld [vmem:[%s2657_s3 + $0xc4] ss:$8 sps:$4 sm:$0xff]  }
  0x46   : > { %806 = vmatpush2.bf16.msra.mxu0 %v1870_v53  ;;  %849 = vmatpush2.bf16.msra.mxu1 %v1871_v54  ;;  %v1961_v53 = vld [vmem:[%s2657_s3 + $0x1c4] ss:$8 sps:$4 sm:$0xff]   ;;  %v1956_v54 = vld [vmem:[%s2657_s3 + $0xc0] ss:$8 sps:$4 sm:$0xff]  }
  0x47   : > { %807 = vmatprep.subr.bf16.mxu0 %v1872_v55  ;;  %850 = vmatprep.subr.bf16.mxu1 %v1874_v56  ;;  %v1959_v55 = vld [vmem:[%s2657_s3 + $0x1c0] ss:$8 sps:$4 sm:$0xff]   ;;  %v1964_v56 = vld [vmem:[%s2657_s3 + $0xb4] ss:$8 sps:$4 sm:$0xff]  }
  0x4a   : > { %808 = vmatpush2.bf16.msra.mxu0 %v1876_v57  ;;  %851 = vmatpush2.bf16.msra.mxu1 %v1877_v58  ;;  %v1967_v57 = vld [vmem:[%s2657_s3 + $0x1b4] ss:$8 sps:$4 sm:$0xff]   ;;  %v1962_v58 = vld [vmem:[%s2657_s3 + $0xb0] ss:$8 sps:$4 sm:$0xff]  }
  0x4b   : > { %809 = vmatprep.subr.bf16.mxu0 %v1878_v59  ;;  %852 = vmatprep.subr.bf16.mxu1 %v1880_v60  ;;  %v1965_v59 = vld [vmem:[%s2657_s3 + $0x1b0] ss:$8 sps:$4 sm:$0xff]   ;;  %v1970_v60 = vld [vmem:[%s2657_s3 + $0xa4] ss:$8 sps:$4 sm:$0xff]  }
  0x4e   : > { %810 = vmatpush2.bf16.msra.mxu0 %v1882_v61  ;;  %853 = vmatpush2.bf16.msra.mxu1 %v1883_v62  ;;  %v1973_v61 = vld [vmem:[%s2657_s3 + $0x1a4] ss:$8 sps:$4 sm:$0xff]   ;;  %v1968_v62 = vld [vmem:[%s2657_s3 + $0xa0] ss:$8 sps:$4 sm:$0xff]  }
  0x4f   : > { %811 = vmatprep.subr.bf16.mxu0 %v1884_v63  ;;  %854 = vmatprep.subr.bf16.mxu1 %v1886_v0  ;;  %v1971_v63 = vld [vmem:[%s2657_s3 + $0x1a0] ss:$8 sps:$4 sm:$0xff]   ;;  %v1976_v0 = vld [vmem:[%s2657_s3 + $0x94] ss:$8 sps:$4 sm:$0xff]  }
  0x52   : > { %812 = vmatpush2.bf16.msra.mxu0 %v1888_v1  ;;  %855 = vmatpush2.bf16.msra.mxu1 %v1889_v2  ;;  %v1979_v1 = vld [vmem:[%s2657_s3 + $0x194] ss:$8 sps:$4 sm:$0xff]   ;;  %v1974_v2 = vld [vmem:[%s2657_s3 + $0x90] ss:$8 sps:$4 sm:$0xff]  }
  0x53   : > { %1267 = vmatprep.subr.bf16.mxu0 %v1892_v5  ;;  %1310 = vmatprep.subr.bf16.mxu1 %v1895_v6  ;;  %v1977_v5 = vld [vmem:[%s2657_s3 + $0x190] ss:$8 sps:$4 sm:$0xff]   ;;  %v1982_v6 = vld [vmem:[%s2657_s3 + $0x84] ss:$8 sps:$4 sm:$0xff]  }
  0x55   : > { %814 = vmatmul.mubr.bf16.vlgmr.msra.gmra.mxu0 %v373_v7  ;;  %857 = vmatmul.mubr.bf16.vlgmr.msra.gmra.mxu1 %v373_v7  ;;  %v1985_v7 = vld [vmem:[%s2657_s3 + $0x184] ss:$8 sps:$4 sm:$0xff]  }
  0x56   : > { %1268 = vmatpush1.bf16.msra.mxu0 %v1890_v8  ;;  %1311 = vmatpush1.bf16.msra.mxu1 %v1893_v9  ;;  %v1980_v8 = vld [vmem:[%s2657_s3 + $0x80] ss:$8 sps:$4 sm:$0xff]  }
  0x57   : > { %1269 = vmatprep.subr.bf16.mxu0 %v1898_v10  ;;  %1312 = vmatprep.subr.bf16.mxu1 %v1901_v11  ;;  %v1983_v9 = vld [vmem:[%s2657_s3 + $0x180] ss:$8 sps:$4 sm:$0xff]   ;;  %v441_v10 = vlaneseq }
  0x59   : > { %v442_v11 = vshrl.u32 %v441_v10, 7 }
  0x5a   : > { %1270 = vmatpush1.bf16.msra.mxu0 %v1896_v12  ;;  %1313 = vmatpush1.bf16.msra.mxu1 %v1899_v13 }
  0x5b   : > { %1271 = vmatprep.subr.bf16.mxu0 %v1904_v14  ;;  %1314 = vmatprep.subr.bf16.mxu1 %v1907_v15  ;;  %v2572_v12 = vsub.s32 1, %v442_v11  ;;  %v455_v13 = vsub.s32 3, %v442_v11  ;;  %v2574_v14 = vsub.s32 0, %v442_v11  ;;  %v451_v15 = vsub.s32 2, %v442_v11 }
  0x5e   : > { %1272 = vmatpush1.bf16.msra.mxu0 %v1902_v16  ;;  %1315 = vmatpush1.bf16.msra.mxu1 %v1905_v17  ;;  %v439_v16 = vld [vmem:[%s2656_s2] sm:$0xf] }
  0x5f   : > { %1273 = vmatprep.subr.bf16.mxu0 %v1910_v18  ;;  %1316 = vmatprep.subr.bf16.mxu1 %v1913_v19  ;;  %v448_v19 = vrot.slane %v439_v16, %v2572_v12 }
  0x62   : > { %1274 = vmatpush1.bf16.msra.mxu0 %v1908_v20  ;;  %1317 = vmatpush1.bf16.msra.mxu1 %v1911_v21  ;;  %v456_v20 = vrot.slane %v439_v16, %v455_v13  ;;  %v444_v21 = vrot.slane %v439_v16, %v2574_v14 }
  0x63   : > { %1275 = vmatprep.subr.bf16.mxu0 %v1916_v22  ;;  %1318 = vmatprep.subr.bf16.mxu1 %v1919_v23  ;;  %v452_v22 = vrot.slane %v439_v16, %v451_v15 }
  0x66   : > { %1276 = vmatpush1.bf16.msra.mxu0 %v1914_v24  ;;  %1319 = vmatpush1.bf16.msra.mxu1 %v1917_v25 }
  0x67   : > { %1277 = vmatprep.subr.bf16.mxu0 %v1922_v26  ;;  %1320 = vmatprep.subr.bf16.mxu1 %v1925_v27 }
  0x6a   : > { %1278 = vmatpush1.bf16.msra.mxu0 %v1920_v28  ;;  %1321 = vmatpush1.bf16.msra.mxu1 %v1923_v29 }
  0x6b   : > { %1279 = vmatprep.subr.bf16.mxu0 %v1928_v30  ;;  %1322 = vmatprep.subr.bf16.mxu1 %v1931_v31 }
  0x6e   : > { %1280 = vmatpush1.bf16.msra.mxu0 %v1926_v32  ;;  %1323 = vmatpush1.bf16.msra.mxu1 %v1929_v33 }
  0x6f   : > { %1281 = vmatprep.subr.bf16.mxu0 %v1934_v34  ;;  %1324 = vmatprep.subr.bf16.mxu1 %v1937_v35 }
  0x72   : > { %1282 = vmatpush1.bf16.msra.mxu0 %v1932_v36  ;;  %1325 = vmatpush1.bf16.msra.mxu1 %v1935_v37 }
  0x73   : > { %1283 = vmatprep.subr.bf16.mxu0 %v1940_v38  ;;  %1326 = vmatprep.subr.bf16.mxu1 %v1943_v39 }
  0x76   : > { %1284 = vmatpush2.bf16.msra.mxu0 %v1938_v40  ;;  %1327 = vmatpush2.bf16.msra.mxu1 %v1941_v41 }
  0x77   : > { %1285 = vmatprep.subr.bf16.mxu0 %v1946_v42  ;;  %1328 = vmatprep.subr.bf16.mxu1 %v1949_v43 }
  0x7a   : > { %1286 = vmatpush2.bf16.msra.mxu0 %v1944_v44  ;;  %1329 = vmatpush2.bf16.msra.mxu1 %v1947_v45 }
  0x7b   : > { %1287 = vmatprep.subr.bf16.mxu0 %v1952_v47  ;;  %1330 = vmatprep.subr.bf16.mxu1 %v1955_v48 }
  0x7e   : > { %1288 = vmatpush2.bf16.msra.mxu0 %v1950_v50  ;;  %1331 = vmatpush2.bf16.msra.mxu1 %v1953_v51  ;;  %v1368_v51 = vld [vmem:[%s2658_s4] sm:$0x3] }
  0x7f   : > { %1289 = vmatprep.subr.bf16.mxu0 %v1958_v52  ;;  %1332 = vmatprep.subr.bf16.mxu1 %v1961_v53  ;;  %v1373_v52 = vrot.slane %v1368_v51, %v2574_v14 }
  0x82   : > { %1290 = vmatpush2.bf16.msra.mxu0 %v1956_v54  ;;  %1333 = vmatpush2.bf16.msra.mxu1 %v1959_v55 }
  0x83   : > { %1291 = vmatprep.subr.bf16.mxu0 %v1964_v56  ;;  %1334 = vmatprep.subr.bf16.mxu1 %v1967_v57  ;;  %v1377_v56 = vrot.slane %v1368_v51, %v2572_v12 }
  0x86   : > { %1292 = vmatpush2.bf16.msra.mxu0 %v1962_v58  ;;  %1335 = vmatpush2.bf16.msra.mxu1 %v1965_v59 }
  0x87   : > { %1293 = vmatprep.subr.bf16.mxu0 %v1970_v60  ;;  %1336 = vmatprep.subr.bf16.mxu1 %v1973_v61 }
  0x8a   : > { %1294 = vmatpush2.bf16.msra.mxu0 %v1968_v62  ;;  %1337 = vmatpush2.bf16.msra.mxu1 %v1971_v63 }
  0x8b   : > { %1295 = vmatprep.subr.bf16.mxu0 %v1976_v0  ;;  %1338 = vmatprep.subr.bf16.mxu1 %v1979_v1 }
  0x8e   : > { %1296 = vmatpush2.bf16.msra.mxu0 %v1974_v2  ;;  %1339 = vmatpush2.bf16.msra.mxu1 %v1977_v5 }
  0x8f   : > { %1297 = vmatprep.subr.bf16.mxu0 %v1982_v6  ;;  %1340 = vmatprep.subr.bf16.mxu1 %v1985_v7 }
  0x92   : > { %1298 = vmatpush2.bf16.msra.mxu0 %v1980_v8  ;;  %1341 = vmatpush2.bf16.msra.mxu1 %v1983_v9 }
 0x115   : > { %v815_v17 = vpop.f32.mrf.mxu0  ;;  %v858_v18 = vpop.f32.mrf.mxu1 }
 0x116   : > { %v816_v31 = vadd.f32 %v815_v17, %v444_v21  ;;  %v859_v32 = vadd.f32 %v858_v18, %v452_v22 }
 0x117   : > { %v817_v23 = vpop.f32.mrf.mxu0  ;;  %v860_v24 = vpop.f32.mrf.mxu1 }
 0x118   : > { %v818_v27 = vadd.f32 %v817_v23, %v448_v19  ;;  %v861_v28 = vadd.f32 %v860_v24, %v456_v20  ;;  %v867_v43 = vmax.f32 %v816_v31, 0.0  ;;  %v869_v44 = vmax.f32 %v859_v32, 0.0  ;;  %v1425_v32 = vld [vmem:[%s2659_s5] sm:$0x3] }
 0x119   : > { %v819_v25 = vpop.f32.mrf.mxu0  ;;  %v862_v26 = vpop.f32.mrf.mxu1 }
 0x11a   : > { %v820_v29 = vadd.f32 %v819_v25, %v444_v21  ;;  %v863_v30 = vadd.f32 %v862_v26, %v452_v22  ;;  %v868_v39 = vmax.f32 %v818_v27, 0.0  ;;  %v870_v40 = vmax.f32 %v861_v28, 0.0 }
 0x11b   : > { %v821_v33 = vpop.f32.mrf.mxu0  ;;  %v864_v34 = vpop.f32.mrf.mxu1 }
 0x11c   : > { %v822_v35 = vadd.f32 %v821_v33, %v448_v19  ;;  %v865_v36 = vadd.f32 %v864_v34, %v456_v20  ;;  %v871_v37 = vmax.f32 %v820_v29, 0.0  ;;  %v873_v38 = vmax.f32 %v863_v30, 0.0  ;;  %v1441_v33 = vld [vmem:[%s2660_s6] sm:$0x3] }
 0x11d   : > { %v1430_v34 = vrot.slane %v1425_v32, %v2574_v14 }
 0x11e   : > { %v872_v41 = vmax.f32 %v822_v35, 0.0  ;;  %v874_v42 = vmax.f32 %v865_v36, 0.0  ;;  %v879_v48 = vpack.c.bf16 %v871_v37, %v867_v43  ;;  %v881_v50 = vpack.c.bf16 %v873_v38, %v869_v44 }
 0x11f   : > { %v1434_v35 = vrot.slane %v1425_v32, %v2572_v12  ;;  %v1446_v37 = vrot.slane %v1441_v33, %v2574_v14  ;;  %v1450_v38 = vrot.slane %v1441_v33, %v2572_v12 }
 0x120   : > { %v880_v45 = vpack.c.bf16 %v872_v41, %v868_v39  ;;  %v882_v47 = vpack.c.bf16 %v874_v42, %v870_v40 }
 0x122   : > { %1299 = vmatprep.mubr.bf16.mxu0 %v880_v45  ;;  %1342 = vmatprep.mubr.bf16.mxu1 %v882_v47 }
 0x123   : > { %1300 = vmatmul.mubr.bf16.vlgmr.msra.gmra.mxu0 %v879_v48  ;;  %1343 = vmatmul.mubr.bf16.vlgmr.msra.gmra.mxu1 %v881_v50 }
 0x1e3   : > { %v1301_v53 = vpop.f32.mrf.mxu0  ;;  %v1344_v54 = vpop.f32.mrf.mxu1 }
 0x1e4   : > { %v1345_v55 = vadd.f32 %v1344_v54, %v1301_v53 }
 0x1e5   : > { %v1303_v57 = vpop.f32.mrf.mxu0  ;;  %v1346_v58 = vpop.f32.mrf.mxu1 }
 0x1e6   : > { %v1380_v59 = vadd.f32 %v1373_v52, %v1345_v55  ;;  %v1347_v60 = vadd.f32 %v1346_v58, %v1303_v57 }
 0x1e7   : > { %v1305_v61 = vpop.f32.mrf.mxu0  ;;  %v1348_v62 = vpop.f32.mrf.mxu1 }
 0x1e8   : > { %v1381_v63 = vadd.f32 %v1377_v56, %v1347_v60  ;;  %v1349_v0 = vadd.f32 %v1348_v62, %v1305_v61  ;;  %v1388_v7 = vadd.f32 %v1380_v59, %v2373_v3 }
 0x1e9   : > { %v1307_v1 = vpop.f32.mrf.mxu0  ;;  %v1350_v2 = vpop.f32.mrf.mxu1 }
 0x1ea   : > { %v1382_v5 = vadd.f32 %v1373_v52, %v1349_v0  ;;  %v1351_v6 = vadd.f32 %v1350_v2, %v1307_v1  ;;  %v1389_v8 = vadd.f32 %v1381_v63, %v2311_v46 }
 0x1ec   : > { %v1383_v9 = vadd.f32 %v1377_v56, %v1351_v6  ;;  %v1392_v10 = vadd.f32 %v1389_v8, %v1388_v7  ;;  %v1390_v11 = vadd.f32 %v1382_v5, %v2376_v4 }
 0x1ee   : > { %1393 = vadd.xlane.f32.xlu0 %v1392_v10  ;;  %v1391_v13 = vadd.f32 %v1383_v9, %v2320_v49 }
 0x1f0   : > { %v1395_v15 = vadd.f32 %v1391_v13, %v1390_v11 }
 0x1f2   : > { %1396 = vadd.xlane.f32.xlu0 %v1395_v15 }
 0x277   : > { %v1394_v16 = vpop.xlane.xlu0 %1393 }
 0x278   : > { %v1399_v17 = vmul.f32 0.00390625, %v1394_v16 }
 0x27a   : > { %v1401_v18 = vsub.f32 %v1388_v7, %v1399_v17  ;;  %v1402_v19 = vsub.f32 %v1389_v8, %v1399_v17 }
 0x27b   : > { %v1397_v20 = vpop.xlane.xlu0 %1396 }
 0x27c   : > { %v1400_v21 = vmul.f32 0.00390625, %v1397_v20  ;;  %v1405_v22 = vmul.f32 %v1401_v18, %v1401_v18  ;;  %v1406_v23 = vmul.f32 %v1402_v19, %v1402_v19 }
 0x27e   : > { %v1403_v3 = vsub.f32 %v1390_v11, %v1400_v21  ;;  %v1404_v24 = vsub.f32 %v1391_v13, %v1400_v21  ;;  %v1409_v46 = vadd.f32 %v1406_v23, %v1405_v22 }
 0x280   : > { %1410 = vadd.xlane.f32.xlu1 %v1409_v46  ;;  %v1407_v25 = vmul.f32 %v1403_v3, %v1403_v3  ;;  %v1408_v26 = vmul.f32 %v1404_v24, %v1404_v24 }
 0x282   : > { %v1412_v4 = vadd.f32 %v1408_v26, %v1407_v25 }
 0x284   : > { %1413 = vadd.xlane.f32.xlu1 %v1412_v4 }
 0x309   : > { %v1411_v49 = vpop.xlane.xlu1 %1410 }
 0x30a   : > { %v1415_v27 = vmul.f32 0.00390625, %v1411_v49 }
 0x30c   : > { %v1417_v28 = vadd.f32 1e-06, %v1415_v27 }
 0x30d   : > { %v1414_v29 = vpop.xlane.xlu1 %1413 }
 0x30e   : > { %1986 = vrsqrt.f32 %v1417_v28  ;;  %v1416_v30 = vmul.f32 0.00390625, %v1414_v29 }
 0x310   : > { %v1418_v31 = vadd.f32 1e-06, %v1416_v30 }
 0x312   : > { %1988 = vrsqrt.f32 %v1418_v31 }
 0x31b   : > { %v1987_v36 = vpop.eup %1986 }
 0x31c   : > { %v1421_v39 = vmul.f32 %v1987_v36, %v1401_v18  ;;  %v1422_v40 = vmul.f32 %v1987_v36, %v1402_v19 }
 0x31e   : > { %v1437_v41 = vmul.f32 %v1430_v34, %v1421_v39  ;;  %v1438_v42 = vmul.f32 %v1434_v35, %v1422_v40 }
 0x31f   : > { %v1989_v43 = vpop.eup %1988 }
 0x320   : > { %v1453_v44 = vadd.f32 %v1446_v37, %v1437_v41  ;;  %v1454_v45 = vadd.f32 %v1450_v38, %v1438_v42  ;;  %v1423_v47 = vmul.f32 %v1989_v43, %v1403_v3  ;;  %v1424_v48 = vmul.f32 %v1989_v43, %v1404_v24 }
 0x322   : > { %v1439_v50 = vmul.f32 %v1430_v34, %v1423_v47  ;;  %v1440_v51 = vmul.f32 %v1434_v35, %v1424_v48  ;;  %1457 = vst [vmem:[%s334_s23] sm:$0xff] %v1453_v44  ;;  %1458 = vst [vmem:[%s334_s23 + $0x8] sm:$0xff] %v1454_v45 }
 0x324   : > { %v1455_v12 = vadd.f32 %v1446_v37, %v1439_v50  ;;  %v1456_v14 = vadd.f32 %v1450_v38, %v1440_v51 }
 0x326   : > { %1459 = vst [vmem:[%s334_s23 + $0x10] sm:$0xff] %v1455_v12  ;;  %1460 = vst [vmem:[%s334_s23 + $0x18] sm:$0xff] %v1456_v14 }
 0x327   : > { %2003 = shalt.err (!%p2000_p5)
}
 0x328   : > { %s2004_s15 = scalar_lea.hbm %s2605_s30, 512  ;;  %s2008_s17 = scalar_lea.hbm %s2661_s7, 1024 }
 0x329   : > { %p2005_p6 = scmp.ne.s32.totalorder %s2605_s30, %s2004_s15  ;;  %p2009_p10 = scmp.lt.s32.totalorder %s2605_s30, %s2661_s7 }
 0x32a   : > { %p2010_p11 = scmp.lt.s32.totalorder %s2008_s17, %s2004_s15 }
 0x32b   : > { %p2006_p7 = pnand %p2005_p6, %p2151_p4 }
 0x32c   : > { %p2011_p12 = por %p2010_p11, %p2009_p10 }
 0x32d   : > { %p2007_p9 = pneg %p2006_p7 }
 0x32f   : > { %p2012_p13 = pnand %p2011_p12, %p2007_p9 }
 0x331   : > { %2015 = shalt.err (!%p2012_p13)
}
 0x332   : > { %s2069_s22 = smov 256   ;;  %s2070_s8 = smov 16  }
 0x333   : > { %1737 = dma.vmem_to_hbm [thread:$0]  (%p2151_p4), %s2607_s19, 512, %s2605_s30, %s2609_s27, %s2069_s22, %s2069_s22, %s2070_s8  }
 0x334 PF: > { %p1743_p0 = scmp.ge.s32.totalorder %s2066_s29, 2  ;;  %s1491_s21 = sand.u32 1, %s2046_s24  }
 0x335   : > { %s1492_s10 = scalar_lea.sflag [#allocation4], %s1491_s21 }
 0x336   : > { %p1740_p1 = pnand %p1743_p0, %p2158_p8 }
 0x338   : > { %p1741_p2 = pneg %p1740_p1 }
 0x33a   : > { %2041 = dma.done.wait (%p1741_p2), %s1492_s10, 512  }
 0x33b   : > { %2043 = vsyncadd (%p1741_p2), %s1492_s10, 4294966784  ;;  %s20_s29 = sadd.s32 1, %s2066_s29   ;;  %s2664_s24 = smov %s2050_s25 }
 0x33c   : > { %p17_p3 = scmp.ge.s32.totalorder %s20_s29, 4   ;;  %s2665_s25 = smov %s2054_s26 }
 0x33d   : > { %s2666_s26 = smov %s2164_s14  ;;  %s2667_s27 = smov %s2062_s28 }
 0x33e   : > { %s2668_s28 = smov %s2670_s9  ;;  %19 = sbr.rel (!%p17_p3) target bundleno = 4 (0x4), region = 100 }
 0x343   :  { %1497 = vsyncpa [#allocation4], 1 }
 0x344   :  { %1499 = vsyncpa [#allocation4 + $0x1], 1 }

</bundles_post_ra>
